<compile_context>
chip_gen: v6e
topology: v6e:2x2x1
jax: 0.10.0
libtpu: 0.0.40
codegen_flags: <defaults>
</compile_context>

<pallas_src>
import functools

import jax
import jax.numpy as jnp
from jax import lax
from jax.experimental import pallas as pl
from jax.experimental.pallas import tpu as pltpu

LANE = 128


# ----------------------------- kernel -----------------------------

def _make_col(x_f32, width):
    """(HW, Cp) f32 -> (HW, 3*Cp) bf16 with the dx = -1 / 0 / +1 taps on the lane axis.

    Shifts are done with pltpu.roll on f32 (XLU) + an x-position boundary mask, then cast to
    bf16 once per tap.
    """
    hw, _ = x_f32.shape
    xpos = lax.broadcasted_iota(jnp.int32, (hw, 1), 0) % width          # x coordinate per row
    left = jnp.where(xpos > 0, pltpu.roll(x_f32, 1, axis=0), 0.0)       # x[hw-1], zero at x==0
    right = jnp.where(xpos < width - 1,
                      pltpu.roll(x_f32, hw - 1, axis=0), 0.0)           # x[hw+1], zero at x==W-1
    return jnp.concatenate(
        [left.astype(jnp.bfloat16), x_f32.astype(jnp.bfloat16), right.astype(jnp.bfloat16)],
        axis=-1)


def _conv_from_col(col, w_ref, width):
    """3 accumulating matmuls: out[hw] = sum_ky col[hw + (ky-1)*W] @ w_ref[ky]."""
    hw, kc = col.shape
    zrows = jnp.zeros((width, kc), col.dtype)
    # ky = 1 (dy = 0)
    acc = jnp.dot(col, w_ref[1], preferred_element_type=jnp.float32)
    # ky = 0 (dy = -1): LHS[hw] = col[hw - W]  (zeros for the first W rows)
    acc += jnp.dot(jnp.concatenate([zrows, col[: hw - width]], axis=0), w_ref[0],
                   preferred_element_type=jnp.float32)
    # ky = 2 (dy = +1): LHS[hw] = col[hw + W]  (zeros for the last W rows)
    acc += jnp.dot(jnp.concatenate([col[width:], zrows], axis=0), w_ref[2],
                   preferred_element_type=jnp.float32)
    return acc


def _basic_block_kernel(x_ref, w1_ref, w2_ref, b1_ref, b2_ref, out_ref, *, width):
    # x_ref  : (1, HW, Cp) f32  -- input block, also reused as the residual (single HBM read)
    # w1/w2  : (3, 3*Cp, Cp) bf16 -- per-ky im2col weight slabs, BN scale pre-folded (resident)
    # b1/b2  : (1, Cp) f32       -- folded BatchNorm bias (inference mode)
    # out_ref: (1, HW, Cp) f32
    _, hw, cp = x_ref.shape
    x_f32 = x_ref[0]                                                    # (HW, Cp)

    # ---- conv1 (+ folded BN1 scale) : 3-tap col + 3 accumulating MXU matmuls ----
    col1 = _make_col(x_f32, width)                                      # (HW, 3*Cp) bf16
    acc1 = _conv_from_col(col1, w1_ref, width)                          # (HW, Cp) f32

    # ---- bn1 bias + relu ----
    act1 = jnp.maximum(acc1 + b1_ref[...], 0.0)                         # (HW, Cp) f32

    # ---- conv2 (+ folded BN2 scale) ----
    col2 = _make_col(act1, width)
    acc2 = _conv_from_col(col2, w2_ref, width)

    # ---- bn2 bias + residual add + relu ----
    out = jnp.maximum(acc2 + b2_ref[...] + x_f32, 0.0)
    out_ref[...] = out.reshape(1, hw, cp).astype(out_ref.dtype)


def basic_block_pallas(x_flat, w1_col, w2_col, b1, b2, *, width):
    """x_flat: (N, H*W, Cp) f32 with Cp % 128 == 0; w*_col: (3, 3*Cp, Cp) bf16; b*: (1, Cp)."""
    n, hw, cp = x_flat.shape
    kc = 3 * cp
    kernel = functools.partial(_basic_block_kernel, width=width)
    grid_spec = pltpu.PrefetchScalarGridSpec(
        num_scalar_prefetch=0,
        grid=(n,),
        in_specs=[
            pl.BlockSpec((1, hw, cp), lambda i: (i, 0, 0)),     # x (conv1 input + residual)
            pl.BlockSpec((3, kc, cp), lambda i: (0, 0, 0)),     # w1 (constant index -> resident)
            pl.BlockSpec((3, kc, cp), lambda i: (0, 0, 0)),     # w2
            pl.BlockSpec((1, cp), lambda i: (0, 0)),            # b1
            pl.BlockSpec((1, cp), lambda i: (0, 0)),            # b2
        ],
        out_specs=pl.BlockSpec((1, hw, cp), lambda i: (i, 0, 0)),
    )
    return pl.pallas_call(
        kernel,
        out_shape=jax.ShapeDtypeStruct((n, hw, cp), jnp.float32),
        grid_spec=grid_spec,
        compiler_params=pltpu.CompilerParams(
            dimension_semantics=("parallel",),
            vmem_limit_bytes=64 * 1024 * 1024,
        ),
    )(x_flat, w1_col, w2_col, b1, b2)


# ----------------------------- wrapper (PyTorch NCHW / OIHW layouts) -----------------------------

def _round_up(v, m):
    return (v + m - 1) // m * m


def _oihw_to_col_slabs(w_oihw, scale, cp):
    """(O, I, 3, 3) f32 + per-out-channel BN scale -> (3, 3*Cp, Cp) bf16 per-ky weight slabs.

    slab[ky, kx*Cp + cin, cout] = w[cout, cin, ky, kx] * scale[cout], zero-padded channels.
    """
    o, i = w_oihw.shape[0], w_oihw.shape[1]
    wf = w_oihw * scale[:, None, None, None]                    # fold BN scale (conv is linear)
    wp = jnp.pad(wf, ((0, cp - o), (0, cp - i), (0, 0), (0, 0)))
    wp = jnp.transpose(wp, (2, 3, 1, 0)).reshape(3, 3 * cp, cp)  # (ky, kx, cin, cout)
    return wp.astype(jnp.bfloat16)


def _pad_vec(v, cp):
    return jnp.pad(v, (0, cp - v.shape[0])).reshape(1, cp)


def basic_block(x_nchw, w1_oihw, w2_oihw, s1, b1, s2, b2):
    # NOTE: in a full network keep activations in (N, H*W, Cp) NHWC-flat layout and do this
    # conversion once at the model boundary instead of per block.
    n, c, h, w = x_nchw.shape
    cp = max(LANE, _round_up(c, LANE))                          # lane-dense channel axis
    x = jnp.transpose(x_nchw, (0, 2, 3, 1))
    if cp != c:
        x = jnp.pad(x, ((0, 0), (0, 0), (0, 0), (0, cp - c)))
    x = x.reshape(n, h * w, cp)
    out = basic_block_pallas(
        x,
        _oihw_to_col_slabs(w1_oihw, s1, cp), _oihw_to_col_slabs(w2_oihw, s2, cp),
        _pad_vec(b1, cp), _pad_vec(b2, cp),
        width=w)
    out = out.reshape(n, h, w, cp)[..., :c]
    return jnp.transpose(out, (0, 3, 1, 2))


def basic_block_ref(x_nchw, w1_oihw, w2_oihw, s1, b1, s2, b2):
    """Pure-JAX f32 reference (same semantics as the PyTorch module in eval mode)."""
    def conv(x, wgt):
        return lax.conv_general_dilated(
            x, wgt, window_strides=(1, 1), padding=((1, 1), (1, 1)),
            dimension_numbers=("NCHW", "OIHW", "NCHW"))
    out = conv(x_nchw, w1_oihw)
    out = out * s1[None, :, None, None] + b1[None, :, None, None]
    out = jnp.maximum(out, 0.0)
    out = conv(out, w2_oihw)
    out = out * s2[None, :, None, None] + b2[None, :, None, None]
    out = out + x_nchw
    return jnp.maximum(out, 0.0)


if __name__ == "__main__":
    key = jax.random.PRNGKey(0)
    N, C, H, W = 2, 4, 16, 16          # inplanes == planes, stride=1, downsample=None
    ks = jax.random.split(key, 11)

    x_nchw = jax.random.normal(ks[0], (N, C, H, W), jnp.float32)

    # conv weights (PyTorch layout OIHW, bias=False)
    w1 = jax.random.normal(ks[1], (C, C, 3, 3), jnp.float32) * 0.2
    w2 = jax.random.normal(ks[2], (C, C, 3, 3), jnp.float32) * 0.2

    # BatchNorm2d parameters + running stats, folded for inference
    eps = 1e-5
    g1 = jax.random.uniform(ks[3], (C,), minval=0.5, maxval=1.5)
    be1 = jax.random.normal(ks[4], (C,)) * 0.1
    m1 = jax.random.normal(ks[5], (C,)) * 0.1
    v1 = jax.random.uniform(ks[6], (C,), minval=0.5, maxval=1.5)
    g2 = jax.random.uniform(ks[7], (C,), minval=0.5, maxval=1.5)
    be2 = jax.random.normal(ks[8], (C,)) * 0.1
    m2 = jax.random.normal(ks[9], (C,)) * 0.1
    v2 = jax.random.uniform(ks[10], (C,), minval=0.5, maxval=1.5)

    s1 = g1 / jnp.sqrt(v1 + eps)
    b1 = be1 - m1 * s1
    s2 = g2 / jnp.sqrt(v2 + eps)
    b2 = be2 - m2 * s2

    out = jax.block_until_ready(basic_block(x_nchw, w1, w2, s1, b1, s2, b2))

    ref = jax.block_until_ready(basic_block_ref(x_nchw, w1, w2, s1, b1, s2, b2))
    assert out.shape == (N, C, H, W)
    max_err = float(jnp.max(jnp.abs(out - ref)))
    # bf16 matmul operands with f32 accumulation -> relaxed tolerance vs the f32 reference.
    assert jnp.allclose(out, ref, atol=5e-2, rtol=5e-2), max_err

    print("KERNEL_OK")
</pallas_src>

<mosaic_0001>
module attributes {stable_mosaic.version = 11 : i64} {
  func.func @_basic_block_kernel(%arg0: i32, %arg1: memref<1x256x128xf32, #tpu.memory_space<vmem>>, %arg2: memref<3x384x128xbf16, #tpu.memory_space<vmem>>, %arg3: memref<3x384x128xbf16, #tpu.memory_space<vmem>>, %arg4: memref<1x128xf32, #tpu.memory_space<vmem>>, %arg5: memref<1x128xf32, #tpu.memory_space<vmem>>, %arg6: memref<1x256x128xf32, #tpu.memory_space<vmem>>) attributes {dimension_semantics = [#tpu.dimension_semantics<parallel>], iteration_bounds = array<i64: 2>, scalar_prefetch = 0 : i64, scratch_operands = 0 : i64, tpu.core_type = #tpu.core_type<tc>, window_params = [{transform_indices = @transform_0, window_bounds = array<i64: 1, 256, 128>}, {pipeline_mode = #tpu.pipeline_mode<synchronous>, transform_indices = @transform_1, window_bounds = array<i64: 3, 384, 128>}, {pipeline_mode = #tpu.pipeline_mode<synchronous>, transform_indices = @transform_2, window_bounds = array<i64: 3, 384, 128>}, {pipeline_mode = #tpu.pipeline_mode<synchronous>, transform_indices = @transform_3, window_bounds = array<i64: 1, 128>}, {pipeline_mode = #tpu.pipeline_mode<synchronous>, transform_indices = @transform_4, window_bounds = array<i64: 1, 128>}, {transform_indices = @transform_5, window_bounds = array<i64: 1, 256, 128>}]} {
    %c0 = arith.constant 0 : index
    %c0_0 = arith.constant 0 : index
    %c0_1 = arith.constant 0 : index
    %0 = vector.load %arg1[%c0, %c0_0, %c0_1] : memref<1x256x128xf32, #tpu.memory_space<vmem>>, vector<1x256x128xf32>
    %1 = vector.shape_cast %0 : vector<1x256x128xf32> to vector<256x128xf32>
    %2 = tpu.iota {dimensions = array<i32: 0>} : vector<256x1xi32>
    %c16_i32 = arith.constant 16 : i32
    %c0_i32 = arith.constant 0 : i32
    %3 = arith.cmpi eq, %c16_i32, %c0_i32 : i32
    %c1_i32 = arith.constant 1 : i32
    %4 = arith.select %3, %c1_i32, %c16_i32 : i32
    %5 = vector.broadcast %4 : i32 to vector<256x1xi32>
    %6 = arith.remsi %2, %5 : vector<256x1xi32>
    %c0_i32_2 = arith.constant 0 : i32
    %7 = vector.broadcast %c0_i32_2 : i32 to vector<256x1xi32>
    %8 = arith.cmpi ne, %6, %7 : vector<256x1xi32>
    %c0_i32_3 = arith.constant 0 : i32
    %9 = vector.broadcast %c0_i32_3 : i32 to vector<256x1xi32>
    %10 = arith.cmpi slt, %6, %9 : vector<256x1xi32>
    %c0_i32_4 = arith.constant 0 : i32
    %11 = arith.cmpi slt, %4, %c0_i32_4 : i32
    %12 = vector.broadcast %11 : i1 to vector<256x1xi1>
    %13 = vector.broadcast %12 : vector<256x1xi1> to vector<256x1xi1>
    %14 = arith.xori %10, %13 : vector<256x1xi1>
    %15 = arith.andi %14, %8 : vector<256x1xi1>
    %16 = vector.broadcast %4 : i32 to vector<256x1xi32>
    %17 = arith.addi %6, %16 : vector<256x1xi32>
    %18 = arith.select %15, %17, %6 : vector<256x1xi1>, vector<256x1xi32>
    %c0_i32_5 = arith.constant 0 : i32
    %19 = vector.broadcast %c0_i32_5 : i32 to vector<256x1xi32>
    %20 = arith.cmpi sgt, %18, %19 : vector<256x1xi32>
    %c1_i32_6 = arith.constant 1 : i32
    %21 = tpu.dynamic_rotate %1 by %c1_i32_6 dim 0 : vector<256x128xf32>, i32 -> vector<256x128xf32>
    %cst = arith.constant 0.000000e+00 : f32
    %22 = vector.shape_cast %20 : vector<256x1xi1> to vector<256x1xi1>
    %23 = vector.broadcast %22 : vector<256x1xi1> to vector<256x128xi1>
    %24 = vector.broadcast %cst : f32 to vector<256x128xf32>
    %25 = arith.select %23, %21, %24 : vector<256x128xi1>, vector<256x128xf32>
    %c15_i32 = arith.constant 15 : i32
    %26 = vector.broadcast %c15_i32 : i32 to vector<256x1xi32>
    %27 = arith.cmpi slt, %18, %26 : vector<256x1xi32>
    %c255_i32 = arith.constant 255 : i32
    %28 = tpu.dynamic_rotate %1 by %c255_i32 dim 0 : vector<256x128xf32>, i32 -> vector<256x128xf32>
    %cst_7 = arith.constant 0.000000e+00 : f32
    %29 = vector.shape_cast %27 : vector<256x1xi1> to vector<256x1xi1>
    %30 = vector.broadcast %29 : vector<256x1xi1> to vector<256x128xi1>
    %31 = vector.broadcast %cst_7 : f32 to vector<256x128xf32>
    %32 = arith.select %30, %28, %31 : vector<256x128xi1>, vector<256x128xf32>
    %33 = arith.truncf %25 : vector<256x128xf32> to vector<256x128xbf16>
    %34 = arith.truncf %1 : vector<256x128xf32> to vector<256x128xbf16>
    %35 = arith.truncf %32 : vector<256x128xf32> to vector<256x128xbf16>
    %36 = tpu.concatenate %33, %34, %35 in 1 : vector<256x128xbf16>, vector<256x128xbf16>, vector<256x128xbf16> -> vector<256x384xbf16>
    %cst_8 = arith.constant 0.000000e+00 : bf16
    %37 = vector.broadcast %cst_8 : bf16 to vector<16x384xbf16>
    %c1 = arith.constant 1 : index
    %c0_9 = arith.constant 0 : index
    %c0_10 = arith.constant 0 : index
    %38 = vector.load %arg2[%c1, %c0_9, %c0_10] : memref<3x384x128xbf16, #tpu.memory_space<vmem>>, vector<1x384x128xbf16>
    %39 = vector.shape_cast %38 : vector<1x384x128xbf16> to vector<384x128xbf16>
    %cst_11 = arith.constant dense<0.000000e+00> : vector<256x128xf32>
    %40 = tpu.matmul %36, %39, %cst_11 {dimension_numbers = #tpu.dot_dimension_numbers<[1], [0], [0], [1], [0, 0, 1, 1], [], []>} : vector<256x384xbf16>, vector<384x128xbf16>, vector<256x128xf32> -> vector<256x128xf32>
    %41 = vector.extract_strided_slice %36 {offsets = [0, 0], sizes = [240, 384], strides = [1, 1]} : vector<256x384xbf16> to vector<240x384xbf16>
    %42 = tpu.concatenate %37, %41 in 0 : vector<16x384xbf16>, vector<240x384xbf16> -> vector<256x384xbf16>
    %c0_12 = arith.constant 0 : index
    %c0_13 = arith.constant 0 : index
    %c0_14 = arith.constant 0 : index
    %43 = vector.load %arg2[%c0_12, %c0_13, %c0_14] : memref<3x384x128xbf16, #tpu.memory_space<vmem>>, vector<1x384x128xbf16>
    %44 = vector.shape_cast %43 : vector<1x384x128xbf16> to vector<384x128xbf16>
    %cst_15 = arith.constant dense<0.000000e+00> : vector<256x128xf32>
    %45 = tpu.matmul %42, %44, %cst_15 {dimension_numbers = #tpu.dot_dimension_numbers<[1], [0], [0], [1], [0, 0, 1, 1], [], []>} : vector<256x384xbf16>, vector<384x128xbf16>, vector<256x128xf32> -> vector<256x128xf32>
    %46 = arith.addf %40, %45 : vector<256x128xf32>
    %47 = vector.extract_strided_slice %36 {offsets = [16, 0], sizes = [240, 384], strides = [1, 1]} : vector<256x384xbf16> to vector<240x384xbf16>
    %48 = tpu.concatenate %47, %37 in 0 : vector<240x384xbf16>, vector<16x384xbf16> -> vector<256x384xbf16>
    %c2 = arith.constant 2 : index
    %c0_16 = arith.constant 0 : index
    %c0_17 = arith.constant 0 : index
    %49 = vector.load %arg2[%c2, %c0_16, %c0_17] : memref<3x384x128xbf16, #tpu.memory_space<vmem>>, vector<1x384x128xbf16>
    %50 = vector.shape_cast %49 : vector<1x384x128xbf16> to vector<384x128xbf16>
    %cst_18 = arith.constant dense<0.000000e+00> : vector<256x128xf32>
    %51 = tpu.matmul %48, %50, %cst_18 {dimension_numbers = #tpu.dot_dimension_numbers<[1], [0], [0], [1], [0, 0, 1, 1], [], []>} : vector<256x384xbf16>, vector<384x128xbf16>, vector<256x128xf32> -> vector<256x128xf32>
    %52 = arith.addf %46, %51 : vector<256x128xf32>
    %c0_19 = arith.constant 0 : index
    %c0_20 = arith.constant 0 : index
    %53 = vector.load %arg4[%c0_19, %c0_20] : memref<1x128xf32, #tpu.memory_space<vmem>>, vector<1x128xf32>
    %54 = vector.broadcast %53 : vector<1x128xf32> to vector<256x128xf32>
    %55 = arith.addf %52, %54 : vector<256x128xf32>
    %cst_21 = arith.constant 0.000000e+00 : f32
    %56 = vector.broadcast %cst_21 : f32 to vector<256x128xf32>
    %57 = arith.maximumf %55, %56 : vector<256x128xf32>
    %58 = tpu.iota {dimensions = array<i32: 0>} : vector<256x1xi32>
    %c16_i32_22 = arith.constant 16 : i32
    %c0_i32_23 = arith.constant 0 : i32
    %59 = arith.cmpi eq, %c16_i32_22, %c0_i32_23 : i32
    %c1_i32_24 = arith.constant 1 : i32
    %60 = arith.select %59, %c1_i32_24, %c16_i32_22 : i32
    %61 = vector.broadcast %60 : i32 to vector<256x1xi32>
    %62 = arith.remsi %58, %61 : vector<256x1xi32>
    %c0_i32_25 = arith.constant 0 : i32
    %63 = vector.broadcast %c0_i32_25 : i32 to vector<256x1xi32>
    %64 = arith.cmpi ne, %62, %63 : vector<256x1xi32>
    %c0_i32_26 = arith.constant 0 : i32
    %65 = vector.broadcast %c0_i32_26 : i32 to vector<256x1xi32>
    %66 = arith.cmpi slt, %62, %65 : vector<256x1xi32>
    %c0_i32_27 = arith.constant 0 : i32
    %67 = arith.cmpi slt, %60, %c0_i32_27 : i32
    %68 = vector.broadcast %67 : i1 to vector<256x1xi1>
    %69 = vector.broadcast %68 : vector<256x1xi1> to vector<256x1xi1>
    %70 = arith.xori %66, %69 : vector<256x1xi1>
    %71 = arith.andi %70, %64 : vector<256x1xi1>
    %72 = vector.broadcast %60 : i32 to vector<256x1xi32>
    %73 = arith.addi %62, %72 : vector<256x1xi32>
    %74 = arith.select %71, %73, %62 : vector<256x1xi1>, vector<256x1xi32>
    %c0_i32_28 = arith.constant 0 : i32
    %75 = vector.broadcast %c0_i32_28 : i32 to vector<256x1xi32>
    %76 = arith.cmpi sgt, %74, %75 : vector<256x1xi32>
    %c1_i32_29 = arith.constant 1 : i32
    %77 = tpu.dynamic_rotate %57 by %c1_i32_29 dim 0 : vector<256x128xf32>, i32 -> vector<256x128xf32>
    %cst_30 = arith.constant 0.000000e+00 : f32
    %78 = vector.shape_cast %76 : vector<256x1xi1> to vector<256x1xi1>
    %79 = vector.broadcast %78 : vector<256x1xi1> to vector<256x128xi1>
    %80 = vector.broadcast %cst_30 : f32 to vector<256x128xf32>
    %81 = arith.select %79, %77, %80 : vector<256x128xi1>, vector<256x128xf32>
    %c15_i32_31 = arith.constant 15 : i32
    %82 = vector.broadcast %c15_i32_31 : i32 to vector<256x1xi32>
    %83 = arith.cmpi slt, %74, %82 : vector<256x1xi32>
    %c255_i32_32 = arith.constant 255 : i32
    %84 = tpu.dynamic_rotate %57 by %c255_i32_32 dim 0 : vector<256x128xf32>, i32 -> vector<256x128xf32>
    %cst_33 = arith.constant 0.000000e+00 : f32
    %85 = vector.shape_cast %83 : vector<256x1xi1> to vector<256x1xi1>
    %86 = vector.broadcast %85 : vector<256x1xi1> to vector<256x128xi1>
    %87 = vector.broadcast %cst_33 : f32 to vector<256x128xf32>
    %88 = arith.select %86, %84, %87 : vector<256x128xi1>, vector<256x128xf32>
    %89 = arith.truncf %81 : vector<256x128xf32> to vector<256x128xbf16>
    %90 = arith.truncf %57 : vector<256x128xf32> to vector<256x128xbf16>
    %91 = arith.truncf %88 : vector<256x128xf32> to vector<256x128xbf16>
    %92 = tpu.concatenate %89, %90, %91 in 1 : vector<256x128xbf16>, vector<256x128xbf16>, vector<256x128xbf16> -> vector<256x384xbf16>
    %cst_34 = arith.constant 0.000000e+00 : bf16
    %93 = vector.broadcast %cst_34 : bf16 to vector<16x384xbf16>
    %c1_35 = arith.constant 1 : index
    %c0_36 = arith.constant 0 : index
    %c0_37 = arith.constant 0 : index
    %94 = vector.load %arg3[%c1_35, %c0_36, %c0_37] : memref<3x384x128xbf16, #tpu.memory_space<vmem>>, vector<1x384x128xbf16>
    %95 = vector.shape_cast %94 : vector<1x384x128xbf16> to vector<384x128xbf16>
    %cst_38 = arith.constant dense<0.000000e+00> : vector<256x128xf32>
    %96 = tpu.matmul %92, %95, %cst_38 {dimension_numbers = #tpu.dot_dimension_numbers<[1], [0], [0], [1], [0, 0, 1, 1], [], []>} : vector<256x384xbf16>, vector<384x128xbf16>, vector<256x128xf32> -> vector<256x128xf32>
    %97 = vector.extract_strided_slice %92 {offsets = [0, 0], sizes = [240, 384], strides = [1, 1]} : vector<256x384xbf16> to vector<240x384xbf16>
    %98 = tpu.concatenate %93, %97 in 0 : vector<16x384xbf16>, vector<240x384xbf16> -> vector<256x384xbf16>
    %c0_39 = arith.constant 0 : index
    %c0_40 = arith.constant 0 : index
    %c0_41 = arith.constant 0 : index
    %99 = vector.load %arg3[%c0_39, %c0_40, %c0_41] : memref<3x384x128xbf16, #tpu.memory_space<vmem>>, vector<1x384x128xbf16>
    %100 = vector.shape_cast %99 : vector<1x384x128xbf16> to vector<384x128xbf16>
    %cst_42 = arith.constant dense<0.000000e+00> : vector<256x128xf32>
    %101 = tpu.matmul %98, %100, %cst_42 {dimension_numbers = #tpu.dot_dimension_numbers<[1], [0], [0], [1], [0, 0, 1, 1], [], []>} : vector<256x384xbf16>, vector<384x128xbf16>, vector<256x128xf32> -> vector<256x128xf32>
    %102 = arith.addf %96, %101 : vector<256x128xf32>
    %103 = vector.extract_strided_slice %92 {offsets = [16, 0], sizes = [240, 384], strides = [1, 1]} : vector<256x384xbf16> to vector<240x384xbf16>
    %104 = tpu.concatenate %103, %93 in 0 : vector<240x384xbf16>, vector<16x384xbf16> -> vector<256x384xbf16>
    %c2_43 = arith.constant 2 : index
    %c0_44 = arith.constant 0 : index
    %c0_45 = arith.constant 0 : index
    %105 = vector.load %arg3[%c2_43, %c0_44, %c0_45] : memref<3x384x128xbf16, #tpu.memory_space<vmem>>, vector<1x384x128xbf16>
    %106 = vector.shape_cast %105 : vector<1x384x128xbf16> to vector<384x128xbf16>
    %cst_46 = arith.constant dense<0.000000e+00> : vector<256x128xf32>
    %107 = tpu.matmul %104, %106, %cst_46 {dimension_numbers = #tpu.dot_dimension_numbers<[1], [0], [0], [1], [0, 0, 1, 1], [], []>} : vector<256x384xbf16>, vector<384x128xbf16>, vector<256x128xf32> -> vector<256x128xf32>
    %108 = arith.addf %102, %107 : vector<256x128xf32>
    %c0_47 = arith.constant 0 : index
    %c0_48 = arith.constant 0 : index
    %109 = vector.load %arg5[%c0_47, %c0_48] : memref<1x128xf32, #tpu.memory_space<vmem>>, vector<1x128xf32>
    %110 = vector.broadcast %109 : vector<1x128xf32> to vector<256x128xf32>
    %111 = arith.addf %108, %110 : vector<256x128xf32>
    %112 = arith.addf %111, %1 : vector<256x128xf32>
    %cst_49 = arith.constant 0.000000e+00 : f32
    %113 = vector.broadcast %cst_49 : f32 to vector<256x128xf32>
    %114 = arith.maximumf %112, %113 : vector<256x128xf32>
    %115 = vector.shape_cast %114 : vector<256x128xf32> to vector<1x256x128xf32>
    %c0_50 = arith.constant 0 : index
    %c0_51 = arith.constant 0 : index
    %c0_52 = arith.constant 0 : index
    %116 = vector.load %arg6[%c0_50, %c0_51, %c0_52] : memref<1x256x128xf32, #tpu.memory_space<vmem>>, vector<1x256x128xf32>
    tpu.vector_store %arg6[%c0_50, %c0_51, %c0_52], %115 {strides = array<i32>} : memref<1x256x128xf32, #tpu.memory_space<vmem>>, vector<1x256x128xf32>,
    return
  }
  func.func @transform_0(%arg0: i32) -> (i32, i32, i32) {
    %c0_i32 = arith.constant 0 : i32
    %c0_i32_0 = arith.constant 0 : i32
    %c0_i32_1 = arith.constant 0 : i32
    return %arg0, %c0_i32, %c0_i32_0 : i32, i32, i32
  }
  func.func @transform_1(%arg0: i32) -> (i32, i32, i32) {
    %c0_i32 = arith.constant 0 : i32
    %c0_i32_0 = arith.constant 0 : i32
    %c0_i32_1 = arith.constant 0 : i32
    %c0_i32_2 = arith.constant 0 : i32
    return %c0_i32, %c0_i32_0, %c0_i32_1 : i32, i32, i32
  }
  func.func @transform_2(%arg0: i32) -> (i32, i32, i32) {
    %c0_i32 = arith.constant 0 : i32
    %c0_i32_0 = arith.constant 0 : i32
    %c0_i32_1 = arith.constant 0 : i32
    %c0_i32_2 = arith.constant 0 : i32
    return %c0_i32, %c0_i32_0, %c0_i32_1 : i32, i32, i32
  }
  func.func @transform_3(%arg0: i32) -> (i32, i32) {
    %c0_i32 = arith.constant 0 : i32
    %c0_i32_0 = arith.constant 0 : i32
    %c0_i32_1 = arith.constant 0 : i32
    return %c0_i32, %c0_i32_0 : i32, i32
  }
  func.func @transform_4(%arg0: i32) -> (i32, i32) {
    %c0_i32 = arith.constant 0 : i32
    %c0_i32_0 = arith.constant 0 : i32
    %c0_i32_1 = arith.constant 0 : i32
    return %c0_i32, %c0_i32_0 : i32, i32
  }
  func.func @transform_5(%arg0: i32) -> (i32, i32, i32) {
    %c0_i32 = arith.constant 0 : i32
    %c0_i32_0 = arith.constant 0 : i32
    %c0_i32_1 = arith.constant 0 : i32
    return %arg0, %c0_i32, %c0_i32_0 : i32, i32, i32
  }
}

</mosaic_0001>

<bundles_post_ra>
// kernel: tpu_custom_call.1
= control target key start
LH: loop header
LB: loop body
LE: loop exit
PB: predicated region body
PF: predicated region fallthrough
CT: control target
= control target key end

     0   :  { %10 = vsyncpa [#allocation3], 0  ;;  %s9914_s0 = inlined_call_operand.hbm [shape: f32[2,256,128], index: 0, kind: input, shape index: {}]   ;;  %s9915_s1 = inlined_call_operand.hbm [shape: bf16[3,384,128], index: 1, kind: input, shape index: {}]   ;;  %s9916_s2 = inlined_call_operand.hbm [shape: bf16[3,384,128], index: 2, kind: input, shape index: {}]   ;;  %s9917_s3 = inlined_call_operand.vmem [shape: f32[1,128], index: 3, kind: input, shape index: {}]   ;;  %s9918_s4 = inlined_call_operand.vmem [shape: f32[1,128], index: 4, kind: input, shape index: {}]   ;;  %s9919_s5 = inlined_call_operand.hbm [shape: f32[2,256,128], index: 5, kind: output, shape index: {}]  }
   0x1   :  { %12 = vsyncpa [#allocation3 + $0x1], 0 }
   0x2   :  { %13 = vsyncpa [#allocation6], 0 }
   0x3   :  { %14 = vsyncpa [#allocation4], 0 }
   0x4   :  { %16 = vsyncpa [#allocation4 + $0x1], 0  ;;  %s7126_s18 = smov 0   ;;  %s7128_s19 = smov 0  }
   0x5   :  { %s7130_s20 = smov 0   ;;  %s7132_s21 = smov 0  }
   0x6 LB: > { %s7147_s22 = sadd.s32 4294967295, %s7082_s21   ;;  %s4860_s23 = sadd.s32 4294967294, %s7082_s21   ;;  %s7082_s21 = sphi %s7132_s21, %s10686_s21   ;;  %s7078_s20 = sphi %s7130_s20, %s10685_s20   ;;  %s7074_s19 = sphi %s7128_s19, %s10684_s19   ;;  %s7070_s18 = sphi %s7126_s18, %s10683_s18  }
   0x7   : > { %p42_p0 = scmp.ne.s32.totalorder %s7074_s19, %s7070_s18  ;;  %p9920_p1 = scmp.eq.s32.totalorder %s7147_s22, 0 }
   0x8   : > { %p156_p3 = scmp.eq.s32.totalorder %s4860_s23, 1  ;;  %p4861_p5 = scmp.ge.s32.totalorder %s7082_s21, 1 }
   0x9   : > { %p7156_p4 = por %p9920_p1, %p42_p0  ;;  %p163_p7 = scmp.lt.s32.totalorder %s7082_s21, 3 }
   0xa   : > { %p7161_p6 = por %p156_p3, %p42_p0  ;;  %s7084_s27 = smov [#allocation5]  }
   0xb   : > { %s10163_s24 = scalar_select %p7156_p4, 1, 0 }
   0xc   : > { %s10164_s25 = scalar_select %p7161_p6, 1, 0 }
   0xd   : > { %p7166_p8 = pnand %p4861_p5, %p163_p7  ;;  %s175_s28 = sshll.u32 %s7084_s27, 4  ;;  %s176_s28 = int_to_ptr.vmem [resolvable:$true] %s175_s28 }
   0xe   : > { %s7085_s30 = smov [#allocation7]   ;;  %s6945_s7 = scalar_lea.vmem %s176_s28, 9216 }
   0xf   : > { %s10165_s26 = scalar_select %p7166_p8, 1, 0 }
  0x10   : > { %p6694_p9 = pneg %p7166_p8  ;;  %s188_s6 = sshll.u32 %s7085_s30, 4  ;;  %s189_s6 = int_to_ptr.vmem [resolvable:$true] %s188_s6 }
  0x11   : > { %p6946_p13 = scmp.ne.s32.totalorder %s176_s28, %s6945_s7  ;;  %p6953_p5 = scmp.lt.s32.totalorder %s176_s28, %s176_s28 }
  0x12   : > { %p7175_p11 = pnand %p6694_p9, %p9920_p1  ;;  %p6954_p7 = scmp.lt.s32.totalorder %s6945_s7, %s6945_s7 }
  0x14   : > { %p6936_p12 = pneg %p7175_p11  ;;  %p6955_p10 = por %p6954_p7, %p6953_p5 }
  0x16   : > { %p6948_p0 = pnand %p6946_p13, %p6936_p12 }
  0x18   : > { %p6949_p3 = pneg %p6948_p0 }
  0x1a   : > { %p6956_p9 = pnand %p6955_p10, %p6949_p3 }
  0x1c   : > { %6959 = shalt.err (!%p6956_p9)
}
  0x1d   : > { %s7086_s8 = smov 64   ;;  %s7087_s9 = smov 4  }
  0x1e   : > { %6697 = dma.hbm_to_vmem [thread:$0]  (!%p7175_p11), %s9915_s1, 9216, %s176_s28, [#allocation6], %s7086_s8, %s7086_s8, %s7087_s9  }
  0x1f   : > { %s6971_s12 = scalar_lea.vmem %s189_s6, 9216  ;;  %p6979_p2 = scmp.lt.s32.totalorder %s189_s6, %s189_s6 }
  0x20   : > { %p6972_p1 = scmp.ne.s32.totalorder %s189_s6, %s6971_s12  ;;  %p6980_p6 = scmp.lt.s32.totalorder %s6971_s12, %s6971_s12 }
  0x22   : > { %p6974_p13 = pnand %p6972_p1, %p6936_p12  ;;  %p6981_p5 = por %p6980_p6, %p6979_p2 }
  0x24   : > { %p6975_p0 = pneg %p6974_p13 }
  0x26   : > { %p6982_p10 = pnand %p6981_p5, %p6975_p0 }
  0x28   : > { %6985 = shalt.err (!%p6982_p10)
}
  0x29   : > { %6700 = dma.hbm_to_vmem [thread:$0]  (!%p7175_p11), %s9916_s2, 9216, %s189_s6, [#allocation6], %s7086_s8, %s7086_s8, %s7087_s9  }
  0x2a   : > { %s7198_s15 = sadd.s32 1, %s7082_s21   ;;  %s29_s16 = sadd.s32 1, %s7078_s20 }
  0x2b   : > { %s26_s17 = ssub.s32 %s7082_s21, %s7198_s15  ;;  %p36_p1 = scmp.ne.s32.totalorder %s7078_s20, %s7074_s19 }
  0x2c   : > { %p27_p2 = scmp.eq.s32.totalorder %s26_s17, 0  ;;  %p37_p6 = scmp.eq.s32.totalorder %s7082_s21, 0 }
  0x2d   : > { %p10167_p12 = scmp.eq.s32.totalorder %s7147_s22, 1  ;;  %p6711_p7 = scmp.lt.s32.totalorder %s7082_s21, 2 }
  0x2e   : > { %s7214_s27 = scalar_select %p27_p2, %s7078_s20, %s29_s16  }
  0x2f   : > { %p7208_p3 = por %p10167_p12, %p36_p1  ;;  %p38_p9 = por %p37_p6, %p36_p1 }
  0x30   : > { %s208_s28 = sand.u32 1, %s7078_s20   ;;  %s5576_s30 = sshll.u32 %s7082_s21, 12 }
  0x31   : > { %s10168_s23 = scalar_select %p7208_p3, 1, 0 }
  0x32   : > { %s4865_s29 = sshll.u32 %s208_s28, 8  ;;  %s7221_s8 = scalar_lea.hbm %s9914_s0, %s5576_s30 }
  0x33   : > { %s212_s9 = scalar_lea.vmem [#allocation2], %s4865_s29  ;;  %p7225_p11 = pnand %p6711_p7, %p38_p9 }
  0x34   : > { %s219_s10 = sshll.u32 %s212_s9, 4  ;;  %s7229_s12 = scalar_lea.sflag [#allocation3], %s208_s28  ;;  %s7223_s10 = int_to_ptr.vmem [resolvable:$true] %s219_s10 }
  0x35   : > { %s6986_s13 = scalar_lea.hbm %s7221_s8, 4096  ;;  %p6988_p0 = pneg %p7225_p11 }
  0x36   : > { %p6987_p13 = scmp.ne.s32.totalorder %s7221_s8, %s6986_s13  ;;  %s6991_s17 = scalar_lea.hbm %s9914_s0, 8192 }
  0x37   : > { %p6992_p1 = scmp.lt.s32.totalorder %s7221_s8, %s9914_s0  ;;  %p6993_p2 = scmp.lt.s32.totalorder %s6991_s17, %s6986_s13 }
  0x38   : > { %p6989_p5 = pnand %p6988_p0, %p6987_p13 }
  0x39   : > { %p6994_p6 = por %p6993_p2, %p6992_p1 }
  0x3a   : > { %p6990_p10 = pneg %p6989_p5 }
  0x3c   : > { %p6995_p12 = pnand %p6994_p6, %p6990_p10 }
  0x3e   : > { %6998 = shalt.err (!%p6995_p12)
}
  0x3f   : > { %s6999_s28 = scalar_lea.vmem %s7223_s10, 4096  ;;  %s7088_s6 = smov [#allocation2]  }
  0x40   : > { %p7000_p7 = scmp.ne.s32.totalorder %s7223_s10, %s6999_s28  ;;  %s7004_s7 = sshll.u32 %s7088_s6, 4  ;;  %s7005_s7 = int_to_ptr.vmem [resolvable:$false] %s7004_s7 }
  0x41   : > { %s7006_s9 = scalar_lea.vmem %s7005_s7, 8192  ;;  %p7007_p5 = scmp.lt.s32.totalorder %s7223_s10, %s7005_s7 }
  0x42   : > { %p7002_p9 = pnand %p7000_p7, %p6988_p0  ;;  %p7008_p3 = scmp.lt.s32.totalorder %s7006_s9, %s6999_s28 }
  0x44   : > { %p7003_p13 = pneg %p7002_p9  ;;  %p7009_p4 = por %p7008_p3, %p7007_p5 }
  0x46   : > { %p7010_p8 = pnand %p7009_p4, %p7003_p13 }
  0x48   : > { %7013 = shalt.err (!%p7010_p8)
}
  0x49   : > { %s7089_s13 = smov 128   ;;  %s7090_s14 = smov 8  }
  0x4a   : > { %6704 = dma.hbm_to_vmem [thread:$0]  (!%p7225_p11), %s7221_s8, 4096, %s7223_s10, %s7229_s12, %s7089_s13, %s7089_s13, %s7090_s14  }
  0x4b   : > { %p10170_p0 = scmp.ne.s32.totalorder %s10165_s26, 0 }
  0x4d   : > { %231 = sbr.rel (%p10170_p0) target bundleno = 1178 (0x49a), region = 40 }
  0x52   : > { %s7253_s16 = sand.u32 1, %s7074_s19   ;;  %p10171_p4 = scmp.ne.s32.totalorder %s10163_s24, 0 }
  0x53   : > { %s4869_s17 = sshll.u32 %s7253_s16, 8  ;;  %s234_s29 = scalar_lea.sflag [#allocation3], %s7253_s16 }
  0x54   : > { %s7259_s30 = scalar_lea.vmem [#allocation2], %s4869_s17 }
  0x55   : > { %7057 = dma.done.wait (%p10171_p4), %s234_s29, 4096  }
  0x56   : > { %7059 = vsyncadd (%p10171_p4), %s234_s29, 4294963200  ;;  %p10172_p8 = scmp.eq.s32.totalorder %s7147_s22, 0 }
  0x58   : > { %7061 = dma.done.wait (%p10172_p8), [#allocation6], 18432   ;;  %p10173_p3 = pmov %p10172_p8 }
  0x59   : > { %v9928_v0 = vmov 0   ;;  %v6757_v1 = vld [vmem:[#allocation5 + $0x78] sm:$0xff]   ;;  %v6760_v4 = vld [vmem:[#allocation5 + $0x70] sm:$0xff]   ;;  %v6763_v7 = vld [vmem:[#allocation5 + $0x68] sm:$0xff]   ;;  %v305_v14 = vlaneseq  ;;  %vm9955_vm5 = vmmov 1   ;;  %s9739_s11 = scalar_lea.vmem [#allocation8], %s4869_s17 }
  0x5a   : > { %7063 = vsyncadd (%p10173_p3), [#allocation6], 4294948864  ;;  %1429 = vmatprep.mubr.bf16.mxu0 %v9928_v0  ;;  %6410 = vmatprep.mubr.bf16.mxu1 %v9928_v0  ;;  %v6758_v2 = vld [vmem:[#allocation5 + $0xb8] sm:$0xff]   ;;  %v6761_v5 = vld [vmem:[#allocation5 + $0xb0] sm:$0xff]   ;;  %s5577_s12 = sshll.u32 %s7147_s22, 12  ;;  %s4768_s28 = sshll.u32 %s9739_s11, 4  ;;  %s9870_s28 = int_to_ptr.vmem [resolvable:$true] %s4768_s28 }
  0x5b   : > { %5578 = vmatprep.subr.bf16.mxu0 %v6757_v1  ;;  %v6759_v3 = vld [vmem:[#allocation5 + $0x38] sm:$0xff]   ;;  %6394 = vmatprep.subr.bf16.mxu1 %v6758_v2  ;;  %v6762_v6 = vld [vmem:[#allocation5 + $0x30] sm:$0xff]   ;;  %v6764_v8 = vld [vmem:[#allocation5 + $0xa8] sm:$0xff]   ;;  %v7271_v18 = vshrl.u32 %v305_v14, 7  ;;  %v10182_v1 = vmov 0  ;;  %v10189_v14 = vmov 0  ;;  %s9868_s9 = scalar_lea.hbm %s9919_s5, %s5577_s12 }
  0x5c   : > { %5579 = vmatpush3.bf16.msra.mxu0 %v6759_v3  ;;  %6395 = vmatpush3.bf16.msra.mxu1 %v6758_v2  ;;  %v6765_v9 = vld [vmem:[#allocation5 + $0x28] sm:$0xff]   ;;  %v6766_v10 = vld [vmem:[#allocation5 + $0x60] sm:$0xff]   ;;  %v6769_v13 = vld [vmem:[#allocation5 + $0x58] sm:$0xff]   ;;  %s4755_s13 = scalar_lea.sflag [#allocation4], %s7253_s16  ;;  %s7014_s14 = scalar_lea.vmem %s9870_s28, 4096 }
  0x5d   : > { %5580 = vmatprep.subr.bf16.mxu0 %v6760_v4  ;;  %6396 = vmatprep.subr.bf16.mxu1 %v6761_v5  ;;  %v6767_v11 = vld [vmem:[#allocation5 + $0xa0] sm:$0xff]   ;;  %v6770_v15 = vld [vmem:[#allocation5 + $0x98] sm:$0xff]   ;;  %v6772_v17 = vld [vmem:[#allocation5 + $0x50] sm:$0xff]   ;;  %10174 = vst [vmem:[#allocation12_spill] sm:$0xff] %v7271_v18  ;;  %v307_v22 = vadd.s32 8, %v7271_v18  ;;  %v309_v25 = vadd.s32 24, %v7271_v18  ;;  %p7015_p11 = scmp.ne.s32.totalorder %s9870_s28, %s7014_s14 }
  0x5e   : > { %v6768_v12 = vld [vmem:[#allocation5 + $0x20] sm:$0xff]   ;;  %v6771_v16 = vld [vmem:[#allocation5 + $0x18] sm:$0xff]   ;;  %v6773_v19 = vld [vmem:[#allocation5 + $0x90] sm:$0xff]   ;;  %vm9924_vm0 = vcmp.lt.s32.totalorder %v7271_v18, 7  ;;  %v342_v31 = vand.u32 15, %v7271_v18  ;;  %v311_v39 = vadd.s32 40, %v7271_v18 }
  0x5f   : > { %v6774_v20 = vld [vmem:[#allocation5 + $0x10] sm:$0xff]   ;;  %v6775_v21 = vld [vmem:[#allocation5 + $0x48] sm:$0xff]   ;;  %v6778_v26 = vld [vmem:[#allocation5 + $0x40] sm:$0xff]   ;;  %v349_v30 = vand.u32 15, %v307_v22  ;;  %v363_v38 = vand.u32 15, %v309_v25  ;;  %v313_v42 = vadd.s32 56, %v7271_v18 }
  0x60   : > { %5581 = vmatpush3.bf16.msra.mxu0 %v6762_v6  ;;  %6397 = vmatpush3.bf16.msra.mxu1 %v6761_v5  ;;  %v6776_v23 = vld [vmem:[#allocation5 + $0x88] sm:$0xff]   ;;  %v7276_v27 = vld [vmem:[%s7259_s30] sm:$0xff]  ;;  %v7282_v29 = vld [vmem:[%s7259_s30 + $0x10] sm:$0xff]  ;;  %vm9925_vm1 = vcmp.lt.s32.totalorder %v7271_v18, 1  ;;  %v7307_v47 = vadd.s32 16, %v7271_v18  ;;  %vm7316_vm3 = vcmp.gt.s32.totalorder %v342_v31, 0 }
  0x61   : > { %5582 = vmatprep.subr.bf16.mxu0 %v6763_v7  ;;  %6398 = vmatprep.subr.bf16.mxu1 %v6764_v8  ;;  %v6777_v24 = vld [vmem:[#allocation5 + $0x8] sm:$0xff]   ;;  %10175 = vst [vmem:[#allocation13_spill] sm:$0xff] %v7276_v27  ;;  %v6779_v32 = vld [vmem:[#allocation5 + $0x80] sm:$0xff]   ;;  %v9930_v33 = vrot.slane %v7276_v27, 1  ;;  %v949_v35 = vrot.slane %v7282_v29, 1  ;;  %v7290_v36 = vld [vmem:[%s7259_s30 + $0x18] sm:$0xff] }
  0x62   : > { %v7279_v28 = vld [vmem:[%s7259_s30 + $0x8] sm:$0xff]  ;;  %v7293_v37 = vld [vmem:[%s7259_s30 + $0x20] sm:$0xff]  ;;  %v950_v40 = vrot.slane %v7290_v36, 1  ;;  %v6781_v46 = vld [vmem:[#allocation5 + $0x178] sm:$0xff]   ;;  %vm7309_vm2 = vcmp.lt.s32.totalorder %v349_v30, 15  ;;  %v7327_v53 = vadd.s32 72, %v7271_v18 }
  0x63   : > { %v948_v34 = vrot.slane %v7279_v28, 1  ;;  %v951_v41 = vrot.slane %v7293_v37, 1  ;;  %v6780_v43 = vld [vmem:[#allocation5] sm:$0xff]   ;;  %v7314_v49 = vld [vmem:[%s7259_s30 + $0xf8] sm:$0xff]  ;;  %v7321_v51 = vld [vmem:[%s7259_s30 + $0x28] sm:$0xff]  ;;  %vm7329_vm4 = vcmp.lt.s32.totalorder %v363_v38, 15  ;;  %v7356_v2 = vpack.c.bf16 %v7279_v28, %v7276_v27 }
  0x64   : > { %5583 = vmatpush3.bf16.msra.mxu0 %v6765_v9  ;;  %6399 = vmatpush3.bf16.msra.mxu1 %v6764_v8  ;;  %v7324_v52 = vld [vmem:[%s7259_s30 + $0x30] sm:$0xff]  ;;  %v1008_v56 = vsel %vm9924_vm0, %v949_v35, %v950_v40  ;;  %v377_v57 = vand.u32 15, %v311_v39  ;;  %v7338_v58 = vld [vmem:[%s7259_s30 + $0x38] sm:$0xff]  ;;  %v7341_v59 = vld [vmem:[%s7259_s30 + $0x40] sm:$0xff]  ;;  %v754_v61 = vrot.slane %v7276_v27, 7  ;;  %v755_v62 = vrot.slane %v7279_v28, 7 }
  0x65   : > { %5584 = vmatprep.subr.bf16.mxu0 %v6766_v10  ;;  %6400 = vmatprep.subr.bf16.mxu1 %v6767_v11  ;;  %v1009_v44 = vsel %vm9924_vm0, %v948_v34, %v949_v35  ;;  %v1010_v45 = vsel %vm9924_vm0, %v9930_v33, %v948_v34  ;;  %v1007_v55 = vsel %vm9924_vm0, %v950_v40, %v951_v41  ;;  %v391_v63 = vand.u32 15, %v313_v42  ;;  %vm7350_vm6 = vmpackc.low %vm7309_vm2, %vm9955_vm5  ;;  %v6782_v9 = vld [vmem:[#allocation5 + $0x170] sm:$0xff]   ;;  %v7415_v25 = vld [vmem:[%s7259_s30 + $0x58] sm:$0xff]  ;;  %p10680_p10 = scmp.ne.s32.totalorder %s10168_s23, 0  ;;  %s7093_s22 = smov [#allocation8]  }
  0x66   : > { %v7343_v60 = vpack.c.bf16 %v1009_v44, %v1010_v45  ;;  %v10183_v1 = vsel %vm7350_vm6, 4294967295, %v10182_v1  ;;  %v9931_v3 = vrot.slane %v7314_v49, 7  ;;  %v952_v4 = vrot.slane %v7321_v51, 1  ;;  %vm7369_vm7 = vmpackc.low %vm7329_vm4, %vm9955_vm5  ;;  %v6783_v34 = vld [vmem:[#allocation5 + $0x138] sm:$0xff]   ;;  %v6784_v38 = vld [vmem:[#allocation5 + $0x168] sm:$0xff]   ;;  %s7018_s17 = sshll.u32 %s7093_s22, 4  ;;  %s7019_s17 = int_to_ptr.vmem [resolvable:$false] %s7018_s17 }
  0x67   : > { %10184 = vst [vmem:[#allocation14_spill] sm:$0xff] %v10183_v1  ;;  %v953_v5 = vrot.slane %v7324_v52, 1  ;;  %v7361_v6 = vpack.c.bf16 %v1007_v55, %v1008_v56  ;;  %v954_v7 = vrot.slane %v7338_v58, 1  ;;  %v955_v8 = vrot.slane %v7341_v59, 1  ;;  %vm7385_vm8 = vmpackc.low %vm9955_vm5, %vm7316_vm3  ;;  %v6786_v44 = vld [vmem:[#allocation5 + $0x130] sm:$0xff]   ;;  %v6797_v33 = vld [vmem:[#allocation5 + $0x108] sm:$0xff]   ;;  %p7016_p1 = pnand %p7015_p11, %p10680_p10  ;;  %p7021_p6 = scmp.lt.s32.totalorder %s9870_s28, %s7019_s17 }
  0x68   : > { %5585 = vmatpush3.bf16.msra.mxu0 %v6768_v12  ;;  %6401 = vmatpush3.bf16.msra.mxu1 %v6767_v11  ;;  %v317_v10 = vadd.s32 88, %v7271_v18  ;;  %v10186_v11 = vmov 0  ;;  %v310_v12 = vadd.s32 32, %v7271_v18  ;;  %v10190_v14 = vsel %vm7385_vm8, 4294967295, %v10189_v14  ;;  %v6787_v56 = vld [vmem:[#allocation5 + $0xf0] sm:$0xff]   ;;  %s7020_s29 = scalar_lea.vmem %s7019_s17, 8192 }
  0x69   : > { %5586 = vmatprep.subr.bf16.mxu0 %v6769_v13  ;;  %6402 = vmatprep.subr.bf16.mxu1 %v6770_v15  ;;  %10185 = vst [vmem:[#allocation15_spill] sm:$0xff] %v7361_v6  ;;  %v10187_v11 = vsel %vm7369_vm7, 4294967295, %v10186_v11  ;;  %v817_v13 = vsel %vm9925_vm1, %v754_v61, %v755_v62  ;;  %10191 = vst [vmem:[#allocation17_spill] sm:$0xff] %v10190_v14  ;;  %vm7389_vm9 = vcmp.lt.s32.totalorder %v377_v57, 15  ;;  %vm7393_vm10 = vcmp.lt.s32.totalorder %v391_v63, 15  ;;  %p7017_p2 = pneg %p7016_p1  ;;  %p7022_p12 = scmp.lt.s32.totalorder %s7020_s29, %s7014_s14 }
  0x6a   : > { %10188 = vst [vmem:[#allocation16_spill] sm:$0xff] %v10187_v11  ;;  %v1005_v22 = vsel %vm9924_vm0, %v952_v4, %v953_v5  ;;  %v1003_v30 = vsel %vm9924_vm0, %v954_v7, %v955_v8  ;;  %v1004_v31 = vsel %vm9924_vm0, %v953_v5, %v954_v7  ;;  %v370_v35 = vand.u32 15, %v310_v12  ;;  %vm7438_vm11 = vmpackc.low %vm7389_vm9, %vm9955_vm5  ;;  %v7484_v7 = vld [vmem:[%s7259_s30 + $0x68] sm:$0xff]  ;;  %v7505_v12 = vld [vmem:[%s7259_s30 + $0x70] sm:$0xff] }
  0x6b   : > { %v757_v42 = vrot.slane %v7290_v36, 7  ;;  %v10197_v45 = vmov 0  ;;  %vm7453_vm12 = vmpackc.low %vm7393_vm10, %vm9955_vm5  ;;  %v958_v54 = vrot.slane %v7415_v25, 1  ;;  %v319_v55 = vadd.s32 104, %v7271_v18  ;;  %p7023_p7 = por %p7022_p12, %p7021_p6 }
  0x6c   : > { %5587 = vmatpush3.bf16.msra.mxu0 %v6771_v16  ;;  %6403 = vmatpush3.bf16.msra.mxu1 %v6770_v15  ;;  %v10198_v45 = vsel %vm7438_vm11, 4294967295, %v10197_v45  ;;  %v321_v63 = vadd.s32 120, %v7271_v18  ;;  %vm7500_vm2 = vcmp.gt.s32.totalorder %v370_v35, 0 }
  0x6d   : > { %5588 = vmatprep.subr.bf16.mxu0 %v6772_v17  ;;  %6404 = vmatprep.subr.bf16.mxu1 %v6773_v19  ;;  %v356_v17 = vand.u32 15, %v7307_v47  ;;  %10199 = vst [vmem:[#allocation19_spill] sm:$0xff] %v10198_v45  ;;  %v7446_v47 = vpack.c.bf16 %v1003_v30, %v1004_v31  ;;  %v6789_v30 = vld [vmem:[#allocation5 + $0xe8] sm:$0xff]   ;;  %v6790_v31 = vld [vmem:[#allocation5 + $0x120] sm:$0xff]   ;;  %vm7561_vm10 = vmpackc.low %vm9955_vm5, %vm7500_vm2  ;;  %p7024_p9 = pnand %p7023_p7, %p7017_p2 }
  0x6f   : > { %10200 = vst [vmem:[#allocation20_spill] sm:$0xff] %v7446_v47  ;;  %vm7460_vm13 = vcmp.gt.s32.totalorder %v356_v17, 0  ;;  %v433_v17 = vand.u32 15, %v319_v55 }
  0x70   : > { %5589 = vmatpush3.bf16.msra.mxu0 %v6774_v20  ;;  %6405 = vmatpush3.bf16.msra.mxu1 %v6773_v19  ;;  %v7399_v19 = vld [vmem:[%s7259_s30 + $0x48] sm:$0xff]  ;;  %v7402_v20 = vld [vmem:[%s7259_s30 + $0x50] sm:$0xff]  ;;  %vm7524_vm3 = vmpackc.low %vm9955_vm5, %vm7460_vm13 }
  0x71   : > { %5590 = vmatprep.subr.bf16.mxu0 %v6775_v21  ;;  %6406 = vmatprep.subr.bf16.mxu1 %v6776_v23  ;;  %v818_v21 = vsel %vm9925_vm1, %v9931_v3, %v754_v61  ;;  %v956_v48 = vrot.slane %v7399_v19, 1  ;;  %v957_v50 = vrot.slane %v7402_v20, 1  ;;  %v6791_v61 = vld [vmem:[#allocation5 + $0xe0] sm:$0xff]   ;;  %vm7565_vm13 = vcmp.lt.s32.totalorder %v433_v17, 15 }
  0x72   : > { %v7429_v39 = vpack.c.bf16 %v817_v13, %v818_v21  ;;  %v6788_v13 = vld [vmem:[#allocation5 + $0x128] sm:$0xff]   ;;  %v7514_v21 = vld [vmem:[%s7259_s30 + $0x78] sm:$0xff]  ;;  %vm7623_vm2 = vmpackc.low %vm7565_vm13, %vm9955_vm5  ;;  %v327_v3 = vadd.s32 168, %v7271_v18  ;;  %v9950_v27 = vrot.slane %v7399_v19, 7 }
  0x73   : > { %v1000_v16 = vsel %vm9924_vm0, %v957_v50, %v958_v54  ;;  %v962_v55 = vrot.slane %v7514_v21, 1 }
  0x74   : > { %5591 = vmatpush3.bf16.msra.mxu0 %v6777_v24  ;;  %6407 = vmatpush3.bf16.msra.mxu1 %v6776_v23  ;;  %v1006_v23 = vsel %vm9924_vm0, %v951_v41, %v952_v4  ;;  %v405_v24 = vand.u32 15, %v7327_v53  ;;  %v756_v41 = vrot.slane %v7282_v29, 7  ;;  %v10201_v53 = vmov 0 }
  0x75   : > { %5592 = vmatprep.subr.bf16.mxu0 %v6778_v26  ;;  %6408 = vmatprep.subr.bf16.mxu1 %v6779_v32  ;;  %v7418_v26 = vld [vmem:[%s7259_s30 + $0x60] sm:$0xff]  ;;  %v7431_v40 = vpack.c.bf16 %v1005_v22, %v1006_v23  ;;  %v10202_v53 = vsel %vm7453_vm12, 4294967295, %v10201_v53  ;;  %v447_v23 = vand.u32 15, %v321_v63  ;;  %v10236_v63 = vmov 0 }
  0x76   : > { %10203 = vst [vmem:[#allocation21_spill] sm:$0xff] %v10202_v53  ;;  %vm7464_vm14 = vcmp.lt.s32.totalorder %v405_v24, 15  ;;  %v816_v4 = vsel %vm9925_vm1, %v755_v62, %v756_v41  ;;  %v815_v28 = vsel %vm9925_vm1, %v756_v41, %v757_v42  ;;  %v1001_v62 = vsel %vm9924_vm0, %v956_v48, %v957_v50  ;;  %v7517_v22 = vld [vmem:[%s7259_s30 + $0x80] sm:$0xff] }
  0x77   : > { %10196 = vst [vmem:[#allocation18_spill] sm:$0xff] %v7431_v40  ;;  %v323_v24 = vadd.s32 136, %v7271_v18  ;;  %v758_v41 = vrot.slane %v7293_v37, 7  ;;  %vm7540_vm4 = vmpackc.low %vm7464_vm14, %vm9955_vm5  ;;  %v960_v50 = vrot.slane %v7484_v7, 1  ;;  %vm7582_vm14 = vcmp.lt.s32.totalorder %v447_v23, 15  ;;  %v7665_v23 = vld [vmem:[%s7259_s30 + $0xa8] sm:$0xff] }
  0x78   : > { %5593 = vmatpush3.bf16.msra.mxu0 %v6780_v43  ;;  %6409 = vmatpush3.bf16.msra.mxu1 %v6779_v32  ;;  %v419_v32 = vand.u32 15, %v317_v10  ;;  %v6785_v43 = vld [vmem:[#allocation5 + $0xf8] sm:$0xff]   ;;  %vm7638_vm13 = vmpackc.low %vm7582_vm14, %vm9955_vm5  ;;  %vm10245_vm14 = vcmp.lt.s32.totalorder %v7271_v18, 1  ;;  %v7786_v53 = vld [vmem:[%s7259_s30 + $0xe0] sm:$0xff]  ;;  %v766_v45 = vrot.slane %v7418_v26, 7 }
  0x79   : > { %6442 = vmatprep.subr.bf16.mxu0 %v6781_v46  ;;  %5714 = vmatprep.subr.bf16.mxu1 %v6783_v34  ;;  %v7528_v34 = vpack.c.bf16 %v815_v28, %v816_v4  ;;  %v7570_v4 = vld [vmem:[%s7259_s30 + $0x88] sm:$0xff]  ;;  %v814_v5 = vsel %vm9925_vm1, %v757_v42, %v758_v41  ;;  %v6792_v10 = vld [vmem:[#allocation5 + $0x118] sm:$0xff]   ;;  %v10237_v63 = vsel %vm7638_vm13, 4294967295, %v10236_v63 }
  0x7a   : > { %vm7479_vm15 = vcmp.lt.s32.totalorder %v419_v32, 15  ;;  %v10212_v32 = vmov 0  ;;  %10238 = vst [vmem:[#allocation30_spill] sm:$0xff] %v10237_v63  ;;  %v329_v63 = vadd.s32 184, %v7271_v18 }
  0x7b   : > { %1430 = vmatmul.mubr.bf16.vlgmr.msra.gmra.mxu0 %v9928_v0  ;;  %6411 = vmatmul.mubr.msk.bf16.vlgmr.msra.gmra.mxu1 %vm7350_vm6, %v7343_v60  ;;  %v10213_v32 = vsel %vm7524_vm3, 4294967295, %v10212_v32  ;;  %vm7552_vm9 = vmpackc.low %vm7479_vm15, %vm9955_vm5  ;;  %v7668_v0 = vld [vmem:[%s7259_s30 + $0xb0] sm:$0xff] }
  0x7c   : > { %6443 = vmatpush3.bf16.msra.mxu0 %v6781_v46  ;;  %1437 = vmatprep.mubr.bf16.mxu0 %v7356_v2  ;;  %v7444_v46 = vpack.c.bf16 %v7290_v36, %v7282_v29  ;;  %v959_v29 = vrot.slane %v7418_v26, 1  ;;  %10214 = vst [vmem:[#allocation22_spill] sm:$0xff] %v10213_v32 }
  0x7d   : > { %6414 = vmatprep.mubr.msk.bf16.mxu1 %vm7369_vm7, %v7361_v6  ;;  %6444 = vmatprep.subr.bf16.mxu0 %v6782_v9 }
  0x7e   : > { %5715 = vmatpush3.bf16.msra.mxu1 %v6785_v43  ;;  %v999_v15 = vsel %vm9924_vm0, %v958_v54, %v959_v29  ;;  %v10216_v43 = vmov 0  ;;  %v961_v54 = vrot.slane %v7505_v12, 1 }
  0x7f   : > { %5716 = vmatprep.subr.bf16.mxu1 %v6786_v44  ;;  %v10217_v43 = vsel %vm7540_vm4, 4294967295, %v10216_v43  ;;  %v7544_v44 = vpack.c.bf16 %v999_v15, %v1000_v16  ;;  %v461_v15 = vand.u32 15, %v323_v24  ;;  %v6793_v16 = vld [vmem:[#allocation5 + $0x160] sm:$0xff]   ;;  %v6794_v24 = vld [vmem:[#allocation5 + $0xd8] sm:$0xff]  }
  0x80   : > { %6445 = vmatpush3.bf16.msra.mxu0 %v6782_v9  ;;  %v1002_v9 = vsel %vm9924_vm0, %v955_v8, %v956_v48  ;;  %v312_v8 = vadd.s32 48, %v7271_v18  ;;  %10218 = vst [vmem:[#allocation24_spill] sm:$0xff] %v10217_v43  ;;  %v759_v48 = vrot.slane %v7321_v51, 7  ;;  %v997_v42 = vsel %vm9924_vm0, %v960_v50, %v961_v54 }
  0x81   : > { %6446 = vmatprep.subr.bf16.mxu0 %v6784_v38  ;;  %v7530_v35 = vpack.c.bf16 %v1001_v62, %v1002_v9  ;;  %10219 = vst [vmem:[#allocation25_spill] sm:$0xff] %v7544_v44  ;;  %v7587_v62 = vld [vmem:[%s7259_s30 + $0x90] sm:$0xff]  ;;  %v325_v9 = vadd.s32 152, %v7271_v18  ;;  %v489_v43 = vand.u32 15, %v327_v3 }
  0x82   : > { %5717 = vmatpush3.bf16.msra.mxu1 %v6787_v56  ;;  %v963_v56 = vrot.slane %v7517_v22, 1  ;;  %v384_v57 = vand.u32 15, %v312_v8  ;;  %v813_v36 = vsel %vm9925_vm1, %v758_v41, %v759_v48  ;;  %v996_v8 = vsel %vm9924_vm0, %v961_v54, %v962_v55 }
  0x83   : > { %4899 = vmatmul.mubr.msk.bf16.gmra.mxu0 %vm7385_vm8, %v7429_v39  ;;  %6415 = vmatmul.mubr.msk.bf16.gmra.mxu1 %vm7438_vm11, %v7431_v40  ;;  %10215 = vst [vmem:[#allocation23_spill] sm:$0xff] %v7530_v35  ;;  %v9932_v41 = vrot.slane %v7338_v58, 7  ;;  %v10232_v54 = vmov 0  ;;  %v7857_v40 = vld [vmem:[%s7259_s30 + $0xf0] sm:$0xff] }
  0x84   : > { %1445 = vmatprep.mubr.bf16.mxu0 %v7444_v46  ;;  %6418 = vmatprep.mubr.msk.bf16.mxu1 %vm7453_vm12, %v7446_v47  ;;  %v995_v17 = vsel %vm9924_vm0, %v962_v55, %v963_v56  ;;  %vm7606_vm15 = vcmp.gt.s32.totalorder %v384_v57, 0  ;;  %v10233_v54 = vsel %vm7623_vm2, 4294967295, %v10232_v54  ;;  %v964_v57 = vrot.slane %v7570_v4, 1 }
  0x85   : > { %6447 = vmatpush3.bf16.msra.mxu0 %v6784_v38  ;;  %5718 = vmatprep.subr.bf16.mxu1 %v6788_v13  ;;  %v7534_v38 = vpack.c.bf16 %v7321_v51, %v7293_v37  ;;  %v10220_v37 = vmov 0  ;;  %v10223_v51 = vmov 0  ;;  %v998_v13 = vsel %vm9924_vm0, %v959_v29, %v960_v50  ;;  %v7616_v29 = vld [vmem:[%s7259_s30 + $0xa0] sm:$0xff]  ;;  %10234 = vst [vmem:[#allocation28_spill] sm:$0xff] %v10233_v54  ;;  %vm7651_vm1 = vmpackc.low %vm9955_vm5, %vm7606_vm15  ;;  %v6798_v54 = vld [vmem:[#allocation5 + $0xc8] sm:$0xff]  }
  0x86   : > { %v10221_v37 = vsel %vm7552_vm9, 4294967295, %v10220_v37  ;;  %5719 = vmatpush3.bf16.msra.mxu1 %v6789_v30  ;;  %v10224_v51 = vsel %vm7561_vm10, 4294967295, %v10223_v51  ;;  %v7611_v30 = vld [vmem:[%s7259_s30 + $0x98] sm:$0xff]  ;;  %6448 = vmatprep.subr.bf16.mxu0 %v6793_v16  ;;  %v7618_v50 = vpack.c.bf16 %v813_v36, %v814_v5  ;;  %v7627_v55 = vpack.c.bf16 %v997_v42, %v998_v13 }
  0x87   : > { %10222 = vst [vmem:[#allocation26_spill] sm:$0xff] %v10221_v37  ;;  %10225 = vst [vmem:[#allocation27_spill] sm:$0xff] %v10224_v51  ;;  %5720 = vmatprep.subr.bf16.mxu1 %v6790_v31  ;;  %v760_v31 = vrot.slane %v7324_v52, 7  ;;  %v7633_v5 = vpack.c.bf16 %v7338_v58, %v7324_v52  ;;  %v7642_v36 = vpack.c.bf16 %v995_v17, %v996_v8  ;;  %vm7644_vm0 = vcmp.lt.s32.totalorder %v461_v15, 15  ;;  %v6796_v17 = vld [vmem:[#allocation5 + $0xd0] sm:$0xff]  }
  0x88   : > { %10235 = vst [vmem:[#allocation29_spill] sm:$0xff] %v7627_v55  ;;  %v475_v13 = vand.u32 15, %v325_v9  ;;  %v10242_v52 = vmov 0  ;;  %v966_v28 = vrot.slane %v7611_v30, 1  ;;  %v314_v8 = vadd.s32 64, %v7271_v18 }
  0x89   : > { %6449 = vmatpush3.bf16.msra.mxu0 %v6793_v16  ;;  %10239 = vst [vmem:[#allocation31_spill] sm:$0xff] %v7642_v36  ;;  %v10243_v52 = vsel %vm7651_vm1, 4294967295, %v10242_v52  ;;  %v967_v16 = vrot.slane %v7616_v29, 1  ;;  %v811_v15 = vsel %vm10245_vm14, %v760_v31, %v9932_v41  ;;  %vm10247_vm15 = vcmp.lt.s32.totalorder %v7271_v18, 7  ;;  %v7690_v41 = vld [vmem:[%s7259_s30 + $0xb8] sm:$0xff] }
  0x8a   : > { %5721 = vmatpush3.bf16.msra.mxu1 %v6791_v61  ;;  %v965_v61 = vrot.slane %v7587_v62, 1  ;;  %10244 = vst [vmem:[#allocation32_spill] sm:$0xff] %v10243_v52  ;;  %v335_v47 = vadd.s32 232, %v7271_v18 }
  0x8b   : > { %4902 = vmatmul.mubr.msk.bf16.gmra.mxu0 %vm7524_vm3, %v7528_v34  ;;  %6419 = vmatmul.mubr.msk.bf16.gmra.mxu1 %vm7540_vm4, %v7530_v35 }
  0x8c   : > { %1453 = vmatprep.mubr.bf16.mxu0 %v7534_v38  ;;  %6422 = vmatprep.mubr.msk.bf16.mxu1 %vm7552_vm9, %v7544_v44  ;;  %vm10246_vm9 = vmmov %vm10245_vm14  ;;  %v398_v44 = vand.u32 15, %v314_v8  ;;  %v10260_v8 = vrot.slane %v7338_v58, 7  ;;  %v545_v6 = vand.u32 15, %v335_v47  ;;  %v10001_v47 = vrot.slane %v7857_v40, 1 }
  0x8d   : > { %5722 = vmatprep.subr.bf16.mxu1 %v6792_v10  ;;  %v6795_v10 = vld [vmem:[#allocation5 + $0x110] sm:$0xff]   ;;  %v812_v9 = vsel %vm10246_vm9, %v759_v48, %v760_v31  ;;  %v993_v48 = vsel %vm10247_vm15, %v964_v57, %v965_v61  ;;  %vm10248_vm9 = vmmov %vm10247_vm15  ;;  %vm934_vm15 = vcmp.lt.s32.totalorder %v475_v13, 15  ;;  %v6799_v13 = vld [vmem:[#allocation5 + $0x100] sm:$0xff]  }
  0x8e   : > { %5723 = vmatpush3.bf16.msra.mxu1 %v6794_v24  ;;  %v994_v31 = vsel %vm10248_vm9, %v963_v56, %v964_v57  ;;  %vm7683_vm14 = vmpackc.low %vm7644_vm0, %vm9955_vm5  ;;  %v10249_v24 = vmov 0  ;;  %v7697_v56 = vld [vmem:[%s7259_s30 + $0xc0] sm:$0xff]  ;;  %vm7912_vm11 = vcmp.lt.s32.totalorder %v545_v6, 15 }
  0x8f   : > { %5724 = vmatprep.subr.bf16.mxu1 %v6795_v10  ;;  %v10250_v24 = vsel %vm7683_vm14, 4294967295, %v10249_v24  ;;  %v762_v10 = vrot.slane %v7341_v59, 7  ;;  %vm10252_vm0 = vmmov %vm10248_vm9  ;;  %v7706_v37 = vpack.c.bf16 %v993_v48, %v994_v31  ;;  %v6800_v31 = vld [vmem:[#allocation5 + $0xc0] sm:$0xff]   ;;  %v6802_v48 = vld [vmem:[#allocation5 + $0x150] sm:$0xff]  }
  0x90   : > { %10251 = vst [vmem:[#allocation33_spill] sm:$0xff] %v10250_v24  ;;  %v991_v57 = vsel %vm10252_vm0, %v966_v28, %v967_v16  ;;  %vm10253_vm9 = vmmov %vm10252_vm0  ;;  %v10421_v14 = vld [vmem:[#allocation29_spill] sm:$0xff] }
  0x91   : > { %v992_v42 = vsel %vm10253_vm9, %v965_v61, %v966_v28  ;;  %10254 = vst [vmem:[#allocation34_spill] sm:$0xff] %v7706_v37  ;;  %v968_v61 = vrot.slane %v7665_v23, 1  ;;  %v969_v28 = vrot.slane %v7668_v0, 1  ;;  %vm7739_vm9 = vcmp.gt.s32.totalorder %v398_v44, 0 }
  0x92   : > { %5725 = vmatpush3.bf16.msra.mxu1 %v6796_v17  ;;  %v7718_v17 = vpack.c.bf16 %v7399_v19, %v7341_v59  ;;  %v764_v44 = vrot.slane %v7402_v20, 7 }
  0x93   : > { %4905 = vmatmul.mubr.msk.bf16.gmra.mxu0 %vm7561_vm10, %v7618_v50  ;;  %6423 = vmatmul.mubr.msk.bf16.gmra.mxu1 %vm7623_vm2, %v7627_v55  ;;  %v7704_v55 = vpack.c.bf16 %v811_v15, %v812_v9  ;;  %v7720_v15 = vpack.c.bf16 %v991_v57, %v992_v42  ;;  %v6801_v9 = vld [vmem:[#allocation5 + $0x158] sm:$0xff]   ;;  %v503_v57 = vand.u32 15, %v329_v63  ;;  %v316_v42 = vadd.s32 80, %v7271_v18 }
  0x94   : > { %1461 = vmatprep.mubr.bf16.mxu0 %v7633_v5  ;;  %6426 = vmatprep.mubr.msk.bf16.mxu1 %vm7638_vm13, %v7642_v36  ;;  %vm7710_vm13 = vmpackc.low %vm934_vm15, %vm9955_vm5  ;;  %v10255_v36 = vmov 0  ;;  %vm10259_vm15 = vcmp.lt.s32.totalorder %v7271_v18, 1 }
  0x95   : > { %5726 = vmatprep.subr.bf16.mxu1 %v6797_v33  ;;  %v10256_v36 = vsel %vm7710_vm13, 4294967295, %v10255_v36  ;;  %10258 = vst [vmem:[#allocation36_spill] sm:$0xff] %v7720_v15  ;;  %v970_v33 = vrot.slane %v7690_v41, 1  ;;  %v809_v3 = vsel %vm10259_vm15, %v762_v10, %v9950_v27  ;;  %vm10261_vm0 = vmmov %vm10259_vm15  ;;  %6450 = vmatprep.subr.bf16.mxu0 %v6801_v9  ;;  %vm10264_vm15 = vcmp.lt.s32.totalorder %v7271_v18, 7 }
  0x96   : > { %10257 = vst [vmem:[#allocation35_spill] sm:$0xff] %v10256_v36  ;;  %5727 = vmatpush3.bf16.msra.mxu1 %v6798_v54  ;;  %v810_v59 = vsel %vm10261_vm0, %v10260_v8, %v762_v10  ;;  %v989_v54 = vsel %vm10264_vm15, %v968_v61, %v969_v28  ;;  %vm10265_vm0 = vmmov %vm10264_vm15  ;;  %v331_v10 = vadd.s32 200, %v7271_v18  ;;  %v7757_v8 = vld [vmem:[%s7259_s30 + $0xd0] sm:$0xff]  ;;  %v333_v27 = vadd.s32 216, %v7271_v18  ;;  %6451 = vmatpush3.bf16.msra.mxu0 %v6801_v9 }
  0x97   : > { %5728 = vmatprep.subr.bf16.mxu1 %v6799_v13  ;;  %v990_v63 = vsel %vm10265_vm0, %v967_v16, %v968_v61  ;;  %v7754_v13 = vld [vmem:[%s7259_s30 + $0xc8] sm:$0xff]  ;;  %v7760_v24 = vpack.c.bf16 %v809_v3, %v810_v59  ;;  %vm7762_vm15 = vcmp.lt.s32.totalorder %v489_v43, 15  ;;  %v10268_v61 = vrot.slane %v7697_v56, 1  ;;  %vm10269_vm5 = vmmov %vm10265_vm0  ;;  %6452 = vmatprep.subr.bf16.mxu0 %v6802_v48 }
  0x98   : > { %v7775_v35 = vpack.c.bf16 %v989_v54, %v990_v63  ;;  %v7779_v43 = vpack.c.bf16 %v7415_v25, %v7402_v20  ;;  %v412_v59 = vand.u32 15, %v316_v42  ;;  %v517_v20 = vand.u32 15, %v331_v10 }
  0x99   : > { %v987_v36 = vsel %vm10265_vm0, %v970_v33, %v10268_v61  ;;  %v6803_v61 = vld [vmem:[#allocation5 + $0x148] sm:$0xff]   ;;  %v972_v9 = vrot.slane %v7754_v13, 1  ;;  %v531_v58 = vand.u32 15, %v333_v27  ;;  %v318_v63 = vadd.s32 96, %v7271_v18 }
  0x9a   : > { %5729 = vmatpush3.bf16.msra.mxu1 %v6800_v31  ;;  %10270 = vst [vmem:[#allocation37_spill] sm:$0xff] %v7775_v35  ;;  %v973_v31 = vrot.slane %v7757_v8, 1  ;;  %v10281_v10 = vmov 0  ;;  %v975_v16 = vrot.slane %v7786_v53, 1  ;;  %6453 = vmatpush3.bf16.msra.mxu0 %v6802_v48  ;;  %v10287_v48 = vrot.slane %v7399_v19, 7 }
  0x9b   : > { %4908 = vmatmul.mubr.msk.bf16.gmra.mxu0 %vm7651_vm1, %v7704_v55  ;;  %6427 = vmatmul.mubr.msk.bf16.gmra.mxu1 %vm7683_vm14, %v7706_v37  ;;  %v7773_v37 = vld [vmem:[%s7259_s30 + $0xd8] sm:$0xff]  ;;  %vm7837_vm4 = vcmp.lt.s32.totalorder %v517_v20, 15  ;;  %v10292_v19 = vrot.slane %v7697_v56, 1  ;;  %v426_v20 = vand.u32 15, %v318_v63  ;;  %v10305_v27 = vmov 0 }
  0x9c   : > { %1469 = vmatprep.mubr.bf16.mxu0 %v7718_v17  ;;  %6430 = vmatprep.mubr.msk.bf16.mxu1 %vm7710_vm13, %v7720_v15  ;;  %v988_v15 = vsel %vm10269_vm5, %v969_v28, %v970_v33  ;;  %vm7781_vm13 = vcmp.lt.s32.totalorder %v503_v57, 15  ;;  %vm10273_vm5 = vmmov 1   ;;  %v10274_v28 = vmov 0  ;;  %v6805_v63 = vld [vmem:[#allocation5 + $0x1f8] sm:$0xff]  }
  0x9d   : > { %vm7791_vm0 = vmpackc.low %vm10273_vm5, %vm7739_vm9  ;;  %v765_v33 = vrot.slane %v7415_v25, 7  ;;  %v10277_v57 = vmov 0  ;;  %v7805_v42 = vpack.c.bf16 %v987_v36, %v988_v15  ;;  %v974_v54 = vrot.slane %v7773_v37, 1  ;;  %v7809_v25 = vld [vmem:[#allocation5 + $0x238] sm:$0xff]   ;;  %6454 = vmatprep.subr.bf16.mxu0 %v6803_v61  ;;  %v6804_v36 = vld [vmem:[#allocation5 + $0x140] sm:$0xff]  }
  0x9e   : > { %v10275_v28 = vsel %vm7791_vm0, 4294967295, %v10274_v28  ;;  %vm7801_vm14 = vmpackc.low %vm7762_vm15, %vm10273_vm5  ;;  %vm7820_vm15 = vcmp.gt.s32.totalorder %v412_v59, 0  ;;  %6490 = vmatprep.subr.bf16.mxu1 %v7809_v25  ;;  %6455 = vmatpush3.bf16.msra.mxu0 %v6803_v61  ;;  %v10301_v61 = vmov 0 }
  0x9f   : > { %10276 = vst [vmem:[#allocation38_spill] sm:$0xff] %v10275_v28  ;;  %v10278_v57 = vsel %vm7801_vm14, 4294967295, %v10277_v57  ;;  %10280 = vst [vmem:[#allocation40_spill] sm:$0xff] %v7805_v42  ;;  %6456 = vmatprep.subr.bf16.mxu0 %v6804_v36 }
  0xa0   : > { %10279 = vst [vmem:[#allocation39_spill] sm:$0xff] %v10278_v57  ;;  %vm7814_vm9 = vmpackc.low %vm7781_vm13, %vm10273_vm5  ;;  %vm10286_vm13 = vcmp.lt.s32.totalorder %v7271_v18, 1 }
  0xa1   : > { %v10282_v10 = vsel %vm7814_vm9, 4294967295, %v10281_v10  ;;  %v807_v15 = vsel %vm10286_vm13, %v764_v44, %v765_v33  ;;  %vm10288_vm2 = vmmov %vm10286_vm13 }
  0xa2   : > { %10283 = vst [vmem:[#allocation41_spill] sm:$0xff] %v10282_v10  ;;  %v808_v3 = vsel %vm10288_vm2, %v10287_v48, %v764_v44  ;;  %vm7859_vm2 = vcmp.lt.s32.totalorder %v531_v58, 15  ;;  %v10298_v58 = vmov 0  ;;  %6457 = vmatpush3.bf16.msra.mxu0 %v6804_v36  ;;  %v769_v36 = vrot.slane %v7514_v21, 7 }
  0xa3   : > { %4911 = vmatmul.mubr.msk.bf16.gmra.mxu0 %vm7791_vm0, %v7760_v24  ;;  %6431 = vmatmul.mubr.msk.bf16.gmra.mxu1 %vm7801_vm14, %v7775_v35  ;;  %vm10291_vm14 = vcmp.lt.s32.totalorder %v7271_v18, 7  ;;  %v7854_v35 = vld [vmem:[%s7259_s30 + $0xe8] sm:$0xff] }
  0xa4   : > { %1477 = vmatprep.mubr.bf16.mxu0 %v7779_v43  ;;  %6434 = vmatprep.mubr.msk.bf16.mxu1 %vm7814_vm9, %v7805_v42  ;;  %v985_v57 = vsel %vm10291_vm14, %v972_v9, %v973_v31  ;;  %vm10293_vm13 = vmmov %vm10291_vm14  ;;  %v976_v1 = vrot.slane %v7854_v35, 1 }
  0xa5   : > { %v986_v44 = vsel %vm10293_vm13, %v10292_v19, %v972_v9  ;;  %vm10296_vm9 = vmmov %vm10293_vm13  ;;  %v320_v9 = vadd.s32 112, %v7271_v18  ;;  %v7875_v19 = vpack.c.bf16 %v807_v15, %v808_v3  ;;  %5850 = vmatprep.subr.bf16.mxu0 %v6805_v63  ;;  %v10326_v3 = vmov 0 }
  0xa6   : > { %v983_v10 = vsel %vm10296_vm9, %v974_v54, %v975_v16  ;;  %vm10297_vm14 = vmmov %vm10296_vm9  ;;  %v7877_v48 = vpack.c.bf16 %v985_v57, %v986_v44  ;;  %v322_v57 = vadd.s32 128, %v7271_v18  ;;  %v324_v44 = vadd.s32 144, %v7271_v18 }
  0xa7   : > { %v984_v42 = vsel %vm10297_vm14, %v973_v31, %v974_v54  ;;  %vm7871_vm13 = vmpackc.low %vm10273_vm5, %vm7820_vm15  ;;  %v7890_v31 = vpack.c.bf16 %v7484_v7, %v7418_v26  ;;  %vm7904_vm14 = vcmp.gt.s32.totalorder %v426_v20, 0  ;;  %v10311_v26 = vrot.slane %v7484_v7, 7 }
  0xa8   : > { %v10299_v58 = vsel %vm7871_vm13, 4294967295, %v10298_v58  ;;  %vm7884_vm9 = vmpackc.low %vm7837_vm4, %vm10273_vm5  ;;  %v7892_v54 = vpack.c.bf16 %v983_v10, %v984_v42  ;;  %vm10308_vm4 = vcmp.lt.s32.totalorder %v7271_v18, 1  ;;  %v440_v11 = vand.u32 15, %v320_v9 }
  0xa9   : > { %10300 = vst [vmem:[#allocation42_spill] sm:$0xff] %v10299_v58  ;;  %v10302_v61 = vsel %vm7884_vm9, 4294967295, %v10301_v61  ;;  %vm7898_vm15 = vmpackc.low %vm7859_vm2, %vm10273_vm5  ;;  %v806_v15 = vsel %vm10308_vm4, %v765_v33, %v766_v45  ;;  %vm10315_vm2 = vcmp.lt.s32.totalorder %v7271_v18, 7  ;;  %v454_v59 = vand.u32 15, %v322_v57 }
  0xaa   : > { %10303 = vst [vmem:[#allocation43_spill] sm:$0xff] %v10302_v61  ;;  %10304 = vst [vmem:[#allocation44_spill] sm:$0xff] %v7892_v54  ;;  %v10306_v27 = vsel %vm7898_vm15, 4294967295, %v10305_v27  ;;  %v981_v33 = vsel %vm10315_vm2, %v976_v1, %v10001_v47  ;;  %v10008_v20 = vrot.slane %v7854_v35, 7  ;;  %v784_v9 = vrot.slane %v7857_v40, 7 }
  0xab   : > { %10307 = vst [vmem:[#allocation45_spill] sm:$0xff] %v10306_v27  ;;  %vm10312_vm12 = vmmov %vm10308_vm4  ;;  %4914 = vmatmul.mubr.msk.bf16.gmra.mxu0 %vm7871_vm13, %v7875_v19  ;;  %6435 = vmatmul.mubr.msk.bf16.gmra.mxu1 %vm7884_vm9, %v7877_v48  ;;  %vm7941_vm4 = vcmp.gt.s32.totalorder %v440_v11, 0  ;;  %v10320_v57 = vmov 0  ;;  %v771_v47 = vrot.slane %v7570_v4, 7  ;;  %v328_v10 = vadd.s32 176, %v7271_v18 }
  0xac   : > { %v805_v42 = vsel %vm10312_vm12, %v766_v45, %v10311_v26  ;;  %vm10316_vm12 = vmmov %vm10315_vm2  ;;  %v768_v45 = vrot.slane %v7505_v12, 7  ;;  %1485 = vmatprep.mubr.bf16.mxu0 %v7890_v31  ;;  %6438 = vmatprep.mubr.msk.bf16.mxu1 %vm7898_vm15, %v7892_v54  ;;  %v770_v26 = vrot.slane %v7517_v22, 7  ;;  %v6817_v54 = vld [vmem:[#allocation5 + $0x228] sm:$0xff]  }
  0xad   : > { %v982_v6 = vsel %vm10316_vm12, %v975_v16, %v976_v1  ;;  %v7937_v63 = vpack.c.bf16 %v805_v42, %v806_v15  ;;  %vm7949_vm2 = vmpackc.low %vm10273_vm5, %vm7904_vm14  ;;  %v326_v15 = vadd.s32 160, %v7271_v18  ;;  %v10323_v42 = vrot.slane %v7314_v49, 7 }
  0xae   : > { %v7939_v1 = vpack.c.bf16 %v981_v33, %v982_v6  ;;  %v10321_v57 = vsel %vm7949_vm2, 4294967295, %v10320_v57  ;;  %vm10324_vm12 = vcmp.lt.s32.totalorder %v7271_v18, 1  ;;  %vm7966_vm14 = vmpackc.low %vm7912_vm11, %vm10273_vm5  ;;  %v7972_v6 = vpack.c.bf16 %v7514_v21, %v7505_v12 }
  0xaf   : > { %10322 = vst [vmem:[#allocation47_spill] sm:$0xff] %v10321_v57  ;;  %v787_v11 = vsel %vm10324_vm12, %v784_v9, %v10323_v42  ;;  %vm10325_vm15 = vmmov %vm10324_vm12  ;;  %v10327_v3 = vsel %vm7966_vm14, 4294967295, %v10326_v3  ;;  %v772_v49 = vrot.slane %v7587_v62, 7  ;;  %vm7978_vm12 = vcmp.gt.s32.totalorder %v454_v59, 0 }
  0xb0   : > { %10317 = vst [vmem:[#allocation46_spill] sm:$0xff] %v7939_v1  ;;  %v788_v33 = vsel %vm10325_vm15, %v10008_v20, %v784_v9  ;;  %10328 = vst [vmem:[#allocation48_spill] sm:$0xff] %v10327_v3  ;;  %v468_v9 = vand.u32 15, %v324_v44  ;;  %v7984_v20 = vadd.s32 192, %v7271_v18  ;;  %v482_v12 = vand.u32 15, %v326_v15 }
  0xb1   : > { %v7976_v27 = vpack.c.bf16 %v787_v11, %v788_v33  ;;  %v774_v21 = vrot.slane %v7616_v29, 7  ;;  %vm10332_vm11 = vmmov %vm10325_vm15  ;;  %v10333_v44 = vrot.slane %v7484_v7, 7  ;;  %v775_v33 = vrot.slane %v7665_v23, 7 }
  0xb2   : > { %v803_v59 = vsel %vm10332_vm11, %v768_v45, %v769_v36  ;;  %vm10334_vm15 = vmmov %vm10332_vm11  ;;  %v8003_v42 = vadd.s32 208, %v7271_v18  ;;  %v496_v3 = vand.u32 15, %v328_v10  ;;  %v778_v7 = vrot.slane %v7697_v56, 7 }
  0xb3   : > { %10329 = vst [vmem:[#allocation49_spill] sm:$0xff] %v7976_v27  ;;  %4917 = vmatmul.mubr.msk.bf16.gmra.mxu0 %vm7949_vm2, %v7937_v63  ;;  %6439 = vmatmul.mubr.msk.bf16.gmra.mxu1 %vm7966_vm14, %v7939_v1  ;;  %v804_v11 = vsel %vm10334_vm15, %v10333_v44, %v768_v45  ;;  %vm8005_vm14 = vcmp.gt.s32.totalorder %v468_v9, 0  ;;  %v510_v1 = vand.u32 15, %v7984_v20  ;;  %v779_v45 = vrot.slane %v7754_v13, 7  ;;  %vm8017_vm11 = vmpackc.low %vm10273_vm5, %vm7941_vm4  ;;  %v6812_v27 = vld [vmem:[#allocation5 + $0x230] sm:$0xff]  }
  0xb4   : > { %1493 = vmatprep.mubr.bf16.mxu0 %v7972_v6  ;;  %1895 = vmatprep.mubr.bf16.mxu1 %v7356_v2  ;;  %v10337_v44 = vmov 0  ;;  %v8021_v9 = vpack.c.bf16 %v803_v59, %v804_v11  ;;  %v8027_v20 = vpack.c.bf16 %v7570_v4, %v7517_v22  ;;  %vm8032_vm15 = vmpackc.low %vm10273_vm5, %vm7978_vm12  ;;  %v10340_v16 = vmov 0 }
  0xb5   : > { %v10338_v44 = vsel %vm8017_vm11, 4294967295, %v10337_v44  ;;  %v10341_v16 = vsel %vm8032_vm15, 4294967295, %v10340_v16  ;;  %v524_v10 = vand.u32 15, %v8003_v42  ;;  %v8038_v59 = vadd.s32 224, %v7271_v18 }
  0xb6   : > { %10339 = vst [vmem:[#allocation50_spill] sm:$0xff] %v10338_v44  ;;  %10342 = vst [vmem:[#allocation51_spill] sm:$0xff] %v10341_v16  ;;  %vm10343_vm4 = vcmp.lt.s32.totalorder %v7271_v18, 1  ;;  %vm8053_vm9 = vcmp.gt.s32.totalorder %v482_v12, 0  ;;  %v10348_v2 = vmov 0  ;;  %v10387_v42 = vmov 0 }
  0xb7   : > { %v801_v22 = vsel %vm10343_vm4, %v770_v26, %v771_v47  ;;  %vm10344_vm12 = vmmov %vm10343_vm4 }
  0xb8   : > { %v802_v4 = vsel %vm10344_vm12, %v769_v36, %v770_v26  ;;  %vm8067_vm4 = vmpackc.low %vm10273_vm5, %vm8005_vm14  ;;  %v6820_v36 = vld [vmem:[#allocation5 + $0x220] sm:$0xff]   ;;  %v6823_v26 = vld [vmem:[#allocation5 + $0x218] sm:$0xff]  }
  0xb9   : > { %v8058_v11 = vpack.c.bf16 %v801_v22, %v802_v4  ;;  %v10349_v2 = vsel %vm8067_vm4, 4294967295, %v10348_v2  ;;  %vm10352_vm14 = vmmov %vm10344_vm12  ;;  %v8093_v22 = vpack.c.bf16 %v7665_v23, %v7616_v29  ;;  %v10357_v4 = vmov 0 }
  0xba   : > { %10350 = vst [vmem:[#allocation53_spill] sm:$0xff] %v10349_v2  ;;  %v10444_v2 = vld [vmem:[#allocation46_spill] sm:$0xff] }
  0xbb   : > { %4920 = vmatmul.mubr.msk.bf16.gmra.mxu0 %vm8017_vm11, %v8021_v9  ;;  %5013 = vmatmul.mubr.msk.bf16.vlgmr.msra.gmra.mxu1 %vm7385_vm8, %v7429_v39  ;;  %v8062_v39 = vpack.c.bf16 %v7611_v30, %v7587_v62  ;;  %v10351_v62 = vrot.slane %v7611_v30, 7  ;;  %vm8085_vm8 = vcmp.gt.s32.totalorder %v496_v3, 0  ;;  %10356 = vst [vmem:[#allocation55_spill] sm:$0xff] %v8093_v22  ;;  %v10367_v30 = vmov 0 }
  0xbc   : > { %1501 = vmatprep.mubr.bf16.mxu0 %v8027_v20  ;;  %1903 = vmatprep.mubr.bf16.mxu1 %v7444_v46 }
  0xbd   : > { %6491 = vmatpush3.bf16.msra.mxu1 %v7809_v25  ;;  %10347 = vst [vmem:[#allocation52_spill] sm:$0xff] %v8062_v39  ;;  %v799_v25 = vsel %vm10352_vm14, %v772_v49, %v10351_v62  ;;  %vm8098_vm14 = vmpackc.low %vm10273_vm5, %vm8053_vm9  ;;  %v10361_v3 = vmov %v10351_v62  ;;  %v8126_v62 = vpack.c.bf16 %v7690_v41, %v7668_v0 }
  0xbe   : > { %6492 = vmatprep.subr.bf16.mxu1 %v6812_v27  ;;  %v10358_v4 = vsel %vm8098_vm14, 4294967295, %v10357_v4  ;;  %vm10360_vm9 = vmmov %vm10344_vm12 }
  0xbf   : > { %10359 = vst [vmem:[#allocation56_spill] sm:$0xff] %v10358_v4  ;;  %v797_v29 = vsel %vm10360_vm9, %v774_v21, %v775_v33  ;;  %10366 = vst [vmem:[#allocation58_spill] sm:$0xff] %v8126_v62  ;;  %v10424_v4 = vld [vmem:[#allocation31_spill] sm:$0xff] }
  0xc1   : > { %6493 = vmatpush3.bf16.msra.mxu1 %v6812_v27  ;;  %v800_v27 = vsel %vm10344_vm12, %v771_v47, %v772_v49  ;;  %v6824_v47 = vld [vmem:[#allocation5 + $0x210] sm:$0xff]   ;;  %vm10362_vm12 = vmmov %vm10360_vm9 }
  0xc2   : > { %6494 = vmatprep.subr.bf16.mxu1 %v6817_v54  ;;  %v8089_v15 = vpack.c.bf16 %v799_v25, %v800_v27  ;;  %v798_v49 = vsel %vm10362_vm12, %v10361_v3, %v774_v21  ;;  %vm8131_vm9 = vmpackc.low %vm10273_vm5, %vm8085_vm8  ;;  %v6828_v21 = vld [vmem:[#allocation5 + $0x200] sm:$0xff]   ;;  %v10371_v25 = vrot.slane %v7668_v0, 7  ;;  %v8163_v3 = vpack.c.bf16 %v7754_v13, %v7697_v56 }
  0xc3   : > { %4923 = vmatmul.mubr.msk.bf16.gmra.mxu0 %vm8032_vm15, %v8058_v11  ;;  %5016 = vmatmul.mubr.msk.bf16.gmra.mxu1 %vm7524_vm3, %v7528_v34  ;;  %vm8118_vm3 = vcmp.gt.s32.totalorder %v510_v1, 0  ;;  %v10368_v30 = vsel %vm8131_vm9, 4294967295, %v10367_v30  ;;  %v10370_v1 = vrot.slane %v7690_v41, 7  ;;  %vm10372_vm8 = vmmov %vm10362_vm12  ;;  %v10379_v0 = vmov 0 }
  0xc4   : > { %1509 = vmatprep.mubr.bf16.mxu0 %v8062_v39  ;;  %1911 = vmatprep.mubr.bf16.mxu1 %v7534_v38  ;;  %10355 = vst [vmem:[#allocation54_spill] sm:$0xff] %v8089_v15  ;;  %10369 = vst [vmem:[#allocation59_spill] sm:$0xff] %v10368_v30  ;;  %v10390_v41 = vrot.slane %v7773_v37, 7  ;;  %v10391_v56 = vrot.slane %v7757_v8, 7  ;;  %v10396_v13 = vrot.slane %v7854_v35, 7 }
  0xc5   : > { %6495 = vmatpush3.bf16.msra.mxu1 %v6817_v54  ;;  %v6827_v54 = vld [vmem:[#allocation5 + $0x208] sm:$0xff]   ;;  %v795_v27 = vsel %vm10372_vm8, %v10371_v25, %v10370_v1  ;;  %vm10374_vm12 = vmmov %vm10372_vm8  ;;  %10378 = vst [vmem:[#allocation61_spill] sm:$0xff] %v8163_v3 }
  0xc6   : > { %6496 = vmatprep.subr.bf16.mxu1 %v6820_v36  ;;  %vm8168_vm8 = vmpackc.low %vm10273_vm5, %vm8118_vm3 }
  0xc7   : > { %v10380_v0 = vsel %vm8168_vm8, 4294967295, %v10379_v0  ;;  %vm10382_vm3 = vmmov %vm10374_vm12 }
  0xc8   : > { %10381 = vst [vmem:[#allocation62_spill] sm:$0xff] %v10380_v0  ;;  %v793_v23 = vsel %vm10382_vm3, %v778_v7, %v779_v45  ;;  %v6901_v0 = vld [vmem:[%s7259_s30 + $0xf8] sm:$0xff] }
  0xc9   : > { %6497 = vmatpush3.bf16.msra.mxu1 %v6820_v36  ;;  %v8122_v36 = vpack.c.bf16 %v797_v29, %v798_v49 }
  0xca   : > { %6498 = vmatprep.subr.bf16.mxu1 %v6823_v26 }
  0xcb   : > { %4926 = vmatmul.mubr.msk.bf16.gmra.mxu0 %vm8067_vm4, %v8089_v15  ;;  %5019 = vmatmul.mubr.msk.bf16.gmra.mxu1 %vm7561_vm10, %v7618_v50  ;;  %10365 = vst [vmem:[#allocation57_spill] sm:$0xff] %v8122_v36  ;;  %vm8155_vm10 = vcmp.gt.s32.totalorder %v524_v10, 0 }
  0xcc   : > { %1517 = vmatprep.mubr.bf16.mxu0 %v8093_v22  ;;  %1919 = vmatprep.mubr.bf16.mxu1 %v7633_v5 }
  0xcd   : > { %6499 = vmatpush3.bf16.msra.mxu1 %v6823_v26  ;;  %v10373_v26 = vmov %v10371_v25 }
  0xce   : > { %6500 = vmatprep.subr.bf16.mxu1 %v6824_v47  ;;  %v796_v12 = vsel %vm10374_vm12, %v775_v33, %v10373_v26  ;;  %v10383_v33 = vmov %v10370_v1  ;;  %vm10384_vm12 = vmmov %vm10382_vm3  ;;  %v538_v26 = vand.u32 15, %v8038_v59 }
  0xcf   : > { %v8159_v29 = vpack.c.bf16 %v795_v27, %v796_v12  ;;  %v794_v10 = vsel %vm10384_vm12, %v10383_v33, %v778_v7  ;;  %v8229_v27 = vpack.c.bf16 %v7854_v35, %v7786_v53  ;;  %vm10398_vm12 = vmmov %vm10382_vm3  ;;  %v10400_v12 = vmov %v10390_v41  ;;  %v6806_v35 = vld [vmem:[#allocation5 + $0x1b8] sm:$0xff]  }
  0xd0   : > { %v8192_v49 = vpack.c.bf16 %v793_v23, %v794_v10  ;;  %v10403_v33 = vmov 0  ;;  %v10407_v10 = vld [vmem:[#allocation15_spill] sm:$0xff] }
  0xd1   : > { %6501 = vmatpush3.bf16.msra.mxu1 %v6824_v47  ;;  %10377 = vst [vmem:[#allocation60_spill] sm:$0xff] %v8159_v29  ;;  %10395 = vst [vmem:[#allocation67_spill] sm:$0xff] %v8229_v27 }
  0xd2   : > { %6502 = vmatprep.subr.bf16.mxu1 %v6827_v54  ;;  %10385 = vst [vmem:[#allocation63_spill] sm:$0xff] %v8192_v49 }
  0xd3   : > { %4929 = vmatmul.mubr.msk.bf16.gmra.mxu0 %vm8098_vm14, %v8122_v36  ;;  %5022 = vmatmul.mubr.msk.bf16.gmra.mxu1 %vm7651_vm1, %v7704_v55 }
  0xd4   : > { %1525 = vmatprep.mubr.bf16.mxu0 %v8126_v62  ;;  %1927 = vmatprep.mubr.bf16.mxu1 %v7718_v17 }
  0xd5   : > { %6503 = vmatpush3.bf16.msra.mxu1 %v6827_v54  ;;  %v8196_v54 = vpack.c.bf16 %v7773_v37, %v7757_v8  ;;  %v10397_v8 = vrot.slane %v7786_v53, 7  ;;  %v6808_v37 = vld [vmem:[#allocation5 + $0x1f0] sm:$0xff]   ;;  %v10422_v53 = vld [vmem:[#allocation28_spill] sm:$0xff] }
  0xd6   : > { %6504 = vmatprep.subr.bf16.mxu1 %v6828_v21 }
  0xd7   : > { %10386 = vst [vmem:[#allocation64_spill] sm:$0xff] %v8196_v54  ;;  %v10399_v59 = vmov %v10397_v8 }
  0xd9   : > { %6505 = vmatpush3.bf16.msra.mxu1 %v6828_v21  ;;  %v10393_v21 = vmov %v10391_v56 }
  0xda   : > { %v792_v1 = vsel %vm10382_vm3, %v779_v45, %v10393_v21  ;;  %v789_v45 = vsel %vm10398_vm12, %v10397_v8, %v10396_v13  ;;  %v10410_v21 = vld [vmem:[#allocation19_spill] sm:$0xff]  ;;  %v10412_v13 = vld [vmem:[#allocation20_spill] sm:$0xff]  ;;  %v10413_v8 = vld [vmem:[#allocation21_spill] sm:$0xff] }
  0xdb   : > { %4932 = vmatmul.mubr.msk.bf16.gmra.mxu0 %vm8131_vm9, %v8159_v29  ;;  %5025 = vmatmul.mubr.msk.bf16.gmra.mxu1 %vm7791_vm0, %v7760_v24  ;;  %vm8201_vm0 = vmpackc.low %vm10273_vm5, %vm8155_vm10  ;;  %vm10411_vm12 = vnez %v10410_v21  ;;  %v6896_v21 = vld [vmem:[#allocation7 + $0x190] sm:$0xff]  }
  0xdc   : > { %1533 = vmatprep.mubr.bf16.mxu0 %v8163_v3  ;;  %1935 = vmatprep.mubr.bf16.mxu1 %v7779_v43  ;;  %v10388_v42 = vsel %vm8201_vm0, 4294967295, %v10387_v42  ;;  %vm10392_vm10 = vmmov %vm10382_vm3 }
  0xdd   : > { %10389 = vst [vmem:[#allocation65_spill] sm:$0xff] %v10388_v42  ;;  %v791_v7 = vsel %vm10392_vm10, %v10391_v56, %v10390_v41  ;;  %vm10401_vm10 = vmmov %vm10382_vm3  ;;  %vm750_vm3 = vcmp.gt.s32.totalorder %v538_v26, 0  ;;  %v6809_v56 = vld [vmem:[#allocation5 + $0x1b0] sm:$0xff]   ;;  %v6813_v26 = vld [vmem:[#allocation5 + $0x1e0] sm:$0xff]  }
  0xde   : > { %v8225_v25 = vpack.c.bf16 %v791_v7, %v792_v1  ;;  %v790_v47 = vsel %vm10401_vm10, %v10400_v12, %v10399_v59  ;;  %v10409_v7 = vld [vmem:[#allocation18_spill] sm:$0xff]  ;;  %v6811_v1 = vld [vmem:[#allocation5 + $0x1a8] sm:$0xff]   ;;  %vm10414_vm10 = vnez %v10413_v8  ;;  %v10416_v59 = vld [vmem:[#allocation24_spill] sm:$0xff] }
  0xdf   : > { %v8252_v23 = vpack.c.bf16 %v789_v45, %v790_v47  ;;  %v10415_v45 = vld [vmem:[#allocation23_spill] sm:$0xff]  ;;  %v6814_v12 = vld [vmem:[#allocation5 + $0x1a0] sm:$0xff]  }
  0xe0   : > { %10394 = vst [vmem:[#allocation66_spill] sm:$0xff] %v8225_v25  ;;  %v6815_v47 = vld [vmem:[#allocation5 + $0x1d8] sm:$0xff]  }
  0xe1   : > { %10402 = vst [vmem:[#allocation68_spill] sm:$0xff] %v8252_v23 }
  0xe3   : > { %4935 = vmatmul.mubr.msk.bf16.gmra.mxu0 %vm8168_vm8, %v8192_v49  ;;  %5028 = vmatmul.mubr.msk.bf16.gmra.mxu1 %vm7871_vm13, %v7875_v19 }
  0xe4   : > { %1541 = vmatprep.mubr.bf16.mxu0 %v8196_v54  ;;  %1943 = vmatprep.mubr.bf16.mxu1 %v7890_v31 }
  0xeb   : > { %4938 = vmatmul.mubr.msk.bf16.gmra.mxu0 %vm8201_vm0, %v8225_v25  ;;  %5031 = vmatmul.mubr.msk.bf16.gmra.mxu1 %vm7949_vm2, %v7937_v63  ;;  %vm8255_vm2 = vmpackc.low %vm10273_vm5, %vm750_vm3  ;;  %vm10417_vm3 = vnez %v10416_v59  ;;  %v6900_v59 = vld [vmem:[#allocation7 + $0x180] sm:$0xff]  }
  0xec   : > { %1549 = vmatprep.mubr.bf16.mxu0 %v8229_v27  ;;  %1951 = vmatprep.mubr.bf16.mxu1 %v7972_v6  ;;  %v10404_v33 = vsel %vm8255_vm2, 4294967295, %v10403_v33 }
  0xed   : > { %10405 = vst [vmem:[#allocation69_spill] sm:$0xff] %v10404_v33 }
  0xf3   : > { %4941 = vmatmul.mubr.msk.bf16.gmra.mxu0 %vm8255_vm2, %v8252_v23  ;;  %5034 = vmatmul.mubr.msk.bf16.gmra.mxu1 %vm8017_vm11, %v8021_v9 }
  0xf4   : > { %1959 = vmatprep.mubr.bf16.mxu1 %v8027_v20  ;;  %6458 = vmatprep.mubr.msk.bf16.mxu0 %vm7350_vm6, %v7343_v60  ;;  %v6810_v60 = vld [vmem:[#allocation5 + $0x1e8] sm:$0xff]  }
  0xfb   : > { %5037 = vmatmul.mubr.msk.bf16.gmra.mxu1 %vm8032_vm15, %v8058_v11  ;;  %6459 = vmatmul.mubr.msk.bf16.vlgmr.msra.gmra.mxu0 %vm7369_vm7, %v10407_v10 }
  0xfc   : > { %5851 = vmatpush3.bf16.msra.mxu0 %v6806_v35  ;;  %1967 = vmatprep.mubr.bf16.mxu1 %v8062_v39  ;;  %v6816_v35 = vld [vmem:[#allocation5 + $0x198] sm:$0xff]   ;;  %v10447_v39 = vrot.slane %v7857_v40, 1 }
  0xfd   : > { %6462 = vmatprep.mubr.msk.bf16.mxu0 %vm10411_vm12, %v10409_v7  ;;  %5852 = vmatprep.subr.bf16.mxu0 %v6808_v37  ;;  %v6818_v37 = vld [vmem:[#allocation5 + $0x1d0] sm:$0xff]  }
 0x100   : > { %5853 = vmatpush3.bf16.msra.mxu0 %v6809_v56  ;;  %v10418_v56 = vld [vmem:[#allocation25_spill] sm:$0xff] }
 0x101   : > { %5854 = vmatprep.subr.bf16.mxu0 %v6810_v60  ;;  %v10419_v60 = vld [vmem:[#allocation26_spill] sm:$0xff] }
 0x102   : > { %vm10420_vm6 = vnez %v10419_v60 }
 0x103   : > { %5040 = vmatmul.mubr.msk.bf16.gmra.mxu1 %vm8067_vm4, %v8089_v15  ;;  %6463 = vmatmul.mubr.msk.bf16.gmra.mxu0 %vm10414_vm10, %v10412_v13  ;;  %vm10423_vm4 = vnez %v10422_v53  ;;  %v10445_v15 = vld [vmem:[#allocation48_spill] sm:$0xff] }
 0x104   : > { %1975 = vmatprep.mubr.bf16.mxu1 %v8093_v22  ;;  %6466 = vmatprep.mubr.msk.bf16.mxu0 %vm10417_vm3, %v10415_v45  ;;  %v10428_v22 = vld [vmem:[#allocation33_spill] sm:$0xff] }
 0x105   : > { %5855 = vmatpush3.bf16.msra.mxu0 %v6811_v1  ;;  %v6819_v1 = vld [vmem:[#allocation5 + $0x190] sm:$0xff]   ;;  %vm10429_vm15 = vnez %v10428_v22 }
 0x106   : > { %5856 = vmatprep.subr.bf16.mxu0 %v6813_v26  ;;  %v6821_v26 = vld [vmem:[#allocation5 + $0x1c8] sm:$0xff]  }
 0x109   : > { %5857 = vmatpush3.bf16.msra.mxu0 %v6814_v12  ;;  %v6822_v12 = vld [vmem:[#allocation5 + $0x188] sm:$0xff]  }
 0x10a   : > { %5858 = vmatprep.subr.bf16.mxu0 %v6815_v47  ;;  %v6825_v47 = vld [vmem:[#allocation5 + $0x1c0] sm:$0xff]  }
 0x10b   : > { %5043 = vmatmul.mubr.msk.bf16.gmra.mxu1 %vm8098_vm14, %v8122_v36  ;;  %6467 = vmatmul.mubr.msk.bf16.gmra.mxu0 %vm10420_vm6, %v10418_v56  ;;  %v10425_v36 = vld [vmem:[#allocation30_spill] sm:$0xff] }
 0x10c   : > { %1983 = vmatprep.mubr.bf16.mxu1 %v8126_v62  ;;  %6470 = vmatprep.mubr.msk.bf16.mxu0 %vm10423_vm4, %v10421_v14  ;;  %vm10426_vm14 = vnez %v10425_v36  ;;  %v10427_v62 = vld [vmem:[#allocation34_spill] sm:$0xff] }
 0x10d   : > { %5859 = vmatpush3.bf16.msra.mxu0 %v6816_v35  ;;  %v6826_v35 = vld [vmem:[#allocation5 + $0x180] sm:$0xff]  }
 0x10e   : > { %5860 = vmatprep.subr.bf16.mxu0 %v6818_v37  ;;  %v10430_v37 = vld [vmem:[#allocation36_spill] sm:$0xff] }
 0x111   : > { %5861 = vmatpush3.bf16.msra.mxu0 %v6819_v1  ;;  %v10431_v1 = vld [vmem:[#allocation35_spill] sm:$0xff] }
 0x112   : > { %5862 = vmatprep.subr.bf16.mxu0 %v6821_v26  ;;  %v10433_v26 = vld [vmem:[#allocation37_spill] sm:$0xff] }
 0x113   : > { %5046 = vmatmul.mubr.msk.bf16.gmra.mxu1 %vm8131_vm9, %v8159_v29  ;;  %6471 = vmatmul.mubr.msk.bf16.gmra.mxu0 %vm10426_vm14, %v10424_v4  ;;  %vm10432_vm9 = vnez %v10431_v1  ;;  %v10442_v29 = vld [vmem:[#allocation45_spill] sm:$0xff] }
 0x114   : > { %1991 = vmatprep.mubr.bf16.mxu1 %v8163_v3  ;;  %6474 = vmatprep.mubr.msk.bf16.mxu0 %vm10429_vm15, %v10427_v62  ;;  %v10434_v3 = vld [vmem:[#allocation39_spill] sm:$0xff] }
 0x115   : > { %5863 = vmatpush3.bf16.msra.mxu0 %v6822_v12  ;;  %vm10435_vm11 = vnez %v10434_v3  ;;  %v10436_v12 = vld [vmem:[#allocation40_spill] sm:$0xff] }
 0x116   : > { %5864 = vmatprep.subr.bf16.mxu0 %v6825_v47  ;;  %v10437_v47 = vld [vmem:[#allocation41_spill] sm:$0xff] }
 0x117   : > { %vm10438_vm13 = vnez %v10437_v47 }
 0x119   : > { %5865 = vmatpush3.bf16.msra.mxu0 %v6826_v35  ;;  %v336_v35 = vadd.s32 240, %v7271_v18 }
 0x11b   : > { %5049 = vmatmul.mubr.msk.bf16.gmra.mxu1 %vm8168_vm8, %v8192_v49  ;;  %6475 = vmatmul.mubr.msk.bf16.gmra.mxu0 %vm10432_vm9, %v10430_v37  ;;  %vm10439_vm8 = vnez %v10302_v61  ;;  %v8333_v49 = vpack.c.bf16 %v6901_v0, %v7857_v40  ;;  %v552_v42 = vand.u32 15, %v336_v35  ;;  %v10458_v40 = vld [vmem:[#allocation49_spill] sm:$0xff] }
 0x11c   : > { %1999 = vmatprep.mubr.bf16.mxu1 %v8196_v54  ;;  %6478 = vmatprep.mubr.msk.bf16.mxu0 %vm10435_vm11, %v10433_v26  ;;  %v337_v54 = vadd.s32 248, %v7271_v18  ;;  %vm10448_vm11 = vcmp.lt.s32.totalorder %v7271_v18, 7 }
 0x11d   : > { %10440 = vst [vmem:[#allocation15_spill] sm:$0xff] %v8333_v49 }
 0x11e   : > { %v559_v30 = vand.u32 15, %v337_v54  ;;  %v10449_v54 = vld [vmem:[#allocation13_spill] sm:$0xff] }
 0x11f   : > { %v10450_v35 = vrot.slane %v10449_v54, 1 }
 0x120   : > { %vm946_vm9 = vcmp.lt.s32.totalorder %v559_v30, 15 }
 0x123   : > { %5052 = vmatmul.mubr.msk.bf16.gmra.mxu1 %vm8201_vm0, %v8225_v25  ;;  %6479 = vmatmul.mubr.msk.bf16.gmra.mxu0 %vm10438_vm13, %v10436_v12  ;;  %v978_v25 = vrot.slane %v6901_v0, 1  ;;  %vm10443_vm0 = vnez %v10442_v29  ;;  %vm752_vm13 = vcmp.gt.s32.totalorder %v552_v42, 0  ;;  %v10455_v42 = vmov 0 }
 0x124   : > { %2007 = vmatprep.mubr.bf16.mxu1 %v8229_v27  ;;  %6482 = vmatprep.mubr.msk.bf16.mxu0 %vm10439_vm8, %v7877_v48  ;;  %v10441_v27 = vld [vmem:[#allocation44_spill] sm:$0xff]  ;;  %vm10446_vm8 = vnez %v10445_v15 }
 0x125   : > { %v980_v0 = vsel %vm10448_vm11, %v10447_v39, %v978_v25 }
 0x12b   : > { %5055 = vmatmul.mubr.msk.bf16.gmra.mxu1 %vm8255_vm2, %v8252_v23  ;;  %6483 = vmatmul.mubr.msk.bf16.gmra.mxu0 %vm10443_vm0, %v10441_v27  ;;  %vm10451_vm2 = vmmov %vm10448_vm11  ;;  %v10452_v23 = vmov 0  ;;  %vm10462_vm11 = vnez %v10431_v1 }
 0x12c   : > { %2015 = vmatprep.mubr.bf16.mxu1 %v8333_v49  ;;  %6486 = vmatprep.mubr.msk.bf16.mxu0 %vm10446_vm8, %v10444_v2  ;;  %v1011_v33 = vsel %vm10451_vm2, %v978_v25, %v10450_v35  ;;  %vm8354_vm0 = vmpackc.low %vm10273_vm5, %vm752_vm13  ;;  %vm10460_vm13 = vnez %v10224_v51  ;;  %vm10461_vm2 = vnez %v10275_v28  ;;  %v6841_v28 = vld [vmem:[#allocation7 + $0x18] sm:$0xff]  }
 0x12d   : > { %v10453_v23 = vsel %vm8354_vm0, 4294967295, %v10452_v23  ;;  %v8358_v49 = vpack.c.bf16 %v1011_v33, %v980_v0  ;;  %vm8361_vm8 = vmpackc.low %vm946_vm9, %vm10273_vm5  ;;  %vm10459_vm5 = vnez %v10213_v32  ;;  %vm10463_vm9 = vnez %v10299_v58  ;;  %v6840_v58 = vld [vmem:[#allocation7 + $0xa8] sm:$0xff]  }
 0x12e   : > { %10454 = vst [vmem:[#allocation18_spill] sm:$0xff] %v10453_v23  ;;  %v10456_v42 = vsel %vm8361_vm8, 4294967295, %v10455_v42 }
 0x12f   : > { %10457 = vst [vmem:[#allocation19_spill] sm:$0xff] %v10456_v42  ;;  %v6836_v42 = vld [vmem:[#allocation7 + $0x60] sm:$0xff]  }
 0x133   : > { %5058 = vmatmul.mubr.msk.bf16.gmra.mxu1 %vm8354_vm0, %v10458_v40  ;;  %6487 = vmatmul.mubr.msk.bf16.gmra.mxu0 %vm8361_vm8, %v8358_v49 }
 0x134   : > { %2410 = vmatprep.mubr.bf16.mxu0 %v7444_v46  ;;  %6506 = vmatprep.mubr.msk.bf16.mxu1 %vm7369_vm7, %v10407_v10 }
 0x13b   : > { %v5594_v39 = vpop.f32.mrf.mxu0  ;;  %v6412_v30 = vpop.f32.mrf.mxu1  ;;  %5133 = vmatmul.mubr.msk.bf16.vlgmr.msra.gmra.mxu0 %vm10459_vm5, %v7528_v34  ;;  %6507 = vmatmul.mubr.msk.bf16.vlgmr.msra.gmra.mxu1 %vm10411_vm12, %v10409_v7  ;;  %vm10468_vm5 = vnez %v10442_v29 }
 0x13c   : > { %2418 = vmatprep.mubr.bf16.mxu0 %v7534_v38  ;;  %6510 = vmatprep.mubr.msk.bf16.mxu1 %vm10414_vm10, %v10412_v13 }
 0x13d   : > { %v5595_v46 = vpop.f32.mrf.mxu0  ;;  %v1592_v25 = vpop.f32.mrf.mxu1 }
 0x13e   : > { %v5596_v33 = vadd.f32 %v5595_v46, %v5594_v39 }
 0x13f   : > { %v5597_v10 = vpop.f32.mrf.mxu0  ;;  %v6413_v0 = vpop.f32.mrf.mxu1 }
 0x140   : > { %v8385_v54 = vadd.f32 %v5596_v33, %v1592_v25 }
 0x141   : > { %v5598_v35 = vpop.f32.mrf.mxu0  ;;  %v1595_v32 = vpop.f32.mrf.mxu1 }
 0x142   : > { %v5599_v34 = vadd.f32 %v5598_v35, %v5597_v10 }
 0x143   : > { %v5600_v41 = vpop.f32.mrf.mxu0  ;;  %v6416_v18 = vpop.f32.mrf.mxu1  ;;  %5136 = vmatmul.mubr.msk.bf16.gmra.mxu0 %vm10460_vm13, %v7618_v50  ;;  %6511 = vmatmul.mubr.msk.bf16.gmra.mxu1 %vm10417_vm3, %v10415_v45  ;;  %vm10467_vm13 = vnez %v10302_v61 }
 0x144   : > { %v8393_v38 = vadd.f32 %v5599_v34, %v1595_v32  ;;  %2426 = vmatprep.mubr.bf16.mxu0 %v7633_v5  ;;  %6514 = vmatprep.mubr.msk.bf16.mxu1 %vm10420_vm6, %v10418_v56 }
 0x145   : > { %v5601_v7 = vpop.f32.mrf.mxu0  ;;  %v1608_v13 = vpop.f32.mrf.mxu1 }
 0x146   : > { %v5602_v39 = vadd.f32 %v5601_v7, %v5600_v41 }
 0x147   : > { %v5603_v46 = vpop.f32.mrf.mxu0  ;;  %v6417_v25 = vpop.f32.mrf.mxu1 }
 0x148   : > { %v8399_v33 = vadd.f32 %v6412_v30, %v5602_v39 }
 0x149   : > { %v5604_v50 = vpop.f32.mrf.mxu0  ;;  %v1611_v10 = vpop.f32.mrf.mxu1 }
 0x14a   : > { %v5605_v35 = vadd.f32 %v5604_v50, %v5603_v46 }
 0x14b   : > { %v5606_v51 = vpop.f32.mrf.mxu0  ;;  %v6420_v45 = vpop.f32.mrf.mxu1  ;;  %5139 = vmatmul.mubr.msk.bf16.gmra.mxu0 %vm7651_vm1, %v7704_v55  ;;  %6515 = vmatmul.mubr.msk.bf16.gmra.mxu1 %vm10423_vm4, %v10421_v14  ;;  %vm10465_vm1 = vnez %v10437_v47 }
 0x14c   : > { %v8407_v32 = vadd.f32 %v6413_v0, %v5605_v35  ;;  %2434 = vmatprep.mubr.bf16.mxu0 %v7718_v17  ;;  %6518 = vmatprep.mubr.msk.bf16.mxu1 %vm10426_vm14, %v10424_v4 }
 0x14d   : > { %v5607_v5 = vpop.f32.mrf.mxu0  ;;  %v1624_v41 = vpop.f32.mrf.mxu1 }
 0x14e   : > { %v5608_v56 = vadd.f32 %v5607_v5, %v5606_v51 }
 0x14f   : > { %v5609_v30 = vpop.f32.mrf.mxu0  ;;  %v6421_v34 = vpop.f32.mrf.mxu1 }
 0x150   : > { %v8413_v7 = vadd.f32 %v5608_v56, %v1608_v13 }
 0x151   : > { %v5610_v55 = vpop.f32.mrf.mxu0  ;;  %v1627_v39 = vpop.f32.mrf.mxu1 }
 0x152   : > { %v5611_v46 = vadd.f32 %v5610_v55, %v5609_v30 }
 0x153   : > { %v5612_v50 = vpop.f32.mrf.mxu0  ;;  %v8415_v14 = vpop.f32.mrf.mxu1  ;;  %5142 = vmatmul.mubr.msk.bf16.gmra.mxu0 %vm10461_vm2, %v7760_v24  ;;  %6519 = vmatmul.mubr.msk.bf16.gmra.mxu1 %vm10429_vm15, %v10427_v62  ;;  %vm10464_vm2 = vnez %v10434_v3 }
 0x154   : > { %v8423_v17 = vadd.f32 %v5611_v46, %v1611_v10  ;;  %2442 = vmatprep.mubr.bf16.mxu0 %v7779_v43  ;;  %6522 = vmatprep.mubr.msk.bf16.mxu1 %vm10462_vm11, %v10430_v37 }
 0x155   : > { %v5613_v51 = vpop.f32.mrf.mxu0  ;;  %v1640_v4 = vpop.f32.mrf.mxu1 }
 0x156   : > { %v5614_v0 = vadd.f32 %v5613_v51, %v5612_v50 }
 0x157   : > { %v5615_v13 = vpop.f32.mrf.mxu0  ;;  %v8429_v35 = vpop.f32.mrf.mxu1 }
 0x158   : > { %v8431_v5 = vadd.f32 %v6416_v18, %v5614_v0 }
 0x159   : > { %v5616_v24 = vpop.f32.mrf.mxu0  ;;  %v8433_v56 = vpop.f32.mrf.mxu1 }
 0x15a   : > { %v5617_v62 = vadd.f32 %v5616_v24, %v5615_v13 }
 0x15b   : > { %v5618_v10 = vpop.f32.mrf.mxu0  ;;  %v8435_v30 = vpop.f32.mrf.mxu1  ;;  %5145 = vmatmul.mubr.msk.bf16.gmra.mxu0 %vm10463_vm9, %v7875_v19  ;;  %6523 = vmatmul.mubr.msk.bf16.gmra.mxu1 %vm10464_vm2, %v10433_v26  ;;  %vm10466_vm9 = vnez %v10321_v57 }
 0x15c   : > { %v8443_v43 = vadd.f32 %v6417_v25, %v5617_v62  ;;  %2450 = vmatprep.mubr.bf16.mxu0 %v7890_v31  ;;  %6526 = vmatprep.mubr.msk.bf16.mxu1 %vm10465_vm1, %v10436_v12 }
 0x15d   : > { %v5619_v18 = vpop.f32.mrf.mxu0  ;;  %v8449_v37 = vpop.f32.mrf.mxu1 }
 0x15e   : > { %v5620_v55 = vadd.f32 %v5619_v18, %v5618_v10 }
 0x15f   : > { %v5621_v46 = vpop.f32.mrf.mxu0  ;;  %v8451_v50 = vpop.f32.mrf.mxu1 }
 0x160   : > { %v8453_v19 = vadd.f32 %v5620_v55, %v1624_v41 }
 0x161   : > { %v5622_v51 = vpop.f32.mrf.mxu0  ;;  %v8455_v0 = vpop.f32.mrf.mxu1 }
 0x162   : > { %v5623_v26 = vadd.f32 %v5622_v51, %v5621_v46 }
 0x163   : > { %v5624_v25 = vpop.f32.mrf.mxu0  ;;  %v8457_v13 = vpop.f32.mrf.mxu1  ;;  %5148 = vmatmul.mubr.msk.bf16.gmra.mxu0 %vm10466_vm9, %v7937_v63  ;;  %6527 = vmatmul.mubr.msk.bf16.gmra.mxu1 %vm10467_vm13, %v7877_v48  ;;  %vm10469_vm9 = vnez %v10338_v44 }
 0x164   : > { %v8465_v31 = vadd.f32 %v5623_v26, %v1627_v39  ;;  %2458 = vmatprep.mubr.bf16.mxu0 %v7972_v6  ;;  %6530 = vmatprep.mubr.msk.bf16.mxu1 %vm10468_vm5, %v10441_v27  ;;  %vm10470_vm5 = vnez %v10445_v15  ;;  %v6829_v6 = vld [vmem:[#allocation7 + $0x78] sm:$0xff]  }
 0x165   : > { %v5625_v12 = vpop.f32.mrf.mxu0  ;;  %v8471_v41 = vpop.f32.mrf.mxu1  ;;  %5986 = vmatprep.subr.bf16.mxu1 %v6829_v6  ;;  %v6833_v6 = vld [vmem:[#allocation7 + $0x68] sm:$0xff]  }
 0x166   : > { %v5626_v24 = vadd.f32 %v5625_v12, %v5624_v25 }
 0x167   : > { %v5627_v62 = vpop.f32.mrf.mxu0  ;;  %v8473_v10 = vpop.f32.mrf.mxu1 }
 0x168   : > { %v8475_v63 = vadd.f32 %v6420_v45, %v5626_v24  ;;  %v6830_v45 = vld [vmem:[#allocation7 + $0x38] sm:$0xff]  }
 0x169   : > { %v5628_v18 = vpop.f32.mrf.mxu0  ;;  %v8477_v55 = vpop.f32.mrf.mxu1  ;;  %5987 = vmatpush3.bf16.msra.mxu1 %v6830_v45  ;;  %v6834_v45 = vld [vmem:[#allocation7 + $0xb8] sm:$0xff]  }
 0x16a   : > { %v5629_v48 = vadd.f32 %v5628_v18, %v5627_v62  ;;  %6538 = vmatprep.subr.bf16.mxu0 %v6834_v45 }
 0x16b   : > { %v5630_v39 = vpop.f32.mrf.mxu0  ;;  %v8479_v46 = vpop.f32.mrf.mxu1  ;;  %5151 = vmatmul.mubr.msk.bf16.gmra.mxu0 %vm10469_vm9, %v8021_v9  ;;  %6531 = vmatmul.mubr.msk.bf16.gmra.mxu1 %vm10470_vm5, %v10444_v2  ;;  %v6831_v2 = vld [vmem:[#allocation7 + $0x70] sm:$0xff]  }
 0x16c   : > { %v8487_v27 = vadd.f32 %v6421_v34, %v5629_v48  ;;  %2466 = vmatprep.mubr.bf16.mxu0 %v8027_v20  ;;  %6534 = vmatprep.mubr.msk.bf16.mxu1 %vm8361_vm8, %v8358_v49  ;;  %v6832_v34 = vld [vmem:[#allocation7 + $0x30] sm:$0xff]   ;;  %vm10471_vm8 = vnez %v10341_v16 }
 0x16d   : > { %v5631_v51 = vpop.f32.mrf.mxu0  ;;  %v8493_v26 = vpop.f32.mrf.mxu1  ;;  %5988 = vmatprep.subr.bf16.mxu1 %v6831_v2  ;;  %6539 = vmatpush3.bf16.msra.mxu0 %v6834_v45  ;;  %v6837_v16 = vld [vmem:[#allocation7 + $0xb0] sm:$0xff]  }
 0x16e   : > { %v5632_v25 = vadd.f32 %v5631_v51, %v5630_v39  ;;  %5989 = vmatpush3.bf16.msra.mxu1 %v6832_v34  ;;  %v10472_v39 = vmov 0   ;;  %v10473_v51 = vld [vmem:[#allocation52_spill] sm:$0xff]  ;;  %6540 = vmatprep.subr.bf16.mxu0 %v6837_v16  ;;  %v10474_v45 = vld [vmem:[#allocation54_spill] sm:$0xff] }
 0x16f   : > { %v5633_v9 = vpop.f32.mrf.mxu0  ;;  %v8495_v12 = vpop.f32.mrf.mxu1  ;;  %5990 = vmatprep.subr.bf16.mxu1 %v6833_v6 }
 0x170   : > { %v8497_v24 = vadd.f32 %v5632_v25, %v1640_v4  ;;  %v6835_v25 = vld [vmem:[#allocation7 + $0x28] sm:$0xff]  }
 0x171   : > { %v5634_v62 = vpop.f32.mrf.mxu0  ;;  %v8499_v20 = vpop.f32.mrf.mxu1  ;;  %6541 = vmatpush3.bf16.msra.mxu0 %v6837_v16 }
 0x172   : > { %v5635_v18 = vadd.f32 %v5634_v62, %v5633_v9  ;;  %5991 = vmatpush3.bf16.msra.mxu1 %v6835_v25  ;;  %v10475_v25 = vld [vmem:[#allocation53_spill] sm:$0xff]  ;;  %6542 = vmatprep.subr.bf16.mxu0 %v6840_v58 }
 0x173   : > { %v5636_v49 = vpop.f32.mrf.mxu0  ;;  %v8501_v48 = vpop.f32.mrf.mxu1  ;;  %5154 = vmatmul.mubr.msk.bf16.gmra.mxu0 %vm10471_vm8, %v8058_v11  ;;  %6535 = vmatmul.mubr.bf16.gmra.mxu1 %v10472_v39  ;;  %vm10476_vm8 = vnez %v10475_v25  ;;  %v6842_v25 = vld [vmem:[#allocation7 + $0x50] sm:$0xff]  }
 0x174   : > { %v8508_v4 = vadd.f32 %v5635_v18, %v8433_v56  ;;  %2474 = vmatprep.mubr.bf16.mxu0 %v10473_v51  ;;  %3316 = vmatprep.mubr.bf16.mxu1 %v10472_v39  ;;  %v6838_v18 = vld [vmem:[#allocation7 + $0x20] sm:$0xff]  }
 0x175   : > { %v5637_v9 = vpop.f32.mrf.mxu0  ;;  %v8512_v2 = vpop.f32.mrf.mxu1  ;;  %5992 = vmatprep.subr.bf16.mxu1 %v6836_v42  ;;  %6543 = vmatpush3.bf16.msra.mxu0 %v6840_v58 }
 0x176   : > { %v5638_v34 = vadd.f32 %v5637_v9, %v5636_v49  ;;  %5993 = vmatpush3.bf16.msra.mxu1 %v6838_v18  ;;  %v6839_v9 = vld [vmem:[#allocation7 + $0x58] sm:$0xff]  }
 0x177   : > { %v5639_v11 = vpop.f32.mrf.mxu0  ;;  %v8514_v62 = vpop.f32.mrf.mxu1  ;;  %5994 = vmatprep.subr.bf16.mxu1 %v6839_v9 }
 0x178   : > { %v8517_v56 = vadd.f32 %v8415_v14, %v5638_v34  ;;  %v10477_v34 = vld [vmem:[#allocation55_spill] sm:$0xff] }
 0x179   : > { %v5640_v51 = vpop.f32.mrf.mxu0  ;;  %v8519_v44 = vpop.f32.mrf.mxu1 }
 0x17a   : > { %v5641_v57 = vadd.f32 %v5640_v51, %v5639_v11  ;;  %5995 = vmatpush3.bf16.msra.mxu1 %v6841_v28 }
 0x17b   : > { %v5642_v49 = vpop.f32.mrf.mxu0  ;;  %v5730_v6 = vpop.f32.mrf.mxu1  ;;  %5157 = vmatmul.mubr.msk.bf16.gmra.mxu0 %vm10476_vm8, %v10474_v45  ;;  %v6843_v45 = vld [vmem:[#allocation7 + $0xa0] sm:$0xff]   ;;  %5996 = vmatprep.subr.bf16.mxu1 %v6842_v25 }
 0x17c   : > { %v8525_v14 = vadd.f32 %v8429_v35, %v5641_v57  ;;  %2482 = vmatprep.mubr.bf16.mxu0 %v10477_v34  ;;  %v6844_v35 = vld [vmem:[#allocation7 + $0x10] sm:$0xff]   ;;  %6544 = vmatprep.subr.bf16.mxu0 %v6843_v45 }
 0x17d   : > { %v5643_v52 = vpop.f32.mrf.mxu0  ;;  %v5731_v42 = vpop.f32.mrf.mxu1  ;;  %6545 = vmatpush3.bf16.msra.mxu0 %v6843_v45 }
 0x17e   : > { %v5644_v11 = vadd.f32 %v5643_v52, %v5642_v49  ;;  %v5732_v16 = vadd.f32 %v5731_v42, %v5730_v6  ;;  %5997 = vmatpush3.bf16.msra.mxu1 %v6844_v35  ;;  %v10478_v49 = vld [vmem:[#allocation57_spill] sm:$0xff]  ;;  %v10479_v6 = vld [vmem:[#allocation56_spill] sm:$0xff]  ;;  %v6846_v42 = vld [vmem:[#allocation7 + $0x98] sm:$0xff]  }
 0x17f   : > { %v5645_v18 = vpop.f32.mrf.mxu0  ;;  %v5733_v51 = vpop.f32.mrf.mxu1  ;;  %vm10480_vm8 = vnez %v10479_v6  ;;  %6546 = vmatprep.subr.bf16.mxu0 %v6846_v42  ;;  %v6849_v6 = vld [vmem:[#allocation7 + $0x90] sm:$0xff]  }
 0x180   : > { %v8529_v15 = vadd.f32 %v5644_v11, %v8449_v37  ;;  %v8532_v57 = vadd.f32 %v5732_v16, %v8385_v54  ;;  %v6845_v37 = vld [vmem:[#allocation7 + $0x48] sm:$0xff]   ;;  %v10481_v11 = vld [vmem:[#allocation58_spill] sm:$0xff] }
 0x181   : > { %v5646_v34 = vpop.f32.mrf.mxu0  ;;  %v5734_v29 = vpop.f32.mrf.mxu1  ;;  %v6847_v16 = vld [vmem:[#allocation7 + $0x8] sm:$0xff]   ;;  %5998 = vmatprep.subr.bf16.mxu1 %v6845_v37  ;;  %6547 = vmatpush3.bf16.msra.mxu0 %v6846_v42 }
 0x182   : > { %v5647_v9 = vadd.f32 %v5646_v34, %v5645_v18  ;;  %v5735_v52 = vadd.f32 %v5734_v29, %v5733_v51  ;;  %5999 = vmatpush3.bf16.msra.mxu1 %v6847_v16  ;;  %6548 = vmatprep.subr.bf16.mxu0 %v6849_v6  ;;  %v10482_v16 = vld [vmem:[#allocation60_spill] sm:$0xff] }
 0x183   : > { %v5648_v28 = vpop.f32.mrf.mxu0  ;;  %v5736_v58 = vpop.f32.mrf.mxu1  ;;  %5160 = vmatmul.mubr.msk.bf16.gmra.mxu0 %vm10480_vm8, %v10478_v49  ;;  %v6848_v49 = vld [vmem:[#allocation7 + $0x40] sm:$0xff]  }
 0x184   : > { %v8538_v54 = vadd.f32 %v5647_v9, %v8455_v0  ;;  %2490 = vmatprep.mubr.bf16.mxu0 %v10481_v11  ;;  %v8542_v25 = vadd.f32 %v5735_v52, %v8393_v38  ;;  %v6850_v38 = vld [vmem:[#allocation7] sm:$0xff]   ;;  %6000 = vmatprep.subr.bf16.mxu1 %v6848_v49 }
 0x185   : > { %v5649_v29 = vpop.f32.mrf.mxu0  ;;  %v5737_v18 = vpop.f32.mrf.mxu1  ;;  %6549 = vmatpush3.bf16.msra.mxu0 %v6849_v6 }
 0x186   : > { %v5650_v51 = vadd.f32 %v5649_v29, %v5648_v28  ;;  %v5738_v45 = vadd.f32 %v5737_v18, %v5736_v58  ;;  %6001 = vmatpush3.bf16.msra.mxu1 %v6850_v38  ;;  %v10483_v29 = vld [vmem:[#allocation59_spill] sm:$0xff] }
 0x187   : > { %v5651_v35 = vpop.f32.mrf.mxu0  ;;  %v5739_v34 = vpop.f32.mrf.mxu1  ;;  %vm10484_vm8 = vnez %v10483_v29 }
 0x188   : > { %v8545_v0 = vadd.f32 %v8435_v30, %v5650_v51  ;;  %v8548_v9 = vadd.f32 %v5738_v45, %v8399_v33  ;;  %v6851_v30 = vld [vmem:[#allocation7 + $0x88] sm:$0xff]  }
 0x189   : > { %v5652_v52 = vpop.f32.mrf.mxu0  ;;  %v5740_v11 = vpop.f32.mrf.mxu1  ;;  %v10485_v33 = vld [vmem:[#allocation61_spill] sm:$0xff]  ;;  %3317 = vmatmul.mubr.bf16.vlgmr.msra.gmra.mxu1 %v10472_v39  ;;  %6550 = vmatprep.subr.bf16.mxu0 %v6851_v30 }
 0x18a   : > { %v5653_v37 = vadd.f32 %v5652_v52, %v5651_v35  ;;  %v5741_v28 = vadd.f32 %v5740_v11, %v5739_v34  ;;  %6551 = vmatpush3.bf16.msra.mxu0 %v6851_v30  ;;  %v6852_v11 = vld [vmem:[#allocation7 + $0x80] sm:$0xff]  }
 0x18b   : > { %v5654_v58 = vpop.f32.mrf.mxu0  ;;  %v5742_v42 = vpop.f32.mrf.mxu1  ;;  %5163 = vmatmul.mubr.msk.bf16.gmra.mxu0 %vm10484_vm8, %v10482_v16  ;;  %6552 = vmatprep.subr.bf16.mxu0 %v6852_v11  ;;  %v10489_v30 = vld [vmem:[#allocation64_spill] sm:$0xff] }
 0x18c   : > { %v8554_v18 = vadd.f32 %v8451_v50, %v5653_v37  ;;  %2498 = vmatprep.mubr.bf16.mxu0 %v10485_v33  ;;  %v8558_v51 = vadd.f32 %v5741_v28, %v8407_v32 }
 0x18d   : > { %v5655_v45 = vpop.f32.mrf.mxu0  ;;  %v5743_v35 = vpop.f32.mrf.mxu1 }
 0x18e   : > { %v5656_v6 = vadd.f32 %v5655_v45, %v5654_v58  ;;  %v5744_v34 = vadd.f32 %v5743_v35, %v5742_v42  ;;  %v10486_v58 = vld [vmem:[#allocation63_spill] sm:$0xff]  ;;  %v10487_v42 = vld [vmem:[#allocation62_spill] sm:$0xff]  ;;  %6553 = vmatpush3.bf16.msra.mxu0 %v6852_v11  ;;  %v10491_v11 = vld [vmem:[#allocation65_spill] sm:$0xff] }
 0x18f   : > { %v5657_v49 = vpop.f32.mrf.mxu0  ;;  %v5745_v38 = vpop.f32.mrf.mxu1  ;;  %vm10488_vm8 = vnez %v10487_v42 }
 0x190   : > { %v8562_v52 = vadd.f32 %v5656_v6, %v8471_v41  ;;  %v8565_v50 = vadd.f32 %v5744_v34, %v8413_v7 }
 0x191   : > { %v5658_v37 = vpop.f32.mrf.mxu0  ;;  %v5746_v32 = vpop.f32.mrf.mxu1 }
 0x192   : > { %v8567_v28 = vadd.f32 %v5658_v37, %v5657_v49  ;;  %v5747_v16 = vadd.f32 %v5746_v32, %v5745_v38 }
 0x193   : > { %v5660_v33 = vpop.f32.mrf.mxu0  ;;  %v5748_v29 = vpop.f32.mrf.mxu1  ;;  %5166 = vmatmul.mubr.msk.bf16.gmra.mxu0 %vm10488_vm8, %v10486_v58  ;;  %vm10492_vm8 = vnez %v10491_v11 }
 0x194   : > { %2506 = vmatprep.mubr.bf16.mxu0 %v10489_v30  ;;  %v8574_v41 = vadd.f32 %v5747_v16, %v8423_v17  ;;  %v10490_v16 = vld [vmem:[#allocation66_spill] sm:$0xff] }
 0x195   : > { %v5661_v7 = vpop.f32.mrf.mxu0  ;;  %v5749_v45 = vpop.f32.mrf.mxu1 }
 0x196   : > { %v5662_v35 = vadd.f32 %v5661_v7, %v5660_v33  ;;  %v5750_v6 = vadd.f32 %v5749_v45, %v5748_v29  ;;  %v10493_v33 = vld [vmem:[#allocation67_spill] sm:$0xff] }
 0x197   : > { %v5663_v34 = vpop.f32.mrf.mxu0  ;;  %v5751_v49 = vpop.f32.mrf.mxu1 }
 0x198   : > { %v8577_v38 = vadd.f32 %v8457_v13, %v5662_v35  ;;  %v8580_v37 = vadd.f32 %v5750_v6, %v8431_v5 }
 0x199   : > { %v5664_v32 = vpop.f32.mrf.mxu0  ;;  %v5752_v58 = vpop.f32.mrf.mxu1 }
 0x19a   : > { %v5665_v42 = vadd.f32 %v5664_v32, %v5663_v34  ;;  %v5753_v30 = vadd.f32 %v5752_v58, %v5751_v49 }
 0x19b   : > { %v5666_v61 = vpop.f32.mrf.mxu0  ;;  %v5754_v17 = vpop.f32.mrf.mxu1  ;;  %5169 = vmatmul.mubr.msk.bf16.gmra.mxu0 %vm10492_vm8, %v10490_v16 }
 0x19c   : > { %v8586_v29 = vadd.f32 %v8473_v10, %v5665_v42  ;;  %2514 = vmatprep.mubr.bf16.mxu0 %v10493_v33  ;;  %v8590_v13 = vadd.f32 %v5753_v30, %v8443_v43  ;;  %v10494_v30 = vld [vmem:[#allocation68_spill] sm:$0xff]  ;;  %v10495_v33 = vld [vmem:[#allocation69_spill] sm:$0xff] }
 0x19d   : > { %v5667_v5 = vpop.f32.mrf.mxu0  ;;  %v5755_v7 = vpop.f32.mrf.mxu1  ;;  %vm10496_vm8 = vnez %v10495_v33 }
 0x19e   : > { %v5668_v45 = vadd.f32 %v5667_v5, %v5666_v61  ;;  %v5756_v35 = vadd.f32 %v5755_v7, %v5754_v17  ;;  %v10497_v61 = vld [vmem:[#allocation15_spill] sm:$0xff] }
 0x19f   : > { %v8592_v6 = vpop.f32.mrf.mxu0  ;;  %v5757_v34 = vpop.f32.mrf.mxu1 }
 0x1a0   : > { %v8595_v49 = vadd.f32 %v5668_v45, %v8493_v26  ;;  %v8598_v32 = vadd.f32 %v5756_v35, %v8453_v19 }
 0x1a1   : > { %v8600_v10 = vpop.f32.mrf.mxu0  ;;  %v5758_v42 = vpop.f32.mrf.mxu1 }
 0x1a2   : > { %v5759_v58 = vadd.f32 %v5758_v42, %v5757_v34 }
 0x1a3   : > { %v5672_v16 = vpop.f32.mrf.mxu0  ;;  %v5760_v43 = vpop.f32.mrf.mxu1  ;;  %5172 = vmatmul.mubr.msk.bf16.gmra.mxu0 %vm10496_vm8, %v10494_v30 }
 0x1a4   : > { %2522 = vmatprep.mubr.bf16.mxu0 %v10497_v61  ;;  %v8607_v17 = vadd.f32 %v5759_v58, %v8465_v31 }
 0x1a5   : > { %v5673_v26 = vpop.f32.mrf.mxu0  ;;  %v5761_v5 = vpop.f32.mrf.mxu1 }
 0x1a6   : > { %v5674_v7 = vadd.f32 %v5673_v26, %v5672_v16  ;;  %v5762_v19 = vadd.f32 %v5761_v5, %v5760_v43 }
 0x1a7   : > { %v5675_v45 = vpop.f32.mrf.mxu0  ;;  %v5763_v35 = vpop.f32.mrf.mxu1 }
 0x1a8   : > { %v8610_v11 = vadd.f32 %v8479_v46, %v5674_v7  ;;  %v8613_v34 = vadd.f32 %v5762_v19, %v8475_v63 }
 0x1a9   : > { %v5676_v42 = vpop.f32.mrf.mxu0  ;;  %v5764_v33 = vpop.f32.mrf.mxu1 }
 0x1aa   : > { %v5677_v30 = vadd.f32 %v5676_v42, %v5675_v45  ;;  %v5765_v47 = vadd.f32 %v5764_v33, %v5763_v35 }
 0x1ab   : > { %v5678_v61 = vpop.f32.mrf.mxu0  ;;  %v5766_v3 = vpop.f32.mrf.mxu1  ;;  %5175 = vmatmul.mubr.msk.bf16.gmra.mxu0 %vm8354_vm0, %v10458_v40 }
 0x1ac   : > { %v8619_v31 = vadd.f32 %v8495_v12, %v5677_v30  ;;  %2530 = vmatprep.mubr.bf16.mxu0 %v10472_v39  ;;  %v8623_v46 = vadd.f32 %v5765_v47, %v8487_v27 }
 0x1ad   : > { %v5679_v63 = vpop.f32.mrf.mxu0  ;;  %v5767_v58 = vpop.f32.mrf.mxu1 }
 0x1ae   : > { %v5680_v16 = vadd.f32 %v5679_v63, %v5678_v61  ;;  %v5768_v43 = vadd.f32 %v5767_v58, %v5766_v3 }
 0x1af   : > { %v8625_v26 = vpop.f32.mrf.mxu0  ;;  %v5769_v33 = vpop.f32.mrf.mxu1 }
 0x1b0   : > { %v8628_v5 = vadd.f32 %v5680_v16, %v8512_v2  ;;  %v8631_v40 = vadd.f32 %v5768_v43, %v8497_v24 }
 0x1b1   : > { %v8633_v12 = vpop.f32.mrf.mxu0  ;;  %v5770_v7 = vpop.f32.mrf.mxu1 }
 0x1b2   : > { %v5771_v19 = vadd.f32 %v5770_v7, %v5769_v33 }
 0x1b3   : > { %v5684_v45 = vpop.f32.mrf.mxu0  ;;  %v5772_v47 = vpop.f32.mrf.mxu1  ;;  %2531 = vmatmul.mubr.bf16.gmra.mxu0 %v10472_v39 }
 0x1b4   : > { %v8637_v27 = vadd.f32 %v5771_v19, %v8508_v4  ;;  %6554 = vmatprep.mubr.bf16.mxu0 %v10472_v39 }
 0x1b5   : > { %v5685_v3 = vpop.f32.mrf.mxu0  ;;  %v5773_v35 = vpop.f32.mrf.mxu1 }
 0x1b6   : > { %v8640_v2 = vadd.f32 %v5685_v3, %v5684_v45  ;;  %v5774_v42 = vadd.f32 %v5773_v35, %v5772_v47 }
 0x1b7   : > { %v8642_v24 = vpop.f32.mrf.mxu0  ;;  %v5775_v30 = vpop.f32.mrf.mxu1 }
 0x1b8   : > { %v1954_v61 = vadd.f32 %v5774_v42, %v8517_v56 }
 0x1b9   : > { %v8645_v63 = vpop.f32.mrf.mxu0  ;;  %v5776_v58 = vpop.f32.mrf.mxu1 }
 0x1ba   : > { %v5777_v16 = vadd.f32 %v5776_v58, %v5775_v30 }
 0x1bb   : > { %v5778_v43 = vpop.f32.mrf.mxu1  ;;  %v6460_v33 = vpop.f32.mrf.mxu0 }
 0x1bc   : > { %v8648_v4 = vadd.f32 %v6460_v33, %v8548_v9  ;;  %v1957_v7 = vadd.f32 %v5777_v16, %v8525_v14 }
 0x1bd   : > { %v5779_v19 = vpop.f32.mrf.mxu1  ;;  %v2058_v45 = vpop.f32.mrf.mxu0 }
 0x1be   : > { %v5780_v3 = vadd.f32 %v5779_v19, %v5778_v43  ;;  %v8652_v47 = vadd.f32 %v2058_v45, %v8532_v57 }
 0x1bf   : > { %v5781_v35 = vpop.f32.mrf.mxu1  ;;  %v6461_v39 = vpop.f32.mrf.mxu0 }
 0x1c0   : > { %v8655_v56 = vadd.f32 %v6461_v39, %v8558_v51  ;;  %v1962_v42 = vadd.f32 %v5780_v3, %v8529_v15 }
 0x1c1   : > { %v5782_v30 = vpop.f32.mrf.mxu1  ;;  %v8658_v58 = vpop.f32.mrf.mxu0 }
 0x1c2   : > { %v5783_v9 = vadd.f32 %v5782_v30, %v5781_v35 }
 0x1c3   : > { %v5784_v33 = vpop.f32.mrf.mxu1  ;;  %v6464_v23 = vpop.f32.mrf.mxu0 }
 0x1c4   : > { %v8661_v14 = vadd.f32 %v6464_v23, %v8580_v37  ;;  %v8664_v16 = vadd.f32 %v5783_v9, %v8538_v54 }
 0x1c5   : > { %v5785_v57 = vpop.f32.mrf.mxu1  ;;  %v2074_v43 = vpop.f32.mrf.mxu0 }
 0x1c6   : > { %v5786_v19 = vadd.f32 %v5785_v57, %v5784_v33  ;;  %v8667_v39 = vadd.f32 %v2074_v43, %v8565_v50 }
 0x1c7   : > { %v5787_v51 = vpop.f32.mrf.mxu1  ;;  %v6465_v15 = vpop.f32.mrf.mxu0 }
 0x1c8   : > { %v8670_v45 = vadd.f32 %v6465_v15, %v8590_v13  ;;  %v1970_v3 = vadd.f32 %v5786_v19, %v8545_v0 }
 0x1c9   : > { %v5788_v35 = vpop.f32.mrf.mxu1  ;;  %v8673_v30 = vpop.f32.mrf.mxu0 }
 0x1ca   : > { %v5789_v23 = vadd.f32 %v5788_v35, %v5787_v51 }
 0x1cb   : > { %v5790_v37 = vpop.f32.mrf.mxu1  ;;  %v6468_v54 = vpop.f32.mrf.mxu0 }
 0x1cc   : > { %v8676_v9 = vadd.f32 %v6468_v54, %v8613_v34  ;;  %v1973_v33 = vadd.f32 %v5789_v23, %v8554_v18  ;;  %v1676_v34 = vadd.f32 %v8567_v28, %v8477_v55 }
 0x1cd   : > { %v5791_v50 = vpop.f32.mrf.mxu1  ;;  %v2090_v57 = vpop.f32.mrf.mxu0 }
 0x1ce   : > { %v5792_v43 = vadd.f32 %v5791_v50, %v5790_v37  ;;  %v8680_v1 = vadd.f32 %v2090_v57, %v8598_v32 }
 0x1cf   : > { %v5793_v13 = vpop.f32.mrf.mxu1  ;;  %v6469_v15 = vpop.f32.mrf.mxu0 }
 0x1d0   : > { %v8683_v0 = vadd.f32 %v6469_v15, %v8623_v46  ;;  %v1978_v19 = vadd.f32 %v5792_v43, %v8562_v52 }
 0x1d1   : > { %v5794_v51 = vpop.f32.mrf.mxu1  ;;  %v8686_v35 = vpop.f32.mrf.mxu0 }
 0x1d2   : > { %v5795_v18 = vadd.f32 %v5794_v51, %v5793_v13 }
 0x1d3   : > { %v5796_v23 = vpop.f32.mrf.mxu1  ;;  %v6472_v54 = vpop.f32.mrf.mxu0 }
 0x1d4   : > { %v8690_v37 = vadd.f32 %v6472_v54, %v1954_v61  ;;  %v8692_v32 = vadd.f32 %v5795_v18, %v1676_v34 }
 0x1d5   : > { %v5797_v50 = vpop.f32.mrf.mxu1  ;;  %v2106_v57 = vpop.f32.mrf.mxu0 }
 0x1d6   : > { %10498 = vst [vmem:[#allocation20_spill] sm:$0xff] %v8692_v32  ;;  %v5798_v22 = vadd.f32 %v5797_v50, %v5796_v23  ;;  %v8695_v46 = vadd.f32 %v2106_v57, %v8631_v40  ;;  %v5671_v40 = vadd.f32 %v8600_v10, %v8592_v6 }
 0x1d7   : > { %v5799_v52 = vpop.f32.mrf.mxu1  ;;  %v6473_v43 = vpop.f32.mrf.mxu0 }
 0x1d8   : > { %v8697_v15 = vadd.f32 %v6473_v43, %v1957_v7  ;;  %v1986_v36 = vadd.f32 %v5798_v22, %v8577_v38 }
 0x1d9   : > { %v5800_v55 = vpop.f32.mrf.mxu1  ;;  %v8700_v28 = vpop.f32.mrf.mxu0 }
 0x1da   : > { %v5801_v13 = vadd.f32 %v5800_v55, %v5799_v52 }
 0x1db   : > { %v5802_v61 = vpop.f32.mrf.mxu1  ;;  %v6476_v51 = vpop.f32.mrf.mxu0 }
 0x1dc   : > { %v8702_v34 = vadd.f32 %v6476_v51, %v1970_v3  ;;  %v1989_v18 = vadd.f32 %v5801_v13, %v8586_v29  ;;  %v1692_v3 = vadd.f32 %v5671_v40, %v8499_v20 }
 0x1dd   : > { %v5803_v23 = vpop.f32.mrf.mxu1  ;;  %v2122_v54 = vpop.f32.mrf.mxu0 }
 0x1de   : > { %v5804_v50 = vadd.f32 %v5803_v23, %v5802_v61  ;;  %v8707_v7 = vadd.f32 %v2122_v54, %v1962_v42 }
 0x1df   : > { %v5805_v57 = vpop.f32.mrf.mxu1  ;;  %v6477_v22 = vpop.f32.mrf.mxu0 }
 0x1e0   : > { %v8709_v38 = vadd.f32 %v6477_v22, %v1973_v33  ;;  %v1994_v52 = vadd.f32 %v5804_v50, %v8595_v49 }
 0x1e1   : > { %v5806_v43 = vpop.f32.mrf.mxu1  ;;  %v8712_v55 = vpop.f32.mrf.mxu0 }
 0x1e2   : > { %v5807_v29 = vadd.f32 %v5806_v43, %v5805_v57 }
 0x1e3   : > { %v5808_v13 = vpop.f32.mrf.mxu1  ;;  %v6480_v51 = vpop.f32.mrf.mxu0 }
 0x1e4   : > { %v8715_v32 = vadd.f32 %v6480_v51, %v1986_v36  ;;  %v8717_v6 = vadd.f32 %v5807_v29, %v1692_v3  ;;  %v6853_v29 = vld [vmem:[#allocation7 + $0x138] sm:$0xff]   ;;  %v5683_v51 = vadd.f32 %v8633_v12, %v8625_v26 }
 0x1e5   : > { %v5809_v10 = vpop.f32.mrf.mxu1  ;;  %v2138_v42 = vpop.f32.mrf.mxu0  ;;  %6122 = vmatprep.subr.bf16.mxu0 %v6853_v29 }
 0x1e6   : > { %v5810_v61 = vadd.f32 %v5809_v10, %v5808_v13  ;;  %v8719_v23 = vadd.f32 %v2138_v42, %v1978_v19 }
 0x1e7   : > { %v5811_v33 = vpop.f32.mrf.mxu1  ;;  %v6481_v54 = vpop.f32.mrf.mxu0 }
 0x1e8   : > { %v8721_v49 = vadd.f32 %v6481_v54, %v1989_v18  ;;  %v2002_v50 = vadd.f32 %v5810_v61, %v8610_v11 }
 0x1e9   : > { %v5812_v22 = vpop.f32.mrf.mxu1  ;;  %v8724_v20 = vpop.f32.mrf.mxu0 }
 0x1ea   : > { %v5813_v40 = vadd.f32 %v5812_v22, %v5811_v33 }
 0x1eb   : > { %v5814_v57 = vpop.f32.mrf.mxu1  ;;  %v6484_v36 = vpop.f32.mrf.mxu0 }
 0x1ec   : > { %v8726_v43 = vadd.f32 %v6484_v36, %v2002_v50  ;;  %v2005_v3 = vadd.f32 %v5813_v40, %v8619_v31  ;;  %v1708_v31 = vadd.f32 %v5683_v51, %v8519_v44 }
 0x1ed   : > { %v5815_v13 = vpop.f32.mrf.mxu1  ;;  %v2154_v19 = vpop.f32.mrf.mxu0 }
 0x1ee   : > { %10499 = vst [vmem:[#allocation21_spill] sm:$0xff] %v8726_v43  ;;  %v5816_v18 = vadd.f32 %v5815_v13, %v5814_v57  ;;  %v8731_v10 = vadd.f32 %v2154_v19, %v1994_v52  ;;  %v1713_v52 = vadd.f32 %v8501_v48, %v8640_v2  ;;  %v5689_v57 = vadd.f32 %v8645_v63, %v8642_v24 }
 0x1ef   : > { %v5817_v11 = vpop.f32.mrf.mxu1  ;;  %v6485_v42 = vpop.f32.mrf.mxu0 }
 0x1f0   : > { %v8733_v61 = vadd.f32 %v6485_v42, %v2005_v3  ;;  %v2010_v33 = vadd.f32 %v5816_v18, %v8628_v5  ;;  %v1716_v18 = vadd.f32 %v8514_v62, %v5689_v57  ;;  %v8758_v62 = vld [vmem:[%s9917_s3] ss:$0 sm:$0xff] }
 0x1f1   : > { %v5818_v54 = vpop.f32.mrf.mxu1  ;;  %v8736_v50 = vpop.f32.mrf.mxu0 }
 0x1f2   : > { %10500 = vst [vmem:[#allocation23_spill] sm:$0xff] %v8733_v61  ;;  %10501 = vst [vmem:[#allocation24_spill] sm:$0xff] %v8736_v50  ;;  %v5819_v22 = vadd.f32 %v5818_v54, %v5817_v11  ;;  %v6856_v50 = vld [vmem:[#allocation7 + $0xf0] sm:$0xff]  }
 0x1f3   : > { %v5820_v40 = vpop.f32.mrf.mxu1  ;;  %v6488_v36 = vpop.f32.mrf.mxu0 }
 0x1f4   : > { %v8739_v43 = vadd.f32 %v5819_v22, %v1708_v31 }
 0x1f5   : > { %v5821_v26 = vpop.f32.mrf.mxu1  ;;  %v2170_v12 = vpop.f32.mrf.mxu0 }
 0x1f6   : > { %10502 = vst [vmem:[#allocation25_spill] sm:$0xff] %v8739_v43  ;;  %v5822_v3 = vadd.f32 %v5821_v26, %v5820_v40  ;;  %v8745_v5 = vadd.f32 %v2170_v12, %v2010_v33  ;;  %v6854_v43 = vld [vmem:[#allocation7 + $0xf8] sm:$0xff]  }
 0x1f7   : > { %v5823_v29 = vpop.f32.mrf.mxu1  ;;  %v6489_v13 = vpop.f32.mrf.mxu0 }
 0x1f8   : > { %10503 = vst [vmem:[#allocation29_spill] sm:$0xff] %v8745_v5  ;;  %v2018_v19 = vadd.f32 %v5822_v3, %v1713_v52 }
 0x1f9   : > { %v5824_v44 = vpop.f32.mrf.mxu1  ;;  %v8747_v51 = vpop.f32.mrf.mxu0 }
 0x1fa   : > { %10504 = vst [vmem:[#allocation31_spill] sm:$0xff] %v8747_v51  ;;  %v8750_v11 = vadd.f32 %v6488_v36, %v2018_v19  ;;  %v5825_v42 = vadd.f32 %v5824_v44, %v5823_v29  ;;  %v6864_v44 = vld [vmem:[#allocation7 + $0x178] sm:$0xff]  }
 0x1fb   : > { %v5866_v54 = vpop.f32.mrf.mxu0  ;;  %v6508_v31 = vpop.f32.mrf.mxu1  ;;  %6586 = vmatprep.subr.bf16.mxu1 %v6864_v44 }
 0x1fc   : > { %10505 = vst [vmem:[#allocation34_spill] sm:$0xff] %v8750_v11  ;;  %v2021_v48 = vadd.f32 %v5825_v42, %v1716_v18  ;;  %6587 = vmatpush3.bf16.msra.mxu1 %v6864_v44 }
 0x1fd   : > { %v5867_v2 = vpop.f32.mrf.mxu0  ;;  %v2573_v22 = vpop.f32.mrf.mxu1 }
 0x1fe   : > { %v8752_v24 = vadd.f32 %v6489_v13, %v2021_v48  ;;  %v5868_v63 = vadd.f32 %v5867_v2, %v5866_v54  ;;  %v2062_v13 = vadd.f32 %v8658_v58, %v8542_v25 }
 0x1ff   : > { %v5869_v33 = vpop.f32.mrf.mxu0  ;;  %v6509_v40 = vpop.f32.mrf.mxu1 }
 0x200   : > { %10506 = vst [vmem:[#allocation36_spill] sm:$0xff] %v8752_v24  ;;  %v2574_v26 = vadd.f32 %v5868_v63, %v2573_v22 }
 0x201   : > { %v5870_v12 = vpop.f32.mrf.mxu0  ;;  %v2576_v52 = vpop.f32.mrf.mxu1 }
 0x202   : > { %v2700_v3 = vadd.f32 %v2574_v26, %v8652_v47  ;;  %v5871_v36 = vadd.f32 %v5870_v12, %v5869_v33 }
 0x203   : > { %v5872_v57 = vpop.f32.mrf.mxu0  ;;  %v8760_v29 = vpop.f32.mrf.mxu1 }
 0x204   : > { %v2577_v19 = vadd.f32 %v5871_v36, %v2576_v52  ;;  %v2739_v18 = vadd.f32 %v8758_v62, %v2700_v3 }
 0x205   : > { %v5873_v42 = vpop.f32.mrf.mxu0  ;;  %v2589_v54 = vpop.f32.mrf.mxu1 }
 0x206   : > { %v2701_v48 = vadd.f32 %v2577_v19, %v2062_v13  ;;  %v5874_v47 = vadd.f32 %v5873_v42, %v5872_v57  ;;  %v8768_v26 = vmax.f32 %v2739_v18, 0.0 }
 0x207   : > { %v5875_v2 = vpop.f32.mrf.mxu0  ;;  %v8765_v22 = vpop.f32.mrf.mxu1 }
 0x208   : > { %v2740_v63 = vadd.f32 %v8758_v62, %v2701_v48  ;;  %v2582_v33 = vadd.f32 %v6508_v31, %v5874_v47  ;;  %10507 = vst [vmem:[#allocation37_spill] sm:$0xff] %v8768_v26  ;;  %v10115_v44 = vrot.slane %v8768_v26, 7 }
 0x209   : > { %v5876_v12 = vpop.f32.mrf.mxu0  ;;  %v2592_v25 = vpop.f32.mrf.mxu1 }
 0x20a   : > { %v2772_v58 = vmax.f32 %v2740_v63, 0.0  ;;  %v2702_v52 = vadd.f32 %v2582_v33, %v8648_v4  ;;  %v5877_v3 = vadd.f32 %v5876_v12, %v5875_v2  ;;  %v10118_v63 = vrot.slane %v8768_v26, 1 }
 0x20b   : > { %v5878_v36 = vpop.f32.mrf.mxu0  ;;  %v8771_v24 = vpop.f32.mrf.mxu1 }
 0x20c   : > { %v2804_v57 = vrot.slane %v2772_v58, 7  ;;  %v2741_v13 = vadd.f32 %v8758_v62, %v2702_v52  ;;  %v2585_v19 = vadd.f32 %v6509_v40, %v5877_v3  ;;  %v2900_v42 = vrot.slane %v2772_v58, 1  ;;  %v10509_v40 = vld [vmem:[#allocation12_spill] sm:$0xff] }
 0x20d   : > { %v5879_v48 = vpop.f32.mrf.mxu0  ;;  %v8776_v31 = vpack.c.bf16 %v2772_v58, %v8768_v26  ;;  %v8778_v18 = vpop.f32.mrf.mxu1  ;;  %vm10510_vm0 = vcmp.lt.s32.totalorder %v10509_v40, 1  ;;  %vm10512_vm8 = vcmp.lt.s32.totalorder %v10509_v40, 7  ;;  %v6879_v40 = vld [vmem:[#allocation7 + $0x228] sm:$0xff]  }
 0x20e   : > { %v2773_v47 = vmax.f32 %v2741_v13, 0.0  ;;  %v2703_v4 = vadd.f32 %v2585_v19, %v8655_v56  ;;  %v5880_v2 = vadd.f32 %v5879_v48, %v5878_v36  ;;  %v8789_v52 = vsel %vm10510_vm0, %v10115_v44, %v2804_v57  ;;  %v6870_v48 = vld [vmem:[#allocation7 + $0x170] sm:$0xff]   ;;  %vm10513_vm9 = vmmov %vm10512_vm8 }
 0x20f   : > { %10508 = vst [vmem:[#allocation40_spill] sm:$0xff] %v8776_v31  ;;  %3324 = vmatprep.mubr.bf16.mxu1 %v8776_v31  ;;  %v5881_v33 = vpop.f32.mrf.mxu0  ;;  %v8783_v12 = vpop.f32.mrf.mxu1  ;;  %10511 = vst [vmem:[#allocation44_spill] sm:$0xff] %v8789_v52  ;;  %v2961_v56 = vsel %vm10512_vm8, %v10118_v63, %v2900_v42  ;;  %v6855_v63 = vld [vmem:[#allocation7 + $0x130] sm:$0xff]   ;;  %6588 = vmatprep.subr.bf16.mxu1 %v6870_v48 }
 0x210   : > { %v2805_v58 = vrot.slane %v2773_v47, 7  ;;  %v2901_v3 = vrot.slane %v2773_v47, 1  ;;  %v2742_v13 = vadd.f32 %v8758_v62, %v2703_v4  ;;  %v2590_v11 = vadd.f32 %v5880_v2, %v2589_v54  ;;  %6589 = vmatpush3.bf16.msra.mxu1 %v6870_v48 }
 0x211   : > { %v5882_v36 = vpop.f32.mrf.mxu0  ;;  %v8796_v19 = vpop.f32.mrf.mxu1  ;;  %v2078_v54 = vadd.f32 %v8673_v30, %v8574_v41 }
 0x212   : > { %v2960_v31 = vsel %vm10513_vm9, %v2900_v42, %v2901_v3  ;;  %v2774_v51 = vmax.f32 %v2742_v13, 0.0  ;;  %v2704_v44 = vadd.f32 %v2590_v11, %v8667_v39  ;;  %v5883_v52 = vadd.f32 %v5882_v36, %v5881_v33  ;;  %v10515_v33 = vld [vmem:[#allocation14_spill] sm:$0xff] }
 0x213   : > { %v8803_v4 = vpack.c.bf16 %v2960_v31, %v2961_v56  ;;  %v5884_v2 = vpop.f32.mrf.mxu0  ;;  %v8805_v26 = vpop.f32.mrf.mxu1  ;;  %v2864_v5 = vsel %vm10510_vm0, %v2804_v57, %v2805_v58  ;;  %vm10516_vm8 = vnez %v10515_v33 }
 0x214   : > { %v2806_v61 = vrot.slane %v2774_v51, 7  ;;  %v2902_v42 = vrot.slane %v2774_v51, 1  ;;  %v2743_v13 = vadd.f32 %v8758_v62, %v2704_v44  ;;  %v2593_v39 = vadd.f32 %v5883_v52, %v2592_v25  ;;  %v6857_v52 = vld [vmem:[#allocation7 + $0x128] sm:$0xff]  }
 0x215   : > { %10514 = vst [vmem:[#allocation46_spill] sm:$0xff] %v8803_v4  ;;  %v5885_v11 = vpop.f32.mrf.mxu0  ;;  %6555 = vmatmul.mubr.msk.bf16.vlgmr.msra.gmra.mxu0 %vm10516_vm8, %v8803_v4  ;;  %v8813_v41 = vpop.f32.mrf.mxu1  ;;  %v8815_v30 = vpack.c.bf16 %v2774_v51, %v2773_v47 }
 0x216   : > { %v2775_v31 = vmax.f32 %v2743_v13, 0.0  ;;  %v2705_v56 = vadd.f32 %v2593_v39, %v2078_v54  ;;  %v5886_v36 = vadd.f32 %v5885_v11, %v5884_v2  ;;  %v2959_v57 = vsel %vm10513_vm9, %v2901_v3, %v2902_v42  ;;  %6123 = vmatpush3.bf16.msra.mxu0 %v6854_v43 }
 0x217   : > { %10517 = vst [vmem:[#allocation13_spill] sm:$0xff] %v8815_v30  ;;  %v5887_v44 = vpop.f32.mrf.mxu0  ;;  %v8819_v25 = vpop.f32.mrf.mxu1  ;;  %6124 = vmatprep.subr.bf16.mxu0 %v6855_v63  ;;  %v2863_v48 = vsel %vm10510_vm0, %v2805_v58, %v2806_v61  ;;  %v6858_v58 = vld [vmem:[#allocation7 + $0xe8] sm:$0xff]  }
 0x218   : > { %v2807_v33 = vrot.slane %v2775_v31, 7  ;;  %v2903_v4 = vrot.slane %v2775_v31, 1  ;;  %v2744_v51 = vadd.f32 %v8758_v62, %v2705_v56  ;;  %v2598_v47 = vadd.f32 %v8760_v29, %v5886_v36  ;;  %v6859_v29 = vld [vmem:[#allocation7 + $0x120] sm:$0xff]  }
 0x219   : > { %v5888_v54 = vpop.f32.mrf.mxu0  ;;  %v8825_v2 = vpop.f32.mrf.mxu1  ;;  %v8827_v3 = vpack.c.bf16 %v2863_v48, %v2864_v5 }
 0x21a   : > { %v2776_v43 = vmax.f32 %v2744_v51, 0.0  ;;  %v2706_v13 = vadd.f32 %v2598_v47, %v8661_v14  ;;  %v5889_v39 = vadd.f32 %v5888_v54, %v5887_v44  ;;  %v2958_v63 = vsel %vm10513_vm9, %v2902_v42, %v2903_v4  ;;  %6125 = vmatpush3.bf16.msra.mxu0 %v6856_v50 }
 0x21b   : > { %v5890_v11 = vpop.f32.mrf.mxu0  ;;  %v8832_v30 = vpack.c.bf16 %v2958_v63, %v2959_v57  ;;  %v8834_v56 = vpop.f32.mrf.mxu1  ;;  %6126 = vmatprep.subr.bf16.mxu0 %v6857_v52  ;;  %v2862_v5 = vsel %vm10510_vm0, %v2806_v61, %v2807_v33 }
 0x21c   : > { %v2808_v36 = vrot.slane %v2776_v43, 7  ;;  %v2904_v48 = vrot.slane %v2776_v43, 1  ;;  %v2745_v14 = vadd.f32 %v8758_v62, %v2706_v13  ;;  %v2601_v44 = vadd.f32 %v8765_v22, %v5889_v39  ;;  %v6860_v13 = vld [vmem:[#allocation7 + $0xe0] sm:$0xff]   ;;  %v6861_v22 = vld [vmem:[#allocation7 + $0x118] sm:$0xff]  }
 0x21d   : > { %10518 = vst [vmem:[#allocation49_spill] sm:$0xff] %v8832_v30  ;;  %v5891_v51 = vpop.f32.mrf.mxu0  ;;  %6558 = vmatprep.mubr.msk.bf16.mxu0 %vm7369_vm7, %v8832_v30  ;;  %v8843_v42 = vpack.c.bf16 %v2776_v43, %v2775_v31  ;;  %v8848_v54 = vpop.f32.mrf.mxu1 }
 0x21e   : > { %v2777_v57 = vmax.f32 %v2745_v14, 0.0  ;;  %v2707_v52 = vadd.f32 %v2601_v44, %v8670_v45  ;;  %v5892_v47 = vadd.f32 %v5891_v51, %v5890_v11  ;;  %v2957_v61 = vsel %vm10513_vm9, %v2903_v4, %v2904_v48  ;;  %6127 = vmatpush3.bf16.msra.mxu0 %v6858_v58  ;;  %v6871_v4 = vld [vmem:[#allocation7 + $0x168] sm:$0xff]  }
 0x21f   : > { %10520 = vst [vmem:[#allocation52_spill] sm:$0xff] %v8843_v42  ;;  %v5893_v63 = vpop.f32.mrf.mxu0  ;;  %6128 = vmatprep.subr.bf16.mxu0 %v6859_v29  ;;  %v2861_v39 = vsel %vm10510_vm0, %v2807_v33, %v2808_v36  ;;  %v8859_v30 = vpop.f32.mrf.mxu1  ;;  %v6862_v33 = vld [vmem:[#allocation7 + $0xd8] sm:$0xff]   ;;  %6590 = vmatprep.subr.bf16.mxu1 %v6871_v4 }
 0x220   : > { %v2809_v50 = vrot.slane %v2777_v57, 7  ;;  %v2905_v31 = vrot.slane %v2777_v57, 1  ;;  %v2746_v43 = vadd.f32 %v8758_v62, %v2707_v52  ;;  %v2606_v45 = vadd.f32 %v5892_v47, %v8778_v18  ;;  %6591 = vmatpush3.bf16.msra.mxu1 %v6871_v4 }
 0x221   : > { %v5894_v11 = vpop.f32.mrf.mxu0  ;;  %v8854_v14 = vpack.c.bf16 %v2861_v39, %v2862_v5  ;;  %v2094_v52 = vadd.f32 %v8686_v35, %v8607_v17  ;;  %v6863_v5 = vld [vmem:[#allocation7 + $0x110] sm:$0xff]  }
 0x222   : > { %v2778_v44 = vmax.f32 %v2746_v43, 0.0  ;;  %v2708_v58 = vadd.f32 %v2606_v45, %v8680_v1  ;;  %v5895_v51 = vadd.f32 %v5894_v11, %v5893_v63  ;;  %v2956_v29 = vsel %vm10513_vm9, %v2904_v48, %v2905_v31  ;;  %6129 = vmatpush3.bf16.msra.mxu0 %v6860_v13  ;;  %v8876_v43 = vpop.f32.mrf.mxu1  ;;  %v6865_v45 = vld [vmem:[#allocation7 + $0xd0] sm:$0xff]  }
 0x223   : > { %v5896_v42 = vpop.f32.mrf.mxu0  ;;  %v8863_v18 = vpack.c.bf16 %v2956_v29, %v2957_v61  ;;  %6130 = vmatprep.subr.bf16.mxu0 %v6861_v22  ;;  %v2860_v47 = vsel %vm10510_vm0, %v2808_v36, %v2809_v50 }
 0x224   : > { %v2810_v1 = vrot.slane %v2778_v44, 7  ;;  %v2906_v63 = vrot.slane %v2778_v44, 1  ;;  %v2747_v48 = vadd.f32 %v8758_v62, %v2708_v58  ;;  %v2609_v39 = vadd.f32 %v5895_v51, %v8796_v19  ;;  %v6866_v19 = vld [vmem:[#allocation7 + $0x108] sm:$0xff]  }
 0x225   : > { %v5897_v13 = vpop.f32.mrf.mxu0  ;;  %6559 = vmatmul.mubr.msk.bf16.gmra.mxu0 %vm10411_vm12, %v8863_v18  ;;  %v8872_v17 = vpack.c.bf16 %v2778_v44, %v2777_v57 }
 0x226   : > { %v2779_v35 = vmax.f32 %v2747_v48, 0.0  ;;  %v2709_v61 = vadd.f32 %v2609_v39, %v2094_v52  ;;  %v5898_v22 = vadd.f32 %v5897_v13, %v5896_v42  ;;  %v2955_v36 = vsel %vm10513_vm9, %v2905_v31, %v2906_v63  ;;  %6131 = vmatpush3.bf16.msra.mxu0 %v6862_v33  ;;  %v8882_v42 = vpop.f32.mrf.mxu1 }
 0x227   : > { %v5899_v11 = vpop.f32.mrf.mxu0  ;;  %6132 = vmatprep.subr.bf16.mxu0 %v6863_v5  ;;  %v2859_v4 = vsel %vm10510_vm0, %v2809_v50, %v2810_v1  ;;  %v6867_v50 = vld [vmem:[#allocation7 + $0xc8] sm:$0xff]  }
 0x228   : > { %v2811_v58 = vrot.slane %v2779_v35, 7  ;;  %v2907_v51 = vrot.slane %v2779_v35, 1  ;;  %v2748_v57 = vadd.f32 %v8758_v62, %v2709_v61  ;;  %v2614_v44 = vadd.f32 %v8771_v24, %v5898_v22  ;;  %v6868_v61 = vld [vmem:[#allocation7 + $0x100] sm:$0xff]  }
 0x229   : > { %v5900_v29 = vpop.f32.mrf.mxu0  ;;  %v8884_v31 = vpack.c.bf16 %v2859_v4, %v2860_v47 }
 0x22a   : > { %v2780_v52 = vmax.f32 %v2748_v57, 0.0  ;;  %v2710_v33 = vadd.f32 %v2614_v44, %v8676_v9  ;;  %v5901_v48 = vadd.f32 %v5900_v29, %v5899_v11  ;;  %v2954_v5 = vsel %vm10513_vm9, %v2906_v63, %v2907_v51  ;;  %6133 = vmatpush3.bf16.msra.mxu0 %v6865_v45  ;;  %v8895_v11 = vpop.f32.mrf.mxu1  ;;  %v6869_v44 = vld [vmem:[#allocation7 + $0xc0] sm:$0xff]  }
 0x22b   : > { %v5902_v39 = vpop.f32.mrf.mxu0  ;;  %v8889_v13 = vpack.c.bf16 %v2954_v5, %v2955_v36  ;;  %6134 = vmatprep.subr.bf16.mxu0 %v6866_v19  ;;  %v2858_v24 = vsel %vm10510_vm0, %v2810_v1, %v2811_v58 }
 0x22c   : > { %v2812_v22 = vrot.slane %v2780_v52, 7  ;;  %v2908_v47 = vrot.slane %v2780_v52, 1  ;;  %v2749_v4 = vadd.f32 %v8758_v62, %v2710_v33  ;;  %v2617_v9 = vadd.f32 %v8783_v12, %v5901_v48 }
 0x22d   : > { %v5903_v57 = vpop.f32.mrf.mxu0  ;;  %6562 = vmatprep.mubr.msk.bf16.mxu0 %vm10414_vm10, %v8889_v13  ;;  %v8900_v63 = vpack.c.bf16 %v2780_v52, %v2779_v35  ;;  %v8909_v52 = vpop.f32.mrf.mxu1 }
 0x22e   : > { %v2781_v36 = vmax.f32 %v2749_v4, 0.0  ;;  %v2711_v45 = vadd.f32 %v2617_v9, %v8683_v0  ;;  %v5904_v19 = vadd.f32 %v5903_v57, %v5902_v39  ;;  %v2953_v1 = vsel %vm10513_vm9, %v2907_v51, %v2908_v47  ;;  %6135 = vmatpush3.bf16.msra.mxu0 %v6867_v50  ;;  %v6872_v4 = vld [vmem:[#allocation7 + $0x160] sm:$0xff]  }
 0x22f   : > { %v5905_v29 = vpop.f32.mrf.mxu0  ;;  %6136 = vmatprep.subr.bf16.mxu0 %v6868_v61  ;;  %v2857_v12 = vsel %vm10510_vm0, %v2811_v58, %v2812_v22  ;;  %v2110_v58 = vadd.f32 %v8700_v28, %v8637_v27  ;;  %6592 = vmatprep.subr.bf16.mxu1 %v6872_v4 }
 0x230   : > { %v2813_v33 = vrot.slane %v2781_v36, 7  ;;  %v2909_v48 = vrot.slane %v2781_v36, 1  ;;  %v2750_v5 = vadd.f32 %v8758_v62, %v2711_v45  ;;  %v2622_v35 = vadd.f32 %v5904_v19, %v8813_v41  ;;  %6593 = vmatpush3.bf16.msra.mxu1 %v6872_v4 }
 0x231   : > { %v5906_v0 = vpop.f32.mrf.mxu0  ;;  %v8911_v39 = vpack.c.bf16 %v2857_v12, %v2858_v24 }
 0x232   : > { %v2782_v51 = vmax.f32 %v2750_v5, 0.0  ;;  %v2712_v50 = vadd.f32 %v2622_v35, %v8695_v46  ;;  %v5907_v9 = vadd.f32 %v5906_v0, %v5905_v29  ;;  %v2952_v61 = vsel %vm10513_vm9, %v2908_v47, %v2909_v48  ;;  %6137 = vmatpush3.bf16.msra.mxu0 %v6869_v44  ;;  %v8924_v29 = vpop.f32.mrf.mxu1 }
 0x233   : > { %v5908_v57 = vpop.f32.mrf.mxu0  ;;  %v8918_v45 = vpack.c.bf16 %v2952_v61, %v2953_v1  ;;  %v2856_v41 = vsel %vm10510_vm0, %v2812_v22, %v2813_v33 }
 0x234   : > { %v2814_v24 = vrot.slane %v2782_v51, 7  ;;  %v2910_v19 = vrot.slane %v2782_v51, 1  ;;  %v2751_v12 = vadd.f32 %v8758_v62, %v2712_v50  ;;  %v2625_v46 = vadd.f32 %v5907_v9, %v8825_v2  ;;  %v8933_v5 = vpop.f32.mrf.mxu1 }
 0x235   : > { %v5909_v47 = vpop.f32.mrf.mxu0  ;;  %6563 = vmatmul.mubr.msk.bf16.gmra.mxu0 %vm10417_vm3, %v8918_v45  ;;  %v8929_v27 = vpack.c.bf16 %v2782_v51, %v2781_v36 }
 0x236   : > { %v2783_v28 = vmax.f32 %v2751_v12, 0.0  ;;  %v2713_v1 = vadd.f32 %v2625_v46, %v2110_v58  ;;  %v5910_v22 = vadd.f32 %v5909_v47, %v5908_v57  ;;  %v2951_v44 = vsel %vm10513_vm9, %v2909_v48, %v2910_v19  ;;  %v8944_v12 = vpop.f32.mrf.mxu1 }
 0x237   : > { %v5911_v35 = vpop.f32.mrf.mxu0  ;;  %v2855_v2 = vsel %vm10510_vm0, %v2813_v33, %v2814_v24 }
 0x238   : > { %v2815_v0 = vrot.slane %v2783_v28, 7  ;;  %v2911_v4 = vrot.slane %v2783_v28, 1  ;;  %v2752_v50 = vadd.f32 %v8758_v62, %v2713_v1  ;;  %v2630_v9 = vadd.f32 %v8805_v26, %v5910_v22 }
 0x239   : > { %v5912_v36 = vpop.f32.mrf.mxu0  ;;  %v8939_v51 = vpack.c.bf16 %v2855_v2, %v2856_v41 }
 0x23a   : > { %v2784_v61 = vmax.f32 %v2752_v50, 0.0  ;;  %v2714_v58 = vadd.f32 %v2630_v9, %v8690_v37  ;;  %v5913_v57 = vadd.f32 %v5912_v36, %v5911_v35  ;;  %v2950_v48 = vsel %vm10513_vm9, %v2910_v19, %v2911_v4  ;;  %v8960_v50 = vpop.f32.mrf.mxu1 }
 0x23b   : > { %v5914_v46 = vpop.f32.mrf.mxu0  ;;  %v8946_v33 = vpack.c.bf16 %v2950_v48, %v2951_v44  ;;  %v2854_v47 = vsel %vm10510_vm0, %v2814_v24, %v2815_v0 }
 0x23c   : > { %v2816_v1 = vrot.slane %v2784_v61, 7  ;;  %v2912_v26 = vrot.slane %v2784_v61, 1  ;;  %v2753_v41 = vadd.f32 %v8758_v62, %v2714_v58  ;;  %v2633_v22 = vadd.f32 %v8819_v25, %v5913_v57 }
 0x23d   : > { %v5915_v2 = vpop.f32.mrf.mxu0  ;;  %6566 = vmatprep.mubr.msk.bf16.mxu0 %vm10420_vm6, %v8946_v33  ;;  %v8955_v37 = vpack.c.bf16 %v2784_v61, %v2783_v28 }
 0x23e   : > { %v2785_v19 = vmax.f32 %v2753_v41, 0.0  ;;  %v2715_v44 = vadd.f32 %v2633_v22, %v8697_v15  ;;  %v5916_v35 = vadd.f32 %v5915_v2, %v5914_v46  ;;  %v2949_v24 = vsel %vm10513_vm9, %v2911_v4, %v2912_v26  ;;  %v6873_v15 = vld [vmem:[#allocation7 + $0x158] sm:$0xff]   ;;  %v8971_v2 = vpop.f32.mrf.mxu1 }
 0x23f   : > { %v5917_v9 = vpop.f32.mrf.mxu0  ;;  %v2853_v25 = vsel %vm10510_vm0, %v2815_v0, %v2816_v1  ;;  %v2126_v0 = vadd.f32 %v8712_v55, %v8664_v16  ;;  %6594 = vmatprep.subr.bf16.mxu1 %v6873_v15 }
 0x240   : > { %v2817_v36 = vrot.slane %v2785_v19, 7  ;;  %v2913_v58 = vrot.slane %v2785_v19, 1  ;;  %v2754_v57 = vadd.f32 %v8758_v62, %v2715_v44  ;;  %v2638_v28 = vadd.f32 %v5916_v35, %v8848_v54  ;;  %6595 = vmatpush3.bf16.msra.mxu1 %v6873_v15 }
 0x241   : > { %v5918_v61 = vpop.f32.mrf.mxu0  ;;  %v8966_v48 = vpack.c.bf16 %v2853_v25, %v2854_v47  ;;  %v8981_v25 = vpop.f32.mrf.mxu1 }
 0x242   : > { %v2786_v46 = vmax.f32 %v2754_v57, 0.0  ;;  %v2716_v41 = vadd.f32 %v2638_v28, %v8707_v7  ;;  %v5919_v4 = vadd.f32 %v5918_v61, %v5917_v9  ;;  %v2948_v22 = vsel %vm10513_vm9, %v2912_v26, %v2913_v58 }
 0x243   : > { %v5920_v60 = vpop.f32.mrf.mxu0  ;;  %v8975_v44 = vpack.c.bf16 %v2948_v22, %v2949_v24  ;;  %v2852_v54 = vsel %vm10510_vm0, %v2816_v1, %v2817_v36  ;;  %v8994_v22 = vpop.f32.mrf.mxu1 }
 0x244   : > { %v2818_v47 = vrot.slane %v2786_v46, 7  ;;  %v2914_v35 = vrot.slane %v2786_v46, 1  ;;  %v2755_v7 = vadd.f32 %v8758_v62, %v2716_v41  ;;  %v2641_v9 = vadd.f32 %v5919_v4, %v8876_v43 }
 0x245   : > { %10521 = vst [vmem:[#allocation54_spill] sm:$0xff] %v8975_v44  ;;  %v5921_v26 = vpop.f32.mrf.mxu0  ;;  %6567 = vmatmul.mubr.msk.bf16.gmra.mxu0 %vm10423_vm4, %v8975_v44  ;;  %v8986_v16 = vpack.c.bf16 %v2786_v46, %v2785_v19 }
 0x246   : > { %v2787_v55 = vmax.f32 %v2755_v7, 0.0  ;;  %v2717_v24 = vadd.f32 %v2641_v9, %v2126_v0  ;;  %v5922_v1 = vadd.f32 %v5921_v26, %v5920_v60  ;;  %v2947_v57 = vsel %vm10513_vm9, %v2913_v58, %v2914_v35 }
 0x247   : > { %v5923_v28 = vpop.f32.mrf.mxu0  ;;  %v2851_v43 = vsel %vm10510_vm0, %v2817_v36, %v2818_v47 }
 0x248   : > { %v2819_v61 = vrot.slane %v2787_v55, 7  ;;  %v2915_v41 = vrot.slane %v2787_v55, 1  ;;  %v2756_v15 = vadd.f32 %v8758_v62, %v2717_v24  ;;  %v2646_v4 = vadd.f32 %v8834_v56, %v5922_v1 }
 0x249   : > { %v5924_v19 = vpop.f32.mrf.mxu0  ;;  %v8996_v46 = vpack.c.bf16 %v2851_v43, %v2852_v54  ;;  %v9007_v43 = vpop.f32.mrf.mxu1 }
 0x24a   : > { %v2788_v0 = vmax.f32 %v2756_v15, 0.0  ;;  %v2718_v60 = vadd.f32 %v2646_v4, %v8702_v34  ;;  %v5925_v7 = vadd.f32 %v5924_v19, %v5923_v28  ;;  %v2946_v58 = vsel %vm10513_vm9, %v2914_v35, %v2915_v41 }
 0x24b   : > { %v5926_v9 = vpop.f32.mrf.mxu0  ;;  %v9001_v36 = vpack.c.bf16 %v2946_v58, %v2947_v57  ;;  %v2850_v26 = vsel %vm10510_vm0, %v2818_v47, %v2819_v61 }
 0x24c   : > { %v2820_v24 = vrot.slane %v2788_v0, 7  ;;  %v2916_v56 = vrot.slane %v2788_v0, 1  ;;  %v2757_v1 = vadd.f32 %v8758_v62, %v2718_v60  ;;  %v2649_v54 = vadd.f32 %v8859_v30, %v5925_v7 }
 0x24d   : > { %10522 = vst [vmem:[#allocation55_spill] sm:$0xff] %v9001_v36  ;;  %v5927_v15 = vpop.f32.mrf.mxu0  ;;  %6570 = vmatprep.mubr.msk.bf16.mxu0 %vm10426_vm14, %v9001_v36  ;;  %v9012_v35 = vpack.c.bf16 %v2788_v0, %v2787_v55  ;;  %v9021_v36 = vpop.f32.mrf.mxu1 }
 0x24e   : > { %v2789_v57 = vmax.f32 %v2757_v1, 0.0  ;;  %v2719_v28 = vadd.f32 %v2649_v54, %v8709_v38  ;;  %v5928_v4 = vadd.f32 %v5927_v15, %v5926_v9  ;;  %v2945_v47 = vsel %vm10513_vm9, %v2915_v41, %v2916_v56  ;;  %v6874_v38 = vld [vmem:[#allocation7 + $0x150] sm:$0xff]   ;;  %v10524_v15 = vld [vmem:[#allocation20_spill] sm:$0xff] }
 0x24f   : > { %v5929_v19 = vpop.f32.mrf.mxu0  ;;  %v2849_v30 = vsel %vm10510_vm0, %v2819_v61, %v2820_v24  ;;  %v6002_v61 = vpop.f32.mrf.mxu1  ;;  %v2142_v53 = vadd.f32 %v8724_v20, %v10524_v15  ;;  %6596 = vmatprep.subr.bf16.mxu1 %v6874_v38 }
 0x250   : > { %v2821_v60 = vrot.slane %v2789_v57, 7  ;;  %v2917_v7 = vrot.slane %v2789_v57, 1  ;;  %v2758_v58 = vadd.f32 %v8758_v62, %v2719_v28  ;;  %v2654_v34 = vadd.f32 %v5928_v4, %v8895_v11  ;;  %6597 = vmatpush3.bf16.msra.mxu1 %v6874_v38 }
 0x251   : > { %v5930_v55 = vpop.f32.mrf.mxu0  ;;  %v9023_v0 = vpack.c.bf16 %v2849_v30, %v2850_v26 }
 0x252   : > { %v2790_v9 = vmax.f32 %v2758_v58, 0.0  ;;  %v2720_v1 = vadd.f32 %v2654_v34, %v8719_v23  ;;  %v5931_v41 = vadd.f32 %v5930_v55, %v5929_v19  ;;  %v2944_v54 = vsel %vm10513_vm9, %v2916_v56, %v2917_v7  ;;  %v6003_v34 = vpop.f32.mrf.mxu1 }
 0x253   : > { %v5932_v28 = vpop.f32.mrf.mxu0  ;;  %v9030_v44 = vpack.c.bf16 %v2944_v54, %v2945_v47  ;;  %v2848_v11 = vsel %vm10510_vm0, %v2820_v24, %v2821_v60  ;;  %v9041_v47 = vadd.f32 %v6003_v34, %v6002_v61 }
 0x254   : > { %v2822_v26 = vrot.slane %v2790_v9, 7  ;;  %v2918_v4 = vrot.slane %v2790_v9, 1  ;;  %v2759_v30 = vadd.f32 %v8758_v62, %v2720_v1  ;;  %v2657_v23 = vadd.f32 %v5931_v41, %v8924_v29 }
 0x255   : > { %v5933_v56 = vpop.f32.mrf.mxu0  ;;  %6571 = vmatmul.mubr.msk.bf16.gmra.mxu0 %vm10429_vm15, %v9030_v44  ;;  %v9039_v20 = vpack.c.bf16 %v2790_v9, %v2789_v57  ;;  %vm10526_vm15 = vmmov %vm10513_vm9 }
 0x256   : > { %v2791_v58 = vmax.f32 %v2759_v30, 0.0  ;;  %v2721_v24 = vadd.f32 %v2657_v23, %v2142_v53  ;;  %v5934_v55 = vadd.f32 %v5933_v56, %v5932_v28  ;;  %v2943_v54 = vsel %vm10513_vm9, %v2917_v7, %v2918_v4  ;;  %vm10527_vm9 = vmmov %vm10510_vm0 }
 0x257   : > { %v5935_v1 = vpop.f32.mrf.mxu0  ;;  %v2847_v29 = vsel %vm10510_vm0, %v2821_v60, %v2822_v26 }
 0x258   : > { %v2823_v38 = vrot.slane %v2791_v58, 7  ;;  %v2919_v41 = vrot.slane %v2791_v58, 1  ;;  %v2760_v15 = vadd.f32 %v8758_v62, %v2721_v24  ;;  %v2662_v19 = vadd.f32 %v8882_v42, %v5934_v55 }
 0x259   : > { %v5936_v57 = vpop.f32.mrf.mxu0  ;;  %v9049_v9 = vpack.c.bf16 %v2847_v29, %v2848_v11 }
 0x25a   : > { %v2792_v61 = vmax.f32 %v2760_v15, 0.0  ;;  %v2722_v53 = vadd.f32 %v2662_v19, %v8715_v32  ;;  %v5937_v28 = vadd.f32 %v5936_v57, %v5935_v1  ;;  %v2942_v7 = vsel %vm10526_vm15, %v2918_v4, %v2919_v41 }
 0x25b   : > { %v5938_v30 = vpop.f32.mrf.mxu0  ;;  %v9054_v23 = vpack.c.bf16 %v2942_v7, %v2943_v54  ;;  %v2846_v60 = vsel %vm10527_vm9, %v2822_v26, %v2823_v38  ;;  %vm10531_vm9 = vmmov %vm10526_vm15 }
 0x25c   : > { %v2824_v34 = vrot.slane %v2792_v61, 7  ;;  %v2920_v56 = vrot.slane %v2792_v61, 1  ;;  %v2761_v42 = vadd.f32 %v8758_v62, %v2722_v53  ;;  %v2665_v11 = vadd.f32 %v8909_v52, %v5937_v28 }
 0x25d   : > { %v5939_v24 = vpop.f32.mrf.mxu0  ;;  %6574 = vmatprep.mubr.msk.bf16.mxu0 %vm10462_vm11, %v9054_v23  ;;  %v9063_v32 = vpack.c.bf16 %v2792_v61, %v2791_v58  ;;  %v6875_v61 = vld [vmem:[#allocation7 + $0x148] sm:$0xff]  }
 0x25e   : > { %v2793_v4 = vmax.f32 %v2761_v42, 0.0  ;;  %v2723_v19 = vadd.f32 %v2665_v11, %v8721_v49  ;;  %v5940_v54 = vadd.f32 %v5939_v24, %v5938_v30  ;;  %v2941_v26 = vsel %vm10526_vm15, %v2919_v41, %v2920_v56  ;;  %v10532_v42 = vld [vmem:[#allocation24_spill] sm:$0xff]  ;;  %vm10534_vm15 = vmmov %vm10510_vm0  ;;  %6598 = vmatprep.subr.bf16.mxu1 %v6875_v61 }
 0x25f   : > { %10529 = vst [vmem:[#allocation57_spill] sm:$0xff] %v9063_v32  ;;  %v5941_v1 = vpop.f32.mrf.mxu0  ;;  %v2845_v29 = vsel %vm10510_vm0, %v2823_v38, %v2824_v34  ;;  %v2158_v38 = vadd.f32 %v10532_v42, %v8717_v6  ;;  %6599 = vmatpush3.bf16.msra.mxu1 %v6875_v61  ;;  %vm10537_vm0 = vmmov %vm10531_vm9 }
 0x260   : > { %v2825_v15 = vrot.slane %v2793_v4, 7  ;;  %v2921_v52 = vrot.slane %v2793_v4, 1  ;;  %v2762_v57 = vadd.f32 %v8758_v62, %v2723_v19  ;;  %v2670_v53 = vadd.f32 %v5940_v54, %v8944_v12 }
 0x261   : > { %v5942_v28 = vpop.f32.mrf.mxu0  ;;  %v9072_v58 = vpack.c.bf16 %v2845_v29, %v2846_v60 }
 0x262   : > { %v2794_v7 = vmax.f32 %v2762_v57, 0.0  ;;  %v2724_v49 = vadd.f32 %v2670_v53, %v8731_v10  ;;  %v5943_v30 = vadd.f32 %v5942_v28, %v5941_v1  ;;  %v2940_v41 = vsel %vm10531_vm9, %v2920_v56, %v2921_v52  ;;  %vm10538_vm9 = vmmov %vm10534_vm15 }
 0x263   : > { %10530 = vst [vmem:[#allocation58_spill] sm:$0xff] %v9072_v58  ;;  %v5944_v11 = vpop.f32.mrf.mxu0  ;;  %v9079_v24 = vpack.c.bf16 %v2940_v41, %v2941_v26  ;;  %v2844_v12 = vsel %vm10534_vm15, %v2824_v34, %v2825_v15  ;;  %vm10541_vm15 = vmmov %vm10537_vm0 }
 0x264   : > { %v2826_v60 = vrot.slane %v2794_v7, 7  ;;  %v2922_v19 = vrot.slane %v2794_v7, 1  ;;  %v2763_v54 = vadd.f32 %v8758_v62, %v2724_v49  ;;  %v2673_v10 = vadd.f32 %v5943_v30, %v8971_v2 }
 0x265   : > { %10533 = vst [vmem:[#allocation60_spill] sm:$0xff] %v9079_v24  ;;  %v5945_v1 = vpop.f32.mrf.mxu0  ;;  %6575 = vmatmul.mubr.msk.bf16.gmra.mxu0 %vm10464_vm2, %v9079_v24  ;;  %v9088_v6 = vpack.c.bf16 %v2794_v7, %v2793_v4  ;;  %v10540_v7 = vld [vmem:[#allocation21_spill] sm:$0xff] }
 0x266   : > { %v2795_v26 = vmax.f32 %v2763_v54, 0.0  ;;  %v2725_v29 = vadd.f32 %v2673_v10, %v2158_v38  ;;  %v5946_v57 = vadd.f32 %v5945_v1, %v5944_v11  ;;  %v2939_v34 = vsel %vm10537_vm0, %v2921_v52, %v2922_v19  ;;  %vm10543_vm0 = vmmov %vm10538_vm9 }
 0x267   : > { %10536 = vst [vmem:[#allocation61_spill] sm:$0xff] %v9088_v6  ;;  %v5947_v53 = vpop.f32.mrf.mxu0  ;;  %v2843_v28 = vsel %vm10538_vm9, %v2825_v15, %v2826_v60  ;;  %vm10547_vm9 = vmmov %vm10541_vm15 }
 0x268   : > { %v2827_v49 = vrot.slane %v2795_v26, 7  ;;  %v2923_v2 = vrot.slane %v2795_v26, 1  ;;  %v2764_v61 = vadd.f32 %v8758_v62, %v2725_v29  ;;  %v2678_v30 = vadd.f32 %v8933_v5, %v5946_v57 }
 0x269   : > { %v5948_v41 = vpop.f32.mrf.mxu0  ;;  %v9096_v42 = vpack.c.bf16 %v2843_v28, %v2844_v12 }
 0x26a   : > { %v2796_v4 = vmax.f32 %v2764_v61, 0.0  ;;  %v2726_v38 = vadd.f32 %v2678_v30, %v10540_v7  ;;  %v5949_v11 = vadd.f32 %v5948_v41, %v5947_v53  ;;  %v2938_v52 = vsel %vm10541_vm15, %v2922_v19, %v2923_v2  ;;  %v9112_v19 = vld [vmem:[#allocation7 + $0x238] sm:$0xff]   ;;  %vm10548_vm15 = vmmov %vm10543_vm0 }
 0x26b   : > { %10539 = vst [vmem:[#allocation63_spill] sm:$0xff] %v9096_v42  ;;  %v5950_v54 = vpop.f32.mrf.mxu0  ;;  %v9101_v10 = vpack.c.bf16 %v2938_v52, %v2939_v34  ;;  %v2842_v15 = vsel %vm10543_vm0, %v2826_v60, %v2827_v49  ;;  %v10546_v61 = vld [vmem:[#allocation23_spill] sm:$0xff]  ;;  %6634 = vmatprep.subr.bf16.mxu0 %v9112_v19  ;;  %vm10551_vm0 = vmmov %vm10547_vm9 }
 0x26c   : > { %v2828_v1 = vrot.slane %v2796_v4, 7  ;;  %v2924_v29 = vrot.slane %v2796_v4, 1  ;;  %v2765_v5 = vadd.f32 %v8758_v62, %v2726_v38  ;;  %v2681_v12 = vadd.f32 %v8960_v50, %v5949_v11 }
 0x26d   : > { %10542 = vst [vmem:[#allocation64_spill] sm:$0xff] %v9101_v10  ;;  %v5951_v57 = vpop.f32.mrf.mxu0  ;;  %6578 = vmatprep.mubr.msk.bf16.mxu0 %vm10465_vm1, %v9101_v10  ;;  %v9110_v53 = vpack.c.bf16 %v2796_v4, %v2795_v26  ;;  %v10553_v10 = vld [vmem:[#allocation31_spill] sm:$0xff] }
 0x26e   : > { %v2797_v34 = vmax.f32 %v2765_v5, 0.0  ;;  %v2727_v30 = vadd.f32 %v2681_v12, %v10546_v61  ;;  %v5952_v41 = vadd.f32 %v5951_v57, %v5950_v54  ;;  %v2937_v60 = vsel %vm10547_vm9, %v2923_v2, %v2924_v29  ;;  %v6877_v12 = vld [vmem:[#allocation7 + $0x140] sm:$0xff]   ;;  %v10550_v57 = vld [vmem:[#allocation29_spill] sm:$0xff]  ;;  %vm10554_vm9 = vmmov %vm10548_vm15 }
 0x26f   : > { %10545 = vst [vmem:[#allocation66_spill] sm:$0xff] %v9110_v53  ;;  %v5953_v7 = vpop.f32.mrf.mxu0  ;;  %v2841_v50 = vsel %vm10548_vm15, %v2827_v49, %v2828_v1  ;;  %v10552_v49 = vld [vmem:[#allocation25_spill] sm:$0xff]  ;;  %6600 = vmatprep.subr.bf16.mxu1 %v6877_v12  ;;  %vm10557_vm15 = vmmov %vm10551_vm0 }
 0x270   : > { %v2829_v38 = vrot.slane %v2797_v34, 7  ;;  %v2925_v11 = vrot.slane %v2797_v34, 1  ;;  %v2766_v26 = vadd.f32 %v8758_v62, %v2727_v30  ;;  %v2686_v4 = vadd.f32 %v5952_v41, %v8994_v22  ;;  %6601 = vmatpush3.bf16.msra.mxu1 %v6877_v12 }
 0x271   : > { %v5954_v52 = vpop.f32.mrf.mxu0  ;;  %v9122_v5 = vpack.c.bf16 %v2841_v50, %v2842_v15  ;;  %v2174_v56 = vadd.f32 %v10553_v10, %v10552_v49 }
 0x272   : > { %v2798_v54 = vmax.f32 %v2766_v26, 0.0  ;;  %v2728_v61 = vadd.f32 %v2686_v4, %v10550_v57  ;;  %v5955_v2 = vadd.f32 %v5954_v52, %v5953_v7  ;;  %v2936_v28 = vsel %vm10551_vm0, %v2924_v29, %v2925_v11  ;;  %v10555_v29 = vld [vmem:[#allocation43_spill] sm:$0xff]  ;;  %vm10558_vm0 = vmmov %vm10554_vm9 }
 0x273   : > { %10549 = vst [vmem:[#allocation67_spill] sm:$0xff] %v9122_v5  ;;  %v5956_v24 = vpop.f32.mrf.mxu0  ;;  %v9129_v55 = vpack.c.bf16 %v2936_v28, %v2937_v60  ;;  %v2840_v22 = vsel %vm10554_vm9, %v2828_v1, %v2829_v38  ;;  %vm10561_vm9 = vmmov %vm10557_vm15 }
 0x274   : > { %v2830_v15 = vrot.slane %v2798_v54, 7  ;;  %v2926_v30 = vrot.slane %v2798_v54, 1  ;;  %v2767_v41 = vadd.f32 %v8758_v62, %v2728_v61  ;;  %v2689_v50 = vadd.f32 %v5955_v2, %v9021_v36 }
 0x275   : > { %v5957_v7 = vpop.f32.mrf.mxu0  ;;  %6579 = vmatmul.mubr.msk.bf16.gmra.mxu0 %vm10467_vm13, %v9129_v55  ;;  %v9138_v10 = vpack.c.bf16 %v2798_v54, %v2797_v34  ;;  %v10560_v54 = vld [vmem:[#allocation34_spill] sm:$0xff] }
 0x276   : > { %v2799_v28 = vmax.f32 %v2767_v41, 0.0  ;;  %v2729_v60 = vadd.f32 %v2689_v50, %v2174_v56  ;;  %v5958_v26 = vadd.f32 %v5957_v7, %v5956_v24  ;;  %v2935_v1 = vsel %vm10557_vm15, %v2925_v11, %v2926_v30  ;;  %vm10562_vm15 = vmmov %vm10558_vm0 }
 0x277   : > { %10556 = vst [vmem:[#allocation68_spill] sm:$0xff] %v9138_v10  ;;  %v5959_v4 = vpop.f32.mrf.mxu0  ;;  %v2839_v52 = vsel %vm10558_vm0, %v2829_v38, %v2830_v15  ;;  %vm10569_vm13 = vmmov %vm10562_vm15 }
 0x278   : > { %v2831_v57 = vrot.slane %v2799_v28, 7  ;;  %v2927_v36 = vrot.slane %v2799_v28, 1  ;;  %v2768_v12 = vadd.f32 %v8758_v62, %v2729_v60  ;;  %v2694_v61 = vadd.f32 %v8981_v25, %v5958_v26 }
 0x279   : > { %v5960_v2 = vpop.f32.mrf.mxu0  ;;  %v9146_v49 = vpack.c.bf16 %v2839_v52, %v2840_v22  ;;  %v10563_v22 = vld [vmem:[#allocation45_spill] sm:$0xff]  ;;  %v10566_v52 = vld [vmem:[#allocation36_spill] sm:$0xff] }
 0x27a   : > { %v2800_v34 = vmax.f32 %v2768_v12, 0.0  ;;  %v2730_v56 = vadd.f32 %v2694_v61, %v10560_v54  ;;  %v5961_v24 = vadd.f32 %v5960_v2, %v5959_v4  ;;  %v2934_v11 = vsel %vm10561_vm9, %v2926_v30, %v2927_v36  ;;  %v6882_v54 = vld [vmem:[#allocation7 + $0x1f8] sm:$0xff]  }
 0x27b   : > { %10559 = vst [vmem:[#allocation15_spill] sm:$0xff] %v9146_v49  ;;  %v9151_v41 = vpack.c.bf16 %v2934_v11, %v2935_v1  ;;  %v2838_v38 = vsel %vm10562_vm15, %v2830_v15, %v2831_v57  ;;  %vm10564_vm0 = vnez %v10563_v22  ;;  %6258 = vmatprep.subr.bf16.mxu1 %v6882_v54 }
 0x27c   : > { %v2832_v50 = vrot.slane %v2800_v34, 7  ;;  %v2928_v7 = vrot.slane %v2800_v34, 1  ;;  %v2769_v60 = vadd.f32 %v8758_v62, %v2730_v56  ;;  %v2697_v25 = vadd.f32 %v9007_v43, %v5961_v24 }
 0x27d   : > { %6582 = vmatprep.mubr.msk.bf16.mxu0 %vm10564_vm0, %v9151_v41  ;;  %v9160_v26 = vpack.c.bf16 %v2800_v34, %v2799_v28  ;;  %vm10568_vm0 = vmmov %vm10561_vm9 }
 0x27e   : > { %v2801_v4 = vmax.f32 %v2769_v60, 0.0  ;;  %v2731_v30 = vadd.f32 %v2697_v25, %v10566_v52  ;;  %v2933_v1 = vsel %vm10561_vm9, %v2927_v36, %v2928_v7  ;;  %v2837_v15 = vsel %vm10562_vm15, %v2831_v57, %v2832_v50  ;;  %v10573_v60 = vld [vmem:[#allocation37_spill] sm:$0xff]  ;;  %vm10578_vm15 = vmmov %vm10561_vm9 }
 0x27f   : > { %10565 = vst [vmem:[#allocation12_spill] sm:$0xff] %v9160_v26  ;;  %v9167_v12 = vpack.c.bf16 %v2837_v15, %v2838_v38  ;;  %v10571_v38 = vld [vmem:[#allocation48_spill] sm:$0xff]  ;;  %v10574_v25 = vrot.slane %v10573_v60, 7 }
 0x280   : > { %v2833_v61 = vrot.slane %v2801_v4, 7  ;;  %v2929_v2 = vrot.slane %v2801_v4, 1  ;;  %v2770_v43 = vadd.f32 %v8758_v62, %v2731_v30  ;;  %v10572_v62 = vld [vmem:[#allocation40_spill] sm:$0xff] }
 0x281   : > { %10567 = vst [vmem:[#allocation20_spill] sm:$0xff] %v9167_v12 }
 0x282   : > { %v2802_v56 = vmax.f32 %v2770_v43, 0.0  ;;  %v2932_v28 = vsel %vm10568_vm0, %v2928_v7, %v2929_v2  ;;  %v2836_v34 = vsel %vm10569_vm13, %v2832_v50, %v2833_v61  ;;  %vm10575_vm0 = vmmov %vm10569_vm13 }
 0x283   : > { %v9174_v24 = vpack.c.bf16 %v2932_v28, %v2933_v1  ;;  %vm10576_vm13 = vmmov %vm10575_vm0  ;;  %v10579_v1 = vld [vmem:[#allocation44_spill] sm:$0xff]  ;;  %v10583_v28 = vld [vmem:[#allocation13_spill] sm:$0xff] }
 0x284   : > { %v2834_v36 = vrot.slane %v2802_v56, 7  ;;  %v2930_v11 = vrot.slane %v2802_v56, 1  ;;  %v9176_v57 = vpack.c.bf16 %v2802_v56, %v2801_v4  ;;  %v10577_v4 = vrot.slane %v10573_v60, 1  ;;  %v10581_v56 = vld [vmem:[#allocation17_spill] sm:$0xff] }
 0x285   : > { %6583 = vmatmul.mubr.msk.bf16.gmra.mxu0 %vm10470_vm5, %v9174_v24  ;;  %vm10582_vm5 = vnez %v10581_v56  ;;  %v6885_v60 = vld [vmem:[#allocation7 + $0x208] sm:$0xff]  }
 0x286   : > { %10570 = vst [vmem:[#allocation24_spill] sm:$0xff] %v9176_v57  ;;  %3782 = vmatprep.mubr.bf16.mxu0 %v10572_v62  ;;  %v2866_v7 = vsel %vm10575_vm0, %v2834_v36, %v10574_v25  ;;  %v2835_v50 = vsel %vm10576_vm13, %v2833_v61, %v2834_v36  ;;  %v2931_v52 = vsel %vm10561_vm9, %v2929_v2, %v2930_v11  ;;  %v6878_v61 = vld [vmem:[#allocation7 + $0x230] sm:$0xff]   ;;  %v6880_v36 = vld [vmem:[#allocation7 + $0x220] sm:$0xff]  }
 0x287   : > { %v2962_v30 = vsel %vm10578_vm15, %v2930_v11, %v10577_v4  ;;  %v5247_v15 = vpack.c.bf16 %v10579_v1, %v2866_v7  ;;  %v9195_v43 = vpack.c.bf16 %v2835_v50, %v2836_v34  ;;  %v10584_v2 = vld [vmem:[#allocation22_spill] sm:$0xff]  ;;  %v10586_v34 = vld [vmem:[#allocation52_spill] sm:$0xff]  ;;  %v10587_v11 = vld [vmem:[#allocation27_spill] sm:$0xff] }
 0x288   : > { %v9197_v54 = vpack.c.bf16 %v2962_v30, %v2931_v52  ;;  %vm10585_vm0 = vnez %v10584_v2  ;;  %v6883_v62 = vld [vmem:[#allocation7 + $0x210] sm:$0xff]   ;;  %v10589_v25 = vld [vmem:[#allocation32_spill] sm:$0xff]  ;;  %v10595_v4 = vld [vmem:[#allocation47_spill] sm:$0xff] }
 0x289   : > { %10580 = vst [vmem:[#allocation21_spill] sm:$0xff] %v9195_v43  ;;  %5248 = vmatmul.mubr.msk.bf16.gmra.mxu1 %vm10582_vm5, %v5247_v15  ;;  %vm10590_vm13 = vnez %v10589_v25  ;;  %v6887_v7 = vld [vmem:[#allocation7 + $0x200] sm:$0xff]   ;;  %v10591_v50 = vld [vmem:[#allocation38_spill] sm:$0xff]  ;;  %v10599_v1 = vld [vmem:[#allocation51_spill] sm:$0xff] }
 0x28a   : > { %3332 = vmatprep.mubr.bf16.mxu1 %v10583_v28  ;;  %vm10592_vm9 = vnez %v10591_v50  ;;  %v10593_v52 = vld [vmem:[#allocation42_spill] sm:$0xff] }
 0x28b   : > { %vm10594_vm15 = vnez %v10593_v52  ;;  %v10597_v30 = vld [vmem:[#allocation50_spill] sm:$0xff] }
 0x28d   : > { %5362 = vmatmul.mubr.msk.bf16.vlgmr.msra.gmra.mxu0 %vm10582_vm5, %v5247_v15  ;;  %vm10588_vm5 = vnez %v10587_v11  ;;  %v10601_v15 = vld [vmem:[#allocation53_spill] sm:$0xff] }
 0x28e   : > { %3790 = vmatprep.mubr.bf16.mxu0 %v10583_v28  ;;  %6635 = vmatpush3.bf16.msra.mxu0 %v9112_v19  ;;  %v6881_v19 = vld [vmem:[#allocation7 + $0x218] sm:$0xff]  }
 0x28f   : > { %6636 = vmatprep.subr.bf16.mxu0 %v6878_v61 }
 0x291   : > { %5251 = vmatmul.mubr.msk.bf16.gmra.mxu1 %vm10585_vm0, %v8827_v3 }
 0x292   : > { %3340 = vmatprep.mubr.bf16.mxu1 %v10586_v34  ;;  %6637 = vmatpush3.bf16.msra.mxu0 %v6878_v61 }
 0x293   : > { %6638 = vmatprep.subr.bf16.mxu0 %v6879_v40 }
 0x295   : > { %5365 = vmatmul.mubr.msk.bf16.gmra.mxu0 %vm10585_vm0, %v8827_v3 }
 0x296   : > { %3798 = vmatprep.mubr.bf16.mxu0 %v10586_v34  ;;  %6639 = vmatpush3.bf16.msra.mxu0 %v6879_v40 }
 0x297   : > { %6640 = vmatprep.subr.bf16.mxu0 %v6880_v36 }
 0x299   : > { %5254 = vmatmul.mubr.msk.bf16.gmra.mxu1 %vm10588_vm5, %v8854_v14 }
 0x29a   : > { %3348 = vmatprep.mubr.bf16.mxu1 %v8872_v17  ;;  %6641 = vmatpush3.bf16.msra.mxu0 %v6880_v36  ;;  %v10603_v36 = vld [vmem:[#allocation56_spill] sm:$0xff] }
 0x29b   : > { %6642 = vmatprep.subr.bf16.mxu0 %v6881_v19 }
 0x29d   : > { %5368 = vmatmul.mubr.msk.bf16.gmra.mxu0 %vm10588_vm5, %v8854_v14 }
 0x29e   : > { %3806 = vmatprep.mubr.bf16.mxu0 %v8872_v17  ;;  %6643 = vmatpush3.bf16.msra.mxu0 %v6881_v19  ;;  %v10605_v19 = vld [vmem:[#allocation59_spill] sm:$0xff] }
 0x29f   : > { %6644 = vmatprep.subr.bf16.mxu0 %v6883_v62 }
 0x2a1   : > { %5257 = vmatmul.mubr.msk.bf16.gmra.mxu1 %vm10590_vm13, %v8884_v31 }
 0x2a2   : > { %3356 = vmatprep.mubr.bf16.mxu1 %v8900_v63  ;;  %6645 = vmatpush3.bf16.msra.mxu0 %v6883_v62 }
 0x2a3   : > { %6646 = vmatprep.subr.bf16.mxu0 %v6885_v60 }
 0x2a5   : > { %5371 = vmatmul.mubr.msk.bf16.gmra.mxu0 %vm10590_vm13, %v8884_v31  ;;  %vm10596_vm13 = vnez %v10595_v4 }
 0x2a6   : > { %3814 = vmatprep.mubr.bf16.mxu0 %v8900_v63  ;;  %6647 = vmatpush3.bf16.msra.mxu0 %v6885_v60 }
 0x2a7   : > { %6648 = vmatprep.subr.bf16.mxu0 %v6887_v7 }
 0x2a9   : > { %5260 = vmatmul.mubr.msk.bf16.gmra.mxu1 %vm10592_vm9, %v8911_v39 }
 0x2aa   : > { %3364 = vmatprep.mubr.bf16.mxu1 %v8929_v27  ;;  %6649 = vmatpush3.bf16.msra.mxu0 %v6887_v7 }
 0x2ad   : > { %5374 = vmatmul.mubr.msk.bf16.gmra.mxu0 %vm10592_vm9, %v8911_v39  ;;  %vm10598_vm9 = vnez %v10597_v30 }
 0x2ae   : > { %3822 = vmatprep.mubr.bf16.mxu0 %v8929_v27 }
 0x2b1   : > { %5263 = vmatmul.mubr.msk.bf16.gmra.mxu1 %vm10594_vm15, %v8939_v51 }
 0x2b2   : > { %3372 = vmatprep.mubr.bf16.mxu1 %v8955_v37 }
 0x2b5   : > { %5377 = vmatmul.mubr.msk.bf16.gmra.mxu0 %vm10594_vm15, %v8939_v51  ;;  %vm10600_vm15 = vnez %v10599_v1 }
 0x2b6   : > { %3830 = vmatprep.mubr.bf16.mxu0 %v8955_v37 }
 0x2b9   : > { %5266 = vmatmul.mubr.msk.bf16.gmra.mxu1 %vm10596_vm13, %v8966_v48 }
 0x2ba   : > { %3380 = vmatprep.mubr.bf16.mxu1 %v8986_v16 }
 0x2bd   : > { %5380 = vmatmul.mubr.msk.bf16.gmra.mxu0 %vm10596_vm13, %v8966_v48  ;;  %vm10602_vm13 = vnez %v10601_v15 }
 0x2be   : > { %3838 = vmatprep.mubr.bf16.mxu0 %v8986_v16 }
 0x2c1   : > { %5269 = vmatmul.mubr.msk.bf16.gmra.mxu1 %vm10598_vm9, %v8996_v46 }
 0x2c2   : > { %3388 = vmatprep.mubr.bf16.mxu1 %v9012_v35 }
 0x2c5   : > { %5383 = vmatmul.mubr.msk.bf16.gmra.mxu0 %vm10598_vm9, %v8996_v46 }
 0x2c6   : > { %3846 = vmatprep.mubr.bf16.mxu0 %v9012_v35 }
 0x2c9   : > { %5272 = vmatmul.mubr.msk.bf16.gmra.mxu1 %vm10600_vm15, %v9023_v0 }
 0x2ca   : > { %3396 = vmatprep.mubr.bf16.mxu1 %v9039_v20 }
 0x2cd   : > { %5386 = vmatmul.mubr.msk.bf16.gmra.mxu0 %vm10600_vm15, %v9023_v0  ;;  %vm10604_vm15 = vnez %v10603_v36 }
 0x2ce   : > { %3854 = vmatprep.mubr.bf16.mxu0 %v9039_v20 }
 0x2d1   : > { %5275 = vmatmul.mubr.msk.bf16.gmra.mxu1 %vm10602_vm13, %v9049_v9 }
 0x2d2   : > { %3404 = vmatprep.mubr.bf16.mxu1 %v9063_v32 }
 0x2d5   : > { %v9274_v56 = vpop.f32.mrf.mxu0  ;;  %5389 = vmatmul.mubr.msk.bf16.gmra.mxu0 %vm10602_vm13, %v9049_v9  ;;  %vm10606_vm13 = vnez %v10605_v19 }
 0x2d6   : > { %3862 = vmatprep.mubr.bf16.mxu0 %v9063_v32  ;;  %v6891_v32 = vld [vmem:[#allocation7 + $0x1e0] sm:$0xff]  }
 0x2d7   : > { %v3479_v61 = vpop.f32.mrf.mxu0 }
 0x2d8   : > { %v9281_v40 = vadd.f32 %v9041_v47, %v3479_v61  ;;  %v10607_v47 = vld [vmem:[#allocation62_spill] sm:$0xff]  ;;  %v10609_v61 = vld [vmem:[#allocation65_spill] sm:$0xff] }
 0x2d9   : > { %5278 = vmatmul.mubr.msk.bf16.gmra.mxu1 %vm10604_vm15, %v9072_v58  ;;  %vm10608_vm9 = vnez %v10607_v47  ;;  %v9303_v62 = vpop.f32.mrf.mxu0 }
 0x2da   : > { %3412 = vmatprep.mubr.bf16.mxu1 %v9088_v6 }
 0x2db   : > { %v9309_v60 = vpop.f32.mrf.mxu0 }
 0x2dd   : > { %5392 = vmatmul.mubr.msk.bf16.gmra.mxu0 %vm10604_vm15, %v9072_v58 }
 0x2de   : > { %3870 = vmatprep.mubr.bf16.mxu0 %v9088_v6  ;;  %v10615_v6 = vld [vmem:[#allocation49_spill] sm:$0xff] }
 0x2e1   : > { %5281 = vmatmul.mubr.msk.bf16.gmra.mxu1 %vm10606_vm13, %v9096_v42 }
 0x2e2   : > { %3420 = vmatprep.mubr.bf16.mxu1 %v9110_v53 }
 0x2e5   : > { %5395 = vmatmul.mubr.msk.bf16.gmra.mxu0 %vm10606_vm13, %v9096_v42  ;;  %v9311_v7 = vpop.f32.mrf.mxu0  ;;  %vm10610_vm13 = vnez %v10609_v61  ;;  %v6884_v61 = vld [vmem:[#allocation7 + $0x1b8] sm:$0xff]  }
 0x2e6   : > { %3878 = vmatprep.mubr.bf16.mxu0 %v9110_v53 }
 0x2e7   : > { %v9317_v53 = vpop.f32.mrf.mxu0 }
 0x2e9   : > { %5284 = vmatmul.mubr.msk.bf16.gmra.mxu1 %vm10608_vm9, %v9122_v5  ;;  %v9323_v47 = vpop.f32.mrf.mxu0 }
 0x2ea   : > { %3428 = vmatprep.mubr.bf16.mxu1 %v9138_v10 }
 0x2eb   : > { %v9331_v42 = vpop.f32.mrf.mxu0 }
 0x2ed   : > { %5398 = vmatmul.mubr.msk.bf16.gmra.mxu0 %vm10608_vm9, %v9122_v5  ;;  %v10613_v5 = vld [vmem:[#allocation46_spill] sm:$0xff] }
 0x2ee   : > { %3886 = vmatprep.mubr.bf16.mxu0 %v9138_v10  ;;  %v10611_v10 = vld [vmem:[#allocation69_spill] sm:$0xff] }
 0x2ef   : > { %vm10612_vm9 = vnez %v10611_v10  ;;  %v6889_v10 = vld [vmem:[#allocation7 + $0x1e8] sm:$0xff]  }
 0x2f1   : > { %5287 = vmatmul.mubr.msk.bf16.gmra.mxu1 %vm10610_vm13, %v9146_v49 }
 0x2f2   : > { %3436 = vmatprep.mubr.bf16.mxu1 %v9160_v26 }
 0x2f5   : > { %5401 = vmatmul.mubr.msk.bf16.gmra.mxu0 %vm10610_vm13, %v9146_v49  ;;  %v6886_v49 = vld [vmem:[#allocation7 + $0x1f0] sm:$0xff]  }
 0x2f6   : > { %3894 = vmatprep.mubr.bf16.mxu0 %v9160_v26  ;;  %v9337_v26 = vpop.f32.mrf.mxu0 }
 0x2f8   : > { %v9345_v19 = vpop.f32.mrf.mxu0 }
 0x2f9   : > { %5290 = vmatmul.mubr.msk.bf16.gmra.mxu1 %vm10612_vm9, %v9167_v12 }
 0x2fa   : > { %6602 = vmatprep.mubr.msk.bf16.mxu1 %vm10516_vm8, %v10613_v5  ;;  %v6888_v5 = vld [vmem:[#allocation7 + $0x1b0] sm:$0xff]   ;;  %v9353_v58 = vpop.f32.mrf.mxu0 }
 0x2fd   : > { %5404 = vmatmul.mubr.msk.bf16.gmra.mxu0 %vm10612_vm9, %v9167_v12  ;;  %v6890_v12 = vld [vmem:[#allocation7 + $0x1a8] sm:$0xff]  }
 0x2fe   : > { %3902 = vmatprep.mubr.bf16.mxu0 %v9176_v57  ;;  %v10617_v57 = vld [vmem:[#allocation18_spill] sm:$0xff] }
 0x2ff   : > { %vm10618_vm8 = vnez %v10617_v57 }
 0x301   : > { %6603 = vmatmul.mubr.msk.bf16.vlgmr.msra.gmra.mxu1 %vm7369_vm7, %v10615_v6 }
 0x302   : > { %6606 = vmatprep.mubr.msk.bf16.mxu1 %vm10411_vm12, %v8863_v18  ;;  %6259 = vmatpush3.bf16.msra.mxu1 %v6884_v61  ;;  %v9361_v61 = vpop.f32.mrf.mxu0 }
 0x303   : > { %6260 = vmatprep.subr.bf16.mxu1 %v6886_v49  ;;  %v6892_v49 = vld [vmem:[#allocation7 + $0x1a0] sm:$0xff]  }
 0x305   : > { %5407 = vmatmul.mubr.msk.bf16.gmra.mxu0 %vm10618_vm8, %v9195_v43  ;;  %v9363_v36 = vpop.f32.mrf.mxu0 }
 0x306   : > { %6650 = vmatprep.mubr.msk.bf16.mxu0 %vm7369_vm7, %v10615_v6  ;;  %6261 = vmatpush3.bf16.msra.mxu1 %v6888_v5  ;;  %v6893_v6 = vld [vmem:[#allocation7 + $0x1d8] sm:$0xff]   ;;  %10619 = vst [vmem:[#allocation23_spill] sm:$0xff] %v9363_v36  ;;  %v6895_v5 = vld [vmem:[#allocation7 + $0x1d0] sm:$0xff]  }
 0x307   : > { %6262 = vmatprep.subr.bf16.mxu1 %v6889_v10  ;;  %v6894_v10 = vld [vmem:[#allocation7 + $0x198] sm:$0xff]  }
 0x309   : > { %6607 = vmatmul.mubr.msk.bf16.gmra.mxu1 %vm10414_vm10, %v8889_v13 }
 0x30a   : > { %6610 = vmatprep.mubr.msk.bf16.mxu1 %vm10417_vm3, %v8918_v45  ;;  %6263 = vmatpush3.bf16.msra.mxu1 %v6890_v12  ;;  %v9371_v12 = vpop.f32.mrf.mxu0 }
 0x30b   : > { %6264 = vmatprep.subr.bf16.mxu1 %v6891_v32  ;;  %v10621_v32 = vld [vmem:[#allocation54_spill] sm:$0xff] }
 0x30c   : > { %v9379_v8 = vpop.f32.mrf.mxu0 }
 0x30d   : > { %6651 = vmatmul.mubr.msk.bf16.vlgmr.msra.gmra.mxu0 %vm10411_vm12, %v8863_v18  ;;  %v6897_v18 = vld [vmem:[#allocation7 + $0x1c8] sm:$0xff]   ;;  %vm10645_vm12 = vnez %v10589_v25 }
 0x30e   : > { %6654 = vmatprep.mubr.msk.bf16.mxu0 %vm10414_vm10, %v8889_v13  ;;  %6265 = vmatpush3.bf16.msra.mxu1 %v6892_v49  ;;  %v6898_v13 = vld [vmem:[#allocation7 + $0x188] sm:$0xff]   ;;  %v6899_v49 = vld [vmem:[#allocation7 + $0x1c0] sm:$0xff]   ;;  %vm10646_vm10 = vnez %v10591_v50 }
 0x30f   : > { %6266 = vmatprep.subr.bf16.mxu1 %v6893_v6  ;;  %v9387_v6 = vpop.f32.mrf.mxu0 }
 0x311   : > { %6611 = vmatmul.mubr.msk.bf16.gmra.mxu1 %vm10420_vm6, %v8946_v33 }
 0x312   : > { %6614 = vmatprep.mubr.msk.bf16.mxu1 %vm10423_vm4, %v10621_v32  ;;  %6267 = vmatpush3.bf16.msra.mxu1 %v6894_v10  ;;  %v10623_v10 = vld [vmem:[#allocation55_spill] sm:$0xff] }
 0x313   : > { %6268 = vmatprep.subr.bf16.mxu1 %v6895_v5  ;;  %v10625_v5 = vld [vmem:[#allocation33_spill] sm:$0xff] }
 0x314   : > { %vm10626_vm7 = vnez %v10625_v5 }
 0x315   : > { %6655 = vmatmul.mubr.msk.bf16.gmra.mxu0 %vm10417_vm3, %v8918_v45  ;;  %v9395_v45 = vpop.f32.mrf.mxu0  ;;  %vm10647_vm3 = vnez %v10593_v52 }
 0x316   : > { %6658 = vmatprep.mubr.msk.bf16.mxu0 %vm10420_vm6, %v8946_v33  ;;  %6269 = vmatpush3.bf16.msra.mxu1 %v6896_v21  ;;  %v10628_v21 = vld [vmem:[#allocation60_spill] sm:$0xff]  ;;  %vm10632_vm6 = vnez %v10555_v29  ;;  %v6005_v29 = vpop.f32.mrf.mxu1 }
 0x317   : > { %6270 = vmatprep.subr.bf16.mxu1 %v6897_v18  ;;  %v9403_v33 = vpop.f32.mrf.mxu0 }
 0x319   : > { %6615 = vmatmul.mubr.msk.bf16.gmra.mxu1 %vm10426_vm14, %v10623_v10 }
 0x31a   : > { %6618 = vmatprep.mubr.msk.bf16.mxu1 %vm10626_vm7, %v9030_v44  ;;  %6271 = vmatpush3.bf16.msra.mxu1 %v6898_v13  ;;  %v9411_v13 = vpop.f32.mrf.mxu0 }
 0x31b   : > { %6272 = vmatprep.subr.bf16.mxu1 %v6899_v49 }
 0x31c   : > { %v9419_v43 = vpop.f32.mrf.mxu0 }
 0x31d   : > { %6659 = vmatmul.mubr.msk.bf16.gmra.mxu0 %vm10423_vm4, %v10621_v32  ;;  %v10630_v32 = vld [vmem:[#allocation64_spill] sm:$0xff]  ;;  %vm10633_vm4 = vnez %v10563_v22 }
 0x31e   : > { %6662 = vmatprep.mubr.msk.bf16.mxu0 %vm10426_vm14, %v10623_v10  ;;  %6273 = vmatpush3.bf16.msra.mxu1 %v6900_v59  ;;  %vm10634_vm14 = vnez %v10571_v38  ;;  %v10636_v59 = vld [vmem:[#allocation19_spill] sm:$0xff] }
 0x321   : > { %6619 = vmatmul.mubr.msk.bf16.gmra.mxu1 %vm10462_vm11, %v9054_v23 }
 0x322   : > { %6622 = vmatprep.mubr.msk.bf16.mxu1 %vm10464_vm2, %v10628_v21 }
 0x325   : > { %6663 = vmatmul.mubr.msk.bf16.gmra.mxu0 %vm10626_vm7, %v9030_v44  ;;  %v9421_v36 = vpop.f32.mrf.mxu0 }
 0x326   : > { %6666 = vmatprep.mubr.msk.bf16.mxu0 %vm10462_vm11, %v9054_v23  ;;  %vm10649_vm11 = vnez %v10597_v30 }
 0x327   : > { %v9429_v10 = vpop.f32.mrf.mxu0 }
 0x329   : > { %6623 = vmatmul.mubr.msk.bf16.gmra.mxu1 %vm10465_vm1, %v10630_v32  ;;  %v9437_v44 = vpop.f32.mrf.mxu0 }
 0x32a   : > { %6626 = vmatprep.mubr.msk.bf16.mxu1 %vm10632_vm6, %v9129_v55 }
 0x32b   : > { %v9445_v23 = vpop.f32.mrf.mxu0 }
 0x32d   : > { %6667 = vmatmul.mubr.msk.bf16.gmra.mxu0 %vm10464_vm2, %v10628_v21  ;;  %vm10648_vm2 = vnez %v10595_v4 }
 0x32e   : > { %6670 = vmatprep.mubr.msk.bf16.mxu0 %vm10465_vm1, %v10630_v32  ;;  %vm10637_vm1 = vnez %v10636_v59 }
 0x331   : > { %6627 = vmatmul.mubr.msk.bf16.gmra.mxu1 %vm10633_vm4, %v9151_v41 }
 0x332   : > { %6630 = vmatprep.mubr.msk.bf16.mxu1 %vm10634_vm14, %v9174_v24 }
 0x335   : > { %6671 = vmatmul.mubr.msk.bf16.gmra.mxu0 %vm10632_vm6, %v9129_v55  ;;  %v9453_v5 = vpop.f32.mrf.mxu0 }
 0x336   : > { %6674 = vmatprep.mubr.msk.bf16.mxu0 %vm10633_vm4, %v9151_v41  ;;  %10635 = vst [vmem:[#allocation29_spill] sm:$0xff] %v9453_v5 }
 0x337   : > { %v9459_v57 = vpop.f32.mrf.mxu0 }
 0x339   : > { %6631 = vmatmul.mubr.msk.bf16.gmra.mxu1 %vm10637_vm1, %v9197_v54  ;;  %v9467_v55 = vpop.f32.mrf.mxu0 }
 0x33a   : > { %4297 = vmatprep.mubr.bf16.mxu1 %v10583_v28  ;;  %10638 = vst [vmem:[#allocation25_spill] sm:$0xff] %v9467_v55  ;;  %v10641_v28 = vmov 0  }
 0x33b   : > { %v9473_v41 = vpop.f32.mrf.mxu0 }
 0x33c   : > { %10639 = vst [vmem:[#allocation31_spill] sm:$0xff] %v9473_v41 }
 0x33d   : > { %6675 = vmatmul.mubr.msk.bf16.gmra.mxu0 %vm10634_vm14, %v9174_v24  ;;  %v6006_v24 = vpop.f32.mrf.mxu1 }
 0x33e   : > { %6678 = vmatprep.mubr.msk.bf16.mxu0 %vm10637_vm1, %v9197_v54 }
 0x341   : > { %5482 = vmatmul.mubr.msk.bf16.vlgmr.msra.gmra.mxu1 %vm10585_vm0, %v8827_v3  ;;  %vm10650_vm0 = vnez %v10599_v1 }
 0x342   : > { %4305 = vmatprep.mubr.bf16.mxu1 %v10586_v34 }
 0x345   : > { %v9475_v22 = vpop.f32.mrf.mxu0  ;;  %6679 = vmatmul.mubr.bf16.gmra.mxu0 %v10641_v28 }
 0x346   : > { %10640 = vst [vmem:[#allocation43_spill] sm:$0xff] %v9475_v22  ;;  %v6007_v22 = vadd.f32 %v6006_v24, %v6005_v29 }
 0x347   : > { %v9478_v38 = vpop.f32.mrf.mxu0 }
 0x348   : > { %10642 = vst [vmem:[#allocation34_spill] sm:$0xff] %v9478_v38 }
 0x349   : > { %v6008_v21 = vpop.f32.mrf.mxu1  ;;  %v9480_v54 = vpop.f32.mrf.mxu0  ;;  %5485 = vmatmul.mubr.msk.bf16.gmra.mxu1 %vm10588_vm5, %v8854_v14  ;;  %vm10651_vm5 = vnez %v10601_v15 }
 0x34a   : > { %10643 = vst [vmem:[#allocation45_spill] sm:$0xff] %v9480_v54  ;;  %4313 = vmatprep.mubr.bf16.mxu1 %v8872_v17 }
 0x34b   : > { %v6009_v3 = vpop.f32.mrf.mxu1  ;;  %v9486_v2 = vpop.f32.mrf.mxu0 }
 0x34c   : > { %10644 = vst [vmem:[#allocation36_spill] sm:$0xff] %v9486_v2  ;;  %v6010_v34 = vadd.f32 %v6009_v3, %v6008_v21  ;;  %v3483_v21 = vadd.f32 %v6007_v22, %v9309_v60 }
 0x34d   : > { %v6011_v18 = vpop.f32.mrf.mxu1  ;;  %v6138_v32 = vpop.f32.mrf.mxu0 }
 0x34e   : > { %v3488_v25 = vadd.f32 %v9274_v56, %v6010_v34 }
 0x34f   : > { %v6012_v49 = vpop.f32.mrf.mxu1  ;;  %v6139_v59 = vpop.f32.mrf.mxu0 }
 0x350   : > { %v6013_v55 = vadd.f32 %v6012_v49, %v6011_v18  ;;  %v6140_v38 = vadd.f32 %v6139_v59, %v6138_v32 }
 0x351   : > { %v6014_v5 = vpop.f32.mrf.mxu1  ;;  %v6141_v41 = vpop.f32.mrf.mxu0  ;;  %5488 = vmatmul.mubr.msk.bf16.gmra.mxu1 %vm10645_vm12, %v8884_v31 }
 0x352   : > { %4321 = vmatprep.mubr.bf16.mxu1 %v8900_v63  ;;  %v9493_v14 = vadd.f32 %v6140_v38, %v9281_v40 }
 0x353   : > { %v6015_v17 = vpop.f32.mrf.mxu1  ;;  %v6142_v11 = vpop.f32.mrf.mxu0 }
 0x354   : > { %v6016_v3 = vadd.f32 %v6015_v17, %v6014_v5  ;;  %v6143_v54 = vadd.f32 %v6142_v11, %v6141_v41  ;;  %v3491_v41 = vadd.f32 %v9303_v62, %v6013_v55 }
 0x355   : > { %v6017_v29 = vpop.f32.mrf.mxu1  ;;  %v6144_v24 = vpop.f32.mrf.mxu0 }
 0x356   : > { %v9496_v18 = vadd.f32 %v6143_v54, %v3483_v21  ;;  %v3496_v21 = vadd.f32 %v6016_v3, %v9317_v53 }
 0x357   : > { %v6018_v32 = vpop.f32.mrf.mxu1  ;;  %v6145_v49 = vpop.f32.mrf.mxu0 }
 0x358   : > { %v6019_v31 = vadd.f32 %v6018_v32, %v6017_v29  ;;  %v6146_v59 = vadd.f32 %v6145_v49, %v6144_v24 }
 0x359   : > { %v6020_v63 = vpop.f32.mrf.mxu1  ;;  %v6147_v2 = vpop.f32.mrf.mxu0  ;;  %5491 = vmatmul.mubr.msk.bf16.gmra.mxu1 %vm10646_vm10, %v8911_v39 }
 0x35a   : > { %4329 = vmatprep.mubr.bf16.mxu1 %v8929_v27  ;;  %v9503_v40 = vadd.f32 %v6146_v59, %v3488_v25  ;;  %v3499_v24 = vadd.f32 %v6019_v31, %v9331_v42 }
 0x35b   : > { %v6021_v60 = vpop.f32.mrf.mxu1  ;;  %v6148_v5 = vpop.f32.mrf.mxu0 }
 0x35c   : > { %v6022_v22 = vadd.f32 %v6021_v60, %v6020_v63  ;;  %v6149_v38 = vadd.f32 %v6148_v5, %v6147_v2 }
 0x35d   : > { %v6023_v54 = vpop.f32.mrf.mxu1  ;;  %v6150_v56 = vpop.f32.mrf.mxu0 }
 0x35e   : > { %v9506_v34 = vadd.f32 %v6149_v38, %v3491_v41  ;;  %v3504_v60 = vadd.f32 %v9311_v7, %v6022_v22 }
 0x35f   : > { %v6024_v17 = vpop.f32.mrf.mxu1  ;;  %v6151_v11 = vpop.f32.mrf.mxu0 }
 0x360   : > { %v6025_v50 = vadd.f32 %v6024_v17, %v6023_v54  ;;  %v6152_v39 = vadd.f32 %v6151_v11, %v6150_v56 }
 0x361   : > { %v6026_v29 = vpop.f32.mrf.mxu1  ;;  %v6153_v27 = vpop.f32.mrf.mxu0  ;;  %5494 = vmatmul.mubr.msk.bf16.gmra.mxu1 %vm10647_vm3, %v8939_v51 }
 0x362   : > { %4337 = vmatprep.mubr.bf16.mxu1 %v8955_v37  ;;  %v9513_v62 = vadd.f32 %v6152_v39, %v3496_v21  ;;  %v3507_v38 = vadd.f32 %v9323_v47, %v6025_v50 }
 0x363   : > { %v6027_v55 = vpop.f32.mrf.mxu1  ;;  %v6154_v2 = vpop.f32.mrf.mxu0 }
 0x364   : > { %v6028_v32 = vadd.f32 %v6027_v55, %v6026_v29  ;;  %v6155_v49 = vadd.f32 %v6154_v2, %v6153_v27 }
 0x365   : > { %v6029_v25 = vpop.f32.mrf.mxu1  ;;  %v6156_v53 = vpop.f32.mrf.mxu0 }
 0x366   : > { %v9516_v3 = vadd.f32 %v6155_v49, %v3499_v24  ;;  %v3512_v39 = vadd.f32 %v6028_v32, %v9345_v19 }
 0x367   : > { %v6030_v59 = vpop.f32.mrf.mxu1  ;;  %v6157_v63 = vpop.f32.mrf.mxu0 }
 0x368   : > { %v6031_v52 = vadd.f32 %v6030_v59, %v6029_v25  ;;  %v6158_v51 = vadd.f32 %v6157_v63, %v6156_v53 }
 0x369   : > { %v6032_v5 = vpop.f32.mrf.mxu1  ;;  %v6159_v37 = vpop.f32.mrf.mxu0  ;;  %5497 = vmatmul.mubr.msk.bf16.gmra.mxu1 %vm10648_vm2, %v8966_v48 }
 0x36a   : > { %4345 = vmatprep.mubr.bf16.mxu1 %v8986_v16  ;;  %v9523_v42 = vadd.f32 %v6158_v51, %v3504_v60  ;;  %v3515_v55 = vadd.f32 %v6031_v52, %v9361_v61 }
 0x36b   : > { %v6033_v31 = vpop.f32.mrf.mxu1  ;;  %v6160_v41 = vpop.f32.mrf.mxu0 }
 0x36c   : > { %v6034_v54 = vadd.f32 %v6033_v31, %v6032_v5  ;;  %v6161_v56 = vadd.f32 %v6160_v41, %v6159_v37 }
 0x36d   : > { %v6035_v17 = vpop.f32.mrf.mxu1  ;;  %v6162_v7 = vpop.f32.mrf.mxu0 }
 0x36e   : > { %v9526_v22 = vadd.f32 %v6161_v56, %v3507_v38  ;;  %v3520_v59 = vadd.f32 %v9337_v26, %v6034_v54 }
 0x36f   : > { %v6036_v11 = vpop.f32.mrf.mxu1  ;;  %v6163_v21 = vpop.f32.mrf.mxu0 }
 0x370   : > { %v6037_v4 = vadd.f32 %v6036_v11, %v6035_v17  ;;  %v6164_v48 = vadd.f32 %v6163_v21, %v6162_v7  ;;  %v10652_v7 = vld [vmem:[#allocation57_spill] sm:$0xff] }
 0x371   : > { %v6038_v29 = vpop.f32.mrf.mxu1  ;;  %v6165_v16 = vpop.f32.mrf.mxu0  ;;  %5500 = vmatmul.mubr.msk.bf16.gmra.mxu1 %vm10649_vm11, %v8996_v46 }
 0x372   : > { %4353 = vmatprep.mubr.bf16.mxu1 %v9012_v35  ;;  %v9533_v47 = vadd.f32 %v6164_v48, %v3512_v39  ;;  %v3523_v51 = vadd.f32 %v9353_v58, %v6037_v4 }
 0x373   : > { %v6039_v50 = vpop.f32.mrf.mxu1  ;;  %v6166_v27 = vpop.f32.mrf.mxu0 }
 0x374   : > { %v6040_v2 = vadd.f32 %v6039_v50, %v6038_v29  ;;  %v6167_v24 = vadd.f32 %v6166_v27, %v6165_v16 }
 0x375   : > { %v6041_v49 = vpop.f32.mrf.mxu1  ;;  %v6168_v19 = vpop.f32.mrf.mxu0 }
 0x376   : > { %v9536_v32 = vadd.f32 %v6167_v24, %v3515_v55  ;;  %v3528_v56 = vadd.f32 %v6040_v2, %v9371_v12  ;;  %v10653_v55 = vld [vmem:[#allocation23_spill] sm:$0xff] }
 0x377   : > { %v6042_v25 = vpop.f32.mrf.mxu1  ;;  %v6169_v53 = vpop.f32.mrf.mxu0 }
 0x378   : > { %v6043_v30 = vadd.f32 %v6042_v25, %v6041_v49  ;;  %v6170_v46 = vadd.f32 %v6169_v53, %v6168_v19  ;;  %v10654_v19 = vld [vmem:[#allocation58_spill] sm:$0xff]  ;;  %v10656_v53 = vld [vmem:[#allocation61_spill] sm:$0xff] }
 0x379   : > { %v6044_v63 = vpop.f32.mrf.mxu1  ;;  %v6171_v35 = vpop.f32.mrf.mxu0  ;;  %5503 = vmatmul.mubr.msk.bf16.gmra.mxu1 %vm10650_vm0, %v9023_v0 }
 0x37a   : > { %4361 = vmatprep.mubr.bf16.mxu1 %v9039_v20  ;;  %v9543_v61 = vadd.f32 %v6170_v46, %v3520_v59  ;;  %v3531_v39 = vadd.f32 %v6043_v30, %v9387_v6 }
 0x37b   : > { %v6045_v60 = vpop.f32.mrf.mxu1  ;;  %v6172_v52 = vpop.f32.mrf.mxu0 }
 0x37c   : > { %v6046_v5 = vadd.f32 %v6045_v60, %v6044_v63  ;;  %v6173_v37 = vadd.f32 %v6172_v52, %v6171_v35 }
 0x37d   : > { %v6047_v31 = vpop.f32.mrf.mxu1  ;;  %v6174_v26 = vpop.f32.mrf.mxu0 }
 0x37e   : > { %v9546_v41 = vadd.f32 %v6173_v37, %v3523_v51  ;;  %v3536_v2 = vadd.f32 %v10653_v55, %v6046_v5 }
 0x37f   : > { %v6048_v38 = vpop.f32.mrf.mxu1  ;;  %v6175_v54 = vpop.f32.mrf.mxu0 }
 0x380   : > { %v6049_v1 = vadd.f32 %v6048_v38, %v6047_v31  ;;  %v6176_v0 = vadd.f32 %v6175_v54, %v6174_v26 }
 0x381   : > { %v6050_v17 = vpop.f32.mrf.mxu1  ;;  %v6177_v20 = vpop.f32.mrf.mxu0  ;;  %5506 = vmatmul.mubr.msk.bf16.gmra.mxu1 %vm10651_vm5, %v9049_v9 }
 0x382   : > { %4369 = vmatprep.mubr.bf16.mxu1 %v10652_v7  ;;  %v9553_v58 = vadd.f32 %v6176_v0, %v3528_v56  ;;  %v3539_v46 = vadd.f32 %v9379_v8, %v6049_v1  ;;  %v10657_v0 = vld [vmem:[#allocation63_spill] sm:$0xff] }
 0x383   : > { %v6051_v11 = vpop.f32.mrf.mxu1  ;;  %v6178_v21 = vpop.f32.mrf.mxu0 }
 0x384   : > { %v6052_v4 = vadd.f32 %v6051_v11, %v6050_v17  ;;  %v6179_v48 = vadd.f32 %v6178_v21, %v6177_v20  ;;  %v10658_v17 = vld [vmem:[#allocation59_spill] sm:$0xff]  ;;  %v10660_v20 = vld [vmem:[#allocation66_spill] sm:$0xff] }
 0x385   : > { %v6053_v29 = vpop.f32.mrf.mxu1  ;;  %v6180_v12 = vpop.f32.mrf.mxu0 }
 0x386   : > { %v9556_v16 = vadd.f32 %v6179_v48, %v3531_v39  ;;  %v3544_v31 = vadd.f32 %v6052_v4, %v9403_v33 }
 0x387   : > { %v6054_v50 = vpop.f32.mrf.mxu1  ;;  %v6181_v27 = vpop.f32.mrf.mxu0 }
 0x388   : > { %v6055_v15 = vadd.f32 %v6054_v50, %v6053_v29  ;;  %v6182_v9 = vadd.f32 %v6181_v27, %v6180_v12 }
 0x389   : > { %v6056_v24 = vpop.f32.mrf.mxu1  ;;  %v6183_v49 = vpop.f32.mrf.mxu0  ;;  %5509 = vmatmul.mubr.msk.bf16.gmra.mxu1 %vm10604_vm15, %v10654_v19  ;;  %vm10659_vm15 = vnez %v10658_v17  ;;  %v10664_v19 = vld [vmem:[#allocation68_spill] sm:$0xff] }
 0x38a   : > { %4377 = vmatprep.mubr.bf16.mxu1 %v10656_v53  ;;  %v9563_v6 = vadd.f32 %v6182_v9, %v3536_v2  ;;  %v3547_v11 = vadd.f32 %v6055_v15, %v9419_v43 }
 0x38b   : > { %v6057_v59 = vpop.f32.mrf.mxu1  ;;  %v6184_v30 = vpop.f32.mrf.mxu0 }
 0x38c   : > { %v6058_v63 = vadd.f32 %v6057_v59, %v6056_v24  ;;  %v6185_v35 = vadd.f32 %v6184_v30, %v6183_v49  ;;  %v10661_v24 = vld [vmem:[#allocation67_spill] sm:$0xff]  ;;  %v10662_v49 = vld [vmem:[#allocation62_spill] sm:$0xff] }
 0x38d   : > { %v6059_v60 = vpop.f32.mrf.mxu1  ;;  %v6186_v52 = vpop.f32.mrf.mxu0  ;;  %vm10663_vm7 = vnez %v10662_v49 }
 0x38e   : > { %v9566_v51 = vadd.f32 %v6185_v35, %v3539_v46  ;;  %v3552_v50 = vadd.f32 %v9395_v45, %v6058_v63 }
 0x38f   : > { %v6060_v5 = vpop.f32.mrf.mxu1  ;;  %v6187_v37 = vpop.f32.mrf.mxu0 }
 0x390   : > { %v6061_v26 = vadd.f32 %v6060_v5, %v6059_v60  ;;  %v6188_v38 = vadd.f32 %v6187_v37, %v6186_v52 }
 0x391   : > { %v6062_v54 = vpop.f32.mrf.mxu1  ;;  %v6189_v56 = vpop.f32.mrf.mxu0  ;;  %5512 = vmatmul.mubr.msk.bf16.gmra.mxu1 %vm10659_vm15, %v10657_v0  ;;  %v10667_v0 = vld [vmem:[#allocation12_spill] sm:$0xff] }
 0x392   : > { %4385 = vmatprep.mubr.bf16.mxu1 %v10660_v20  ;;  %v9573_v8 = vadd.f32 %v6188_v38, %v3544_v31  ;;  %v3555_v53 = vadd.f32 %v9411_v13, %v6061_v26 }
 0x393   : > { %v6063_v1 = vpop.f32.mrf.mxu1  ;;  %v6190_v7 = vpop.f32.mrf.mxu0 }
 0x394   : > { %v6064_v21 = vadd.f32 %v6063_v1, %v6062_v54  ;;  %v6191_v39 = vadd.f32 %v6190_v7, %v6189_v56  ;;  %v10665_v54 = vld [vmem:[#allocation15_spill] sm:$0xff] }
 0x395   : > { %v6065_v48 = vpop.f32.mrf.mxu1  ;;  %v6192_v33 = vpop.f32.mrf.mxu0  ;;  %v10673_v56 = vld [vmem:[#allocation31_spill] sm:$0xff] }
 0x396   : > { %v9576_v4 = vadd.f32 %v6191_v39, %v3547_v11  ;;  %v3560_v52 = vadd.f32 %v6064_v21, %v9429_v10 }
 0x397   : > { %v6066_v29 = vpop.f32.mrf.mxu1  ;;  %v6193_v12 = vpop.f32.mrf.mxu0 }
 0x398   : > { %v6067_v27 = vadd.f32 %v6066_v29, %v6065_v48  ;;  %v6194_v55 = vadd.f32 %v6193_v12, %v6192_v33 }
 0x399   : > { %v6068_v2 = vpop.f32.mrf.mxu1  ;;  %v6195_v9 = vpop.f32.mrf.mxu0  ;;  %5515 = vmatmul.mubr.msk.bf16.gmra.mxu1 %vm10663_vm7, %v10661_v24  ;;  %v10670_v24 = vld [vmem:[#allocation24_spill] sm:$0xff] }
 0x39a   : > { %4393 = vmatprep.mubr.bf16.mxu1 %v10664_v19  ;;  %v9583_v43 = vadd.f32 %v6194_v55, %v3552_v50  ;;  %v3563_v20 = vadd.f32 %v6067_v27, %v9445_v23 }
 0x39b   : > { %v6069_v15 = vpop.f32.mrf.mxu1  ;;  %v6196_v25 = vpop.f32.mrf.mxu0 }
 0x39c   : > { %v6070_v59 = vadd.f32 %v6069_v15, %v6068_v2  ;;  %v6197_v30 = vadd.f32 %v6196_v25, %v6195_v9  ;;  %v10668_v2 = vld [vmem:[#allocation20_spill] sm:$0xff]  ;;  %v10675_v9 = vld [vmem:[#allocation25_spill] sm:$0xff] }
 0x39d   : > { %v6071_v46 = vpop.f32.mrf.mxu1  ;;  %v6198_v45 = vpop.f32.mrf.mxu0 }
 0x39e   : > { %v9586_v63 = vadd.f32 %v6197_v30, %v3555_v53  ;;  %v3568_v33 = vadd.f32 %v9421_v36, %v6070_v59 }
 0x39f   : > { %v6072_v35 = vpop.f32.mrf.mxu1  ;;  %v6199_v60 = vpop.f32.mrf.mxu0 }
 0x3a0   : > { %v6073_v5 = vadd.f32 %v6072_v35, %v6071_v46  ;;  %v6200_v37 = vadd.f32 %v6199_v60, %v6198_v45 }
 0x3a1   : > { %v6074_v31 = vpop.f32.mrf.mxu1  ;;  %v6201_v38 = vpop.f32.mrf.mxu0  ;;  %5518 = vmatmul.mubr.msk.bf16.gmra.mxu1 %vm10610_vm13, %v10665_v54 }
 0x3a2   : > { %4401 = vmatprep.mubr.bf16.mxu1 %v10667_v0  ;;  %v9593_v13 = vadd.f32 %v6200_v37, %v3560_v52  ;;  %v3571_v19 = vadd.f32 %v9437_v44, %v6073_v5 }
 0x3a3   : > { %v6075_v26 = vpop.f32.mrf.mxu1  ;;  %v6202_v17 = vpop.f32.mrf.mxu0 }
 0x3a4   : > { %v6076_v1 = vadd.f32 %v6075_v26, %v6074_v31  ;;  %v6203_v7 = vadd.f32 %v6202_v17, %v6201_v38  ;;  %v10671_v31 = vld [vmem:[#allocation21_spill] sm:$0xff] }
 0x3a5   : > { %v6077_v11 = vpop.f32.mrf.mxu1  ;;  %v6204_v10 = vpop.f32.mrf.mxu0 }
 0x3a6   : > { %v9596_v21 = vadd.f32 %v6203_v7, %v3563_v20  ;;  %v3576_v45 = vadd.f32 %v6076_v1, %v9459_v57 }
 0x3a7   : > { %v6078_v39 = vpop.f32.mrf.mxu1  ;;  %v6205_v48 = vpop.f32.mrf.mxu0 }
 0x3a8   : > { %v6079_v29 = vadd.f32 %v6078_v39, %v6077_v11  ;;  %v6206_v12 = vadd.f32 %v6205_v48, %v6204_v10  ;;  %v10674_v10 = vld [vmem:[#allocation29_spill] sm:$0xff] }
 0x3a9   : > { %v6080_v50 = vpop.f32.mrf.mxu1  ;;  %v6207_v55 = vpop.f32.mrf.mxu0  ;;  %5521 = vmatmul.mubr.msk.bf16.gmra.mxu1 %vm10612_vm9, %v10668_v2 }
 0x3aa   : > { %4409 = vmatprep.mubr.bf16.mxu1 %v10670_v24  ;;  %v9603_v23 = vadd.f32 %v6206_v12, %v3568_v33  ;;  %v3579_v0 = vadd.f32 %v6079_v29, %v10673_v56 }
 0x3ab   : > { %v6081_v27 = vpop.f32.mrf.mxu1  ;;  %v6208_v49 = vpop.f32.mrf.mxu0 }
 0x3ac   : > { %v6082_v15 = vadd.f32 %v6081_v27, %v6080_v50  ;;  %v6209_v25 = vadd.f32 %v6208_v49, %v6207_v55 }
 0x3ad   : > { %v6083_v53 = vpop.f32.mrf.mxu1  ;;  %v6210_v36 = vpop.f32.mrf.mxu0 }
 0x3ae   : > { %v9606_v59 = vadd.f32 %v6209_v25, %v3571_v19  ;;  %v3584_v39 = vadd.f32 %v10674_v10, %v6082_v15 }
 0x3af   : > { %v6084_v30 = vpop.f32.mrf.mxu1  ;;  %v6211_v46 = vpop.f32.mrf.mxu0 }
 0x3b0   : > { %v6085_v35 = vadd.f32 %v6084_v30, %v6083_v53  ;;  %v6212_v60 = vadd.f32 %v6211_v46, %v6210_v36  ;;  %v10676_v30 = vld [vmem:[#allocation34_spill] sm:$0xff] }
 0x3b1   : > { %v6086_v52 = vpop.f32.mrf.mxu1  ;;  %v6213_v37 = vpop.f32.mrf.mxu0  ;;  %5524 = vmatmul.mubr.msk.bf16.gmra.mxu1 %vm10618_vm8, %v10671_v31 }
 0x3b2   : > { %4417 = vmatprep.mubr.bf16.mxu1 %v10641_v28  ;;  %v9613_v44 = vadd.f32 %v6212_v60, %v3576_v45  ;;  %v3587_v24 = vadd.f32 %v10675_v9, %v6085_v35 }
 0x3b3   : > { %v6087_v5 = vpop.f32.mrf.mxu1  ;;  %v6214_v54 = vpop.f32.mrf.mxu0 }
 0x3b4   : > { %v6088_v26 = vadd.f32 %v6087_v5, %v6086_v52  ;;  %v6215_v17 = vadd.f32 %v6214_v54, %v6213_v37  ;;  %v10677_v5 = vld [vmem:[#allocation36_spill] sm:$0xff] }
 0x3b5   : > { %v6089_v20 = vpop.f32.mrf.mxu1  ;;  %v6216_v57 = vpop.f32.mrf.mxu0 }
 0x3b6   : > { %v9616_v1 = vadd.f32 %v6215_v17, %v3579_v0  ;;  %v3592_v46 = vadd.f32 %v6088_v26, %v10676_v30 }
 0x3b7   : > { %v6090_v7 = vpop.f32.mrf.mxu1  ;;  %v6217_v11 = vpop.f32.mrf.mxu0 }
 0x3b8   : > { %v6091_v48 = vadd.f32 %v6090_v7, %v6089_v20  ;;  %v6218_v33 = vadd.f32 %v6217_v11, %v6216_v57  ;;  %v10678_v11 = vld [vmem:[#allocation43_spill] sm:$0xff] }
 0x3b9   : > { %v6092_v12 = vpop.f32.mrf.mxu1  ;;  %v6219_v50 = vpop.f32.mrf.mxu0  ;;  %4418 = vmatmul.mubr.bf16.gmra.mxu1 %v10641_v28 }
 0x3ba   : > { %v9620_v55 = vadd.f32 %v6218_v33, %v3584_v39  ;;  %v3595_v54 = vadd.f32 %v6091_v48, %v10677_v5 }
 0x3bb   : > { %v6093_v2 = vpop.f32.mrf.mxu1  ;;  %v6220_v29 = vpop.f32.mrf.mxu0 }
 0x3bc   : > { %v6094_v27 = vadd.f32 %v6093_v2, %v6092_v12  ;;  %v6221_v49 = vadd.f32 %v6220_v29, %v6219_v50 }
 0x3bd   : > { %v6095_v19 = vpop.f32.mrf.mxu1  ;;  %v6222_v25 = vpop.f32.mrf.mxu0 }
 0x3be   : > { %v9623_v53 = vadd.f32 %v6221_v49, %v3587_v24  ;;  %v3600_v10 = vadd.f32 %v10678_v11, %v6094_v27 }
 0x3bf   : > { %v6096_v36 = vpop.f32.mrf.mxu1  ;;  %v6223_v15 = vpop.f32.mrf.mxu0 }
 0x3c0   : > { %v6097_v45 = vadd.f32 %v6096_v36, %v6095_v19  ;;  %v6224_v60 = vadd.f32 %v6223_v15, %v6222_v25 }
 0x3c1   : > { %v6225_v52 = vpop.f32.mrf.mxu0  ;;  %v6604_v28 = vpop.f32.mrf.mxu1 }
 0x3c2   : > { %v9627_v37 = vadd.f32 %v6604_v28, %v9503_v40  ;;  %v9629_v31 = vadd.f32 %v6224_v60, %v3592_v46 }
 0x3c3   : > { %v6226_v35 = vpop.f32.mrf.mxu0  ;;  %v3945_v38 = vpop.f32.mrf.mxu1 }
 0x3c4   : > { %v6227_v56 = vadd.f32 %v6226_v35, %v6225_v52  ;;  %v9633_v0 = vadd.f32 %v3945_v38, %v9493_v14 }
 0x3c5   : > { %v6228_v17 = vpop.f32.mrf.mxu0  ;;  %v6605_v20 = vpop.f32.mrf.mxu1 }
 0x3c6   : > { %v9636_v26 = vadd.f32 %v6605_v20, %v9506_v34  ;;  %v9638_v57 = vadd.f32 %v6227_v56, %v3595_v54  ;;  %v10679_v34 = vld [vmem:[#allocation45_spill] sm:$0xff] }
 0x3c7   : > { %v6229_v7 = vpop.f32.mrf.mxu0  ;;  %v3948_v40 = vpop.f32.mrf.mxu1  ;;  %v3603_v9 = vadd.f32 %v10679_v34, %v6097_v45 }
 0x3c8   : > { %v6230_v39 = vadd.f32 %v6229_v7, %v6228_v17  ;;  %v9642_v33 = vadd.f32 %v3948_v40, %v9496_v18 }
 0x3c9   : > { %v6231_v48 = vpop.f32.mrf.mxu0  ;;  %v6608_v12 = vpop.f32.mrf.mxu1 }
 0x3ca   : > { %v9645_v14 = vadd.f32 %v6608_v12, %v9523_v42  ;;  %v3905_v50 = vadd.f32 %v6230_v39, %v3600_v10 }
 0x3cb   : > { %v6232_v2 = vpop.f32.mrf.mxu0  ;;  %v3961_v29 = vpop.f32.mrf.mxu1 }
 0x3cc   : > { %v6233_v24 = vadd.f32 %v6232_v2, %v6231_v48  ;;  %v9649_v49 = vadd.f32 %v3961_v29, %v9513_v62 }
 0x3cd   : > { %v6609_v19 = vpop.f32.mrf.mxu1 }
 0x3ce   : > { %v9652_v27 = vadd.f32 %v6609_v19, %v9526_v22  ;;  %v3908_v18 = vadd.f32 %v6233_v24, %v3603_v9 }
 0x3cf   : > { %v3964_v25 = vpop.f32.mrf.mxu1 }
 0x3d0   : > { %v9655_v36 = vadd.f32 %v3964_v25, %v9516_v3 }
 0x3d1   : > { %v6612_v42 = vpop.f32.mrf.mxu1 }
 0x3d2   : > { %v9658_v15 = vadd.f32 %v6612_v42, %v9543_v61 }
 0x3d3   : > { %v3977_v30 = vpop.f32.mrf.mxu1 }
 0x3d4   : > { %v9661_v46 = vadd.f32 %v3977_v30, %v9533_v47 }
 0x3d5   : > { %v6613_v45 = vpop.f32.mrf.mxu1 }
 0x3d6   : > { %v9664_v62 = vadd.f32 %v6613_v45, %v9546_v41 }
 0x3d7   : > { %v3980_v60 = vpop.f32.mrf.mxu1 }
 0x3d8   : > { %v9667_v22 = vadd.f32 %v3980_v60, %v9536_v32 }
 0x3d9   : > { %v6616_v52 = vpop.f32.mrf.mxu1 }
 0x3da   : > { %v9670_v3 = vadd.f32 %v6616_v52, %v9563_v6 }
 0x3db   : > { %v3993_v28 = vpop.f32.mrf.mxu1 }
 0x3dc   : > { %v9673_v61 = vadd.f32 %v3993_v28, %v9553_v58 }
 0x3dd   : > { %v6617_v35 = vpop.f32.mrf.mxu1 }
 0x3de   : > { %v9676_v47 = vadd.f32 %v6617_v35, %v9566_v51 }
 0x3df   : > { %v3996_v38 = vpop.f32.mrf.mxu1 }
 0x3e0   : > { %v9679_v41 = vadd.f32 %v3996_v38, %v9556_v16 }
 0x3e1   : > { %v6620_v5 = vpop.f32.mrf.mxu1 }
 0x3e2   : > { %v9682_v32 = vadd.f32 %v6620_v5, %v9583_v43 }
 0x3e3   : > { %v4009_v54 = vpop.f32.mrf.mxu1 }
 0x3e4   : > { %v9685_v6 = vadd.f32 %v4009_v54, %v9573_v8  ;;  %v6902_v54 = vld [vmem:[%s7259_s30] sm:$0xff] }
 0x3e5   : > { %v6621_v56 = vpop.f32.mrf.mxu1 }
 0x3e6   : > { %v9688_v58 = vadd.f32 %v6621_v56, %v9586_v63 }
 0x3e7   : > { %v4012_v17 = vpop.f32.mrf.mxu1 }
 0x3e8   : > { %v9691_v51 = vadd.f32 %v4012_v17, %v9576_v4 }
 0x3e9   : > { %v6624_v20 = vpop.f32.mrf.mxu1 }
 0x3ea   : > { %v9694_v16 = vadd.f32 %v6624_v20, %v9603_v23 }
 0x3eb   : > { %v4025_v7 = vpop.f32.mrf.mxu1 }
 0x3ec   : > { %v9697_v43 = vadd.f32 %v4025_v7, %v9593_v13 }
 0x3ed   : > { %v6625_v40 = vpop.f32.mrf.mxu1 }
 0x3ee   : > { %v9700_v8 = vadd.f32 %v6625_v40, %v9606_v59 }
 0x3ef   : > { %v4028_v11 = vpop.f32.mrf.mxu1 }
 0x3f0   : > { %v9703_v63 = vadd.f32 %v4028_v11, %v9596_v21 }
 0x3f1   : > { %v6628_v10 = vpop.f32.mrf.mxu1 }
 0x3f2   : > { %v9706_v4 = vadd.f32 %v6628_v10, %v9620_v55  ;;  %v6652_v55 = vpop.f32.mrf.mxu0 }
 0x3f3   : > { %v4041_v39 = vpop.f32.mrf.mxu1 }
 0x3f4   : > { %v9709_v23 = vadd.f32 %v4041_v39, %v9613_v44 }
 0x3f5   : > { %v6629_v48 = vpop.f32.mrf.mxu1 }
 0x3f6   : > { %v9712_v13 = vadd.f32 %v6629_v48, %v9623_v53  ;;  %v4460_v53 = vpop.f32.mrf.mxu0  ;;  %v6903_v48 = vld [vmem:[%s7259_s30 + $0x8] sm:$0xff] }
 0x3f7   : > { %v4044_v12 = vpop.f32.mrf.mxu1 }
 0x3f8   : > { %v9715_v59 = vadd.f32 %v4044_v12, %v9616_v1  ;;  %v6653_v30 = vpop.f32.mrf.mxu0 }
 0x3f9   : > { %v6632_v2 = vpop.f32.mrf.mxu1 }
 0x3fa   : > { %v9717_v29 = vadd.f32 %v6632_v2, %v3905_v50 }
 0x3fb   : > { %v4057_v21 = vpop.f32.mrf.mxu1 }
 0x3fc   : > { %v9720_v34 = vadd.f32 %v4057_v21, %v9629_v31  ;;  %v9730_v31 = vld [vmem:[%s9918_s4] ss:$0 sm:$0xff] }
 0x3fd   : > { %v6633_v9 = vpop.f32.mrf.mxu1 }
 0x3fe   : > { %v9722_v24 = vadd.f32 %v6633_v9, %v3908_v18 }
 0x3ff   : > { %v4060_v44 = vpop.f32.mrf.mxu1 }
 0x400   : > { %v9725_v19 = vadd.f32 %v4060_v44, %v9638_v57  ;;  %v4463_v57 = vpop.f32.mrf.mxu0 }
 0x401   : > { %v6274_v25 = vpop.f32.mrf.mxu1 }
 0x402   : > { %v6656_v7 = vpop.f32.mrf.mxu0 }
 0x403   : > { %v6275_v1 = vpop.f32.mrf.mxu1 }
 0x404   : > { %v6276_v42 = vadd.f32 %v6275_v1, %v6274_v25  ;;  %v4476_v21 = vpop.f32.mrf.mxu0  ;;  %v6904_v1 = vld [vmem:[%s7259_s30 + $0x10] sm:$0xff] }
 0x405   : > { %v6277_v50 = vpop.f32.mrf.mxu1 }
 0x406   : > { %v4461_v45 = vadd.f32 %v6276_v42, %v4460_v53 }
 0x407   : > { %v6278_v60 = vpop.f32.mrf.mxu1 }
 0x408   : > { %v4587_v18 = vadd.f32 %v4461_v45, %v9633_v0  ;;  %v6279_v52 = vadd.f32 %v6278_v60, %v6277_v50  ;;  %v6657_v60 = vpop.f32.mrf.mxu0 }
 0x409   : > { %v6280_v28 = vpop.f32.mrf.mxu1 }
 0x40a   : > { %v4626_v35 = vadd.f32 %v9730_v31, %v4587_v18  ;;  %v4464_v38 = vadd.f32 %v6279_v52, %v4463_v57 }
 0x40b   : > { %v6281_v5 = vpop.f32.mrf.mxu1 }
 0x40c   : > { %v4658_v56 = vadd.f32 %v6902_v54, %v4626_v35  ;;  %v4588_v17 = vadd.f32 %v4464_v38, %v9642_v33  ;;  %v6282_v20 = vadd.f32 %v6281_v5, %v6280_v28  ;;  %v6905_v35 = vld [vmem:[%s7259_s30 + $0x18] sm:$0xff]  ;;  %v4479_v54 = vpop.f32.mrf.mxu0 }
 0x40d   : > { %v6283_v40 = vpop.f32.mrf.mxu1 }
 0x40e   : > { %v4690_v11 = vmax.f32 %v4658_v56, 0.0  ;;  %v4627_v10 = vadd.f32 %v9730_v31, %v4588_v17  ;;  %v4469_v0 = vadd.f32 %v6652_v55, %v6282_v20 }
 0x40f   : > { %v6284_v39 = vpop.f32.mrf.mxu1 }
 0x410   : > { %4722 = vst [vmem:[%s9739_s11] sm:$0xff] %v4690_v11  ;;  %v4659_v12 = vadd.f32 %v6903_v48, %v4627_v10  ;;  %v4589_v2 = vadd.f32 %v4469_v0, %v9627_v37  ;;  %v6285_v33 = vadd.f32 %v6284_v39, %v6283_v40  ;;  %v6906_v11 = vld [vmem:[%s7259_s30 + $0x20] sm:$0xff]  ;;  %v6660_v48 = vpop.f32.mrf.mxu0 }
 0x411   : > { %v6286_v9 = vpop.f32.mrf.mxu1 }
 0x412   : > { %v4691_v44 = vmax.f32 %v4659_v12, 0.0  ;;  %v4628_v53 = vadd.f32 %v9730_v31, %v4589_v2  ;;  %v4472_v55 = vadd.f32 %v6653_v30, %v6285_v33 }
 0x413   : > { %v6287_v25 = vpop.f32.mrf.mxu1 }
 0x414   : > { %4723 = vst [vmem:[%s9739_s11 + $0x8] sm:$0xff] %v4691_v44  ;;  %v4660_v42 = vadd.f32 %v6904_v1, %v4628_v53  ;;  %v4590_v50 = vadd.f32 %v4472_v55, %v9636_v26  ;;  %v6288_v45 = vadd.f32 %v6287_v25, %v6286_v9  ;;  %v6907_v9 = vld [vmem:[%s7259_s30 + $0x28] sm:$0xff]  ;;  %v4492_v25 = vpop.f32.mrf.mxu0 }
 0x415   : > { %v6289_v18 = vpop.f32.mrf.mxu1 }
 0x416   : > { %v4692_v37 = vmax.f32 %v4660_v42, 0.0  ;;  %v4629_v52 = vadd.f32 %v9730_v31, %v4590_v50  ;;  %v4477_v57 = vadd.f32 %v6288_v45, %v4476_v21 }
 0x417   : > { %v6290_v28 = vpop.f32.mrf.mxu1 }
 0x418   : > { %4724 = vst [vmem:[%s9739_s11 + $0x10] sm:$0xff] %v4692_v37  ;;  %v4661_v38 = vadd.f32 %v6905_v35, %v4629_v52  ;;  %v4591_v30 = vadd.f32 %v4477_v57, %v9649_v49  ;;  %v6291_v5 = vadd.f32 %v6290_v28, %v6289_v18  ;;  %v6908_v18 = vld [vmem:[%s7259_s30 + $0x30] sm:$0xff]  ;;  %v6661_v57 = vpop.f32.mrf.mxu0 }
 0x419   : > { %v6292_v56 = vpop.f32.mrf.mxu1 }
 0x41a   : > { %v4693_v26 = vmax.f32 %v4661_v38, 0.0  ;;  %v4630_v17 = vadd.f32 %v9730_v31, %v4591_v30  ;;  %v4480_v20 = vadd.f32 %v6291_v5, %v4479_v54  ;;  %v6909_v5 = vld [vmem:[%s7259_s30 + $0x38] sm:$0xff] }
 0x41b   : > { %v6293_v40 = vpop.f32.mrf.mxu1 }
 0x41c   : > { %4725 = vst [vmem:[%s9739_s11 + $0x18] sm:$0xff] %v4693_v26  ;;  %v4662_v10 = vadd.f32 %v6906_v11, %v4630_v17  ;;  %v4592_v0 = vadd.f32 %v4480_v20, %v9655_v36  ;;  %v6294_v39 = vadd.f32 %v6293_v40, %v6292_v56  ;;  %v4495_v26 = vpop.f32.mrf.mxu0 }
 0x41d   : > { %v6295_v12 = vpop.f32.mrf.mxu1 }
 0x41e   : > { %v4694_v49 = vmax.f32 %v4662_v10, 0.0  ;;  %v4631_v2 = vadd.f32 %v9730_v31, %v4592_v0  ;;  %v4485_v33 = vadd.f32 %v6656_v7, %v6294_v39  ;;  %v6910_v10 = vld [vmem:[%s7259_s30 + $0x40] sm:$0xff] }
 0x41f   : > { %v6296_v21 = vpop.f32.mrf.mxu1 }
 0x420   : > { %4726 = vst [vmem:[%s9739_s11 + $0x20] sm:$0xff] %v4694_v49  ;;  %v4663_v44 = vadd.f32 %v6907_v9, %v4631_v2  ;;  %v4593_v53 = vadd.f32 %v4485_v33, %v9645_v14  ;;  %v6297_v55 = vadd.f32 %v6296_v21, %v6295_v12  ;;  %v6664_v49 = vpop.f32.mrf.mxu0 }
 0x421   : > { %v6298_v1 = vpop.f32.mrf.mxu1 }
 0x422   : > { %v4695_v36 = vmax.f32 %v4663_v44, 0.0  ;;  %v4632_v42 = vadd.f32 %v9730_v31, %v4593_v53  ;;  %v4488_v50 = vadd.f32 %v6657_v60, %v6297_v55  ;;  %v6911_v44 = vld [vmem:[%s7259_s30 + $0x48] sm:$0xff] }
 0x423   : > { %v6299_v45 = vpop.f32.mrf.mxu1 }
 0x424   : > { %4727 = vst [vmem:[%s9739_s11 + $0x28] sm:$0xff] %v4695_v36  ;;  %v4664_v37 = vadd.f32 %v6908_v18, %v4632_v42  ;;  %v4594_v7 = vadd.f32 %v4488_v50, %v9652_v27  ;;  %v6300_v52 = vadd.f32 %v6299_v45, %v6298_v1  ;;  %v4508_v1 = vpop.f32.mrf.mxu0  ;;  %v6912_v18 = vld [vmem:[%s7259_s30 + $0x50] sm:$0xff] }
 0x425   : > { %v6301_v28 = vpop.f32.mrf.mxu1 }
 0x426   : > { %v4696_v14 = vmax.f32 %v4664_v37, 0.0  ;;  %v4633_v35 = vadd.f32 %v9730_v31, %v4594_v7  ;;  %v4493_v38 = vadd.f32 %v6300_v52, %v4492_v25  ;;  %v6665_v52 = vpop.f32.mrf.mxu0 }
 0x427   : > { %v6302_v30 = vpop.f32.mrf.mxu1 }
 0x428   : > { %4728 = vst [vmem:[%s9739_s11 + $0x30] sm:$0xff] %v4696_v14  ;;  %v4665_v54 = vadd.f32 %v6909_v5, %v4633_v35  ;;  %v4595_v60 = vadd.f32 %v4493_v38, %v9661_v46  ;;  %v6303_v56 = vadd.f32 %v6302_v30, %v6301_v28  ;;  %v6913_v30 = vld [vmem:[%s7259_s30 + $0x58] sm:$0xff] }
 0x429   : > { %v6304_v17 = vpop.f32.mrf.mxu1 }
 0x42a   : > { %v4697_v27 = vmax.f32 %v4665_v54, 0.0  ;;  %v4634_v20 = vadd.f32 %v9730_v31, %v4595_v60  ;;  %v4496_v40 = vadd.f32 %v6303_v56, %v4495_v26  ;;  %v4511_v60 = vpop.f32.mrf.mxu0 }
 0x42b   : > { %v6305_v11 = vpop.f32.mrf.mxu1 }
 0x42c   : > { %4729 = vst [vmem:[%s9739_s11 + $0x38] sm:$0xff] %v4697_v27  ;;  %v4666_v0 = vadd.f32 %v6910_v10, %v4634_v20  ;;  %v4596_v39 = vadd.f32 %v4496_v40, %v9667_v22  ;;  %v6306_v12 = vadd.f32 %v6305_v11, %v6304_v17  ;;  %v6914_v20 = vld [vmem:[%s7259_s30 + $0x60] sm:$0xff] }
 0x42d   : > { %v6307_v2 = vpop.f32.mrf.mxu1 }
 0x42e   : > { %v4698_v46 = vmax.f32 %v4666_v0, 0.0  ;;  %v4635_v33 = vadd.f32 %v9730_v31, %v4596_v39  ;;  %v4501_v21 = vadd.f32 %v6660_v48, %v6306_v12  ;;  %v6668_v0 = vpop.f32.mrf.mxu0 }
 0x42f   : > { %v6308_v9 = vpop.f32.mrf.mxu1 }
 0x430   : > { %4730 = vst [vmem:[%s9739_s11 + $0x40] sm:$0xff] %v4698_v46  ;;  %v4667_v53 = vadd.f32 %v6911_v44, %v4635_v33  ;;  %v4597_v55 = vadd.f32 %v4501_v21, %v9658_v15  ;;  %v6309_v25 = vadd.f32 %v6308_v9, %v6307_v2  ;;  %v6915_v33 = vld [vmem:[%s7259_s30 + $0x68] sm:$0xff] }
 0x431   : > { %v6310_v36 = vpop.f32.mrf.mxu1 }
 0x432   : > { %v4699_v22 = vmax.f32 %v4667_v53, 0.0  ;;  %v4636_v42 = vadd.f32 %v9730_v31, %v4597_v55  ;;  %v4504_v50 = vadd.f32 %v6661_v57, %v6309_v25  ;;  %v4524_v53 = vpop.f32.mrf.mxu0 }
 0x433   : > { %v6311_v45 = vpop.f32.mrf.mxu1 }
 0x434   : > { %4731 = vst [vmem:[%s9739_s11 + $0x48] sm:$0xff] %v4699_v22  ;;  %v4668_v37 = vadd.f32 %v6912_v18, %v4636_v42  ;;  %v4598_v48 = vadd.f32 %v4504_v50, %v9664_v62  ;;  %v6312_v7 = vadd.f32 %v6311_v45, %v6310_v36  ;;  %v6916_v22 = vld [vmem:[%s7259_s30 + $0x70] sm:$0xff]  ;;  %v6669_v45 = vpop.f32.mrf.mxu0 }
 0x435   : > { %v6313_v28 = vpop.f32.mrf.mxu1 }
 0x436   : > { %v4700_v15 = vmax.f32 %v4668_v37, 0.0  ;;  %v4637_v14 = vadd.f32 %v9730_v31, %v4598_v48  ;;  %v4509_v35 = vadd.f32 %v6312_v7, %v4508_v1 }
 0x437   : > { %v6314_v38 = vpop.f32.mrf.mxu1 }
 0x438   : > { %4732 = vst [vmem:[%s9739_s11 + $0x50] sm:$0xff] %v4700_v15  ;;  %v4669_v5 = vadd.f32 %v6913_v30, %v4637_v14  ;;  %v4599_v57 = vadd.f32 %v4509_v35, %v9673_v61  ;;  %v6315_v54 = vadd.f32 %v6314_v38, %v6313_v28  ;;  %v6917_v28 = vld [vmem:[%s7259_s30 + $0x78] sm:$0xff]  ;;  %v4527_v35 = vpop.f32.mrf.mxu0 }
 0x439   : > { %v6316_v56 = vpop.f32.mrf.mxu1 }
 0x43a   : > { %v4701_v62 = vmax.f32 %v4669_v5, 0.0  ;;  %v4638_v26 = vadd.f32 %v9730_v31, %v4599_v57  ;;  %v4512_v17 = vadd.f32 %v6315_v54, %v4511_v60  ;;  %v6918_v54 = vld [vmem:[%s7259_s30 + $0x80] sm:$0xff] }
 0x43b   : > { %v6317_v27 = vpop.f32.mrf.mxu1 }
 0x43c   : > { %4733 = vst [vmem:[%s9739_s11 + $0x58] sm:$0xff] %v4701_v62  ;;  %v4670_v40 = vadd.f32 %v6914_v20, %v4638_v26  ;;  %v4600_v11 = vadd.f32 %v4512_v17, %v9679_v41  ;;  %v6318_v10 = vadd.f32 %v6317_v27, %v6316_v56  ;;  %v6672_v26 = vpop.f32.mrf.mxu0 }
 0x43d   : > { %v6319_v39 = vpop.f32.mrf.mxu1 }
 0x43e   : > { %v4702_v61 = vmax.f32 %v4670_v40, 0.0  ;;  %v4639_v12 = vadd.f32 %v9730_v31, %v4600_v11  ;;  %v4517_v2 = vadd.f32 %v6664_v49, %v6318_v10  ;;  %v6919_v11 = vld [vmem:[%s7259_s30 + $0x88] sm:$0xff] }
 0x43f   : > { %v6320_v46 = vpop.f32.mrf.mxu1 }
 0x440   : > { %4734 = vst [vmem:[%s9739_s11 + $0x60] sm:$0xff] %v4702_v61  ;;  %v4671_v21 = vadd.f32 %v6915_v33, %v4639_v12  ;;  %v4601_v9 = vadd.f32 %v4517_v2, %v9670_v3  ;;  %v6321_v44 = vadd.f32 %v6320_v46, %v6319_v39  ;;  %v4540_v12 = vpop.f32.mrf.mxu0 }
 0x441   : > { %v6322_v55 = vpop.f32.mrf.mxu1 }
 0x442   : > { %v4703_v41 = vmax.f32 %v4671_v21, 0.0  ;;  %v4640_v25 = vadd.f32 %v9730_v31, %v4601_v9  ;;  %v4520_v1 = vadd.f32 %v6665_v52, %v6321_v44  ;;  %v6920_v9 = vld [vmem:[%s7259_s30 + $0x90] sm:$0xff] }
 0x443   : > { %v6323_v36 = vpop.f32.mrf.mxu1 }
 0x444   : > { %4735 = vst [vmem:[%s9739_s11 + $0x68] sm:$0xff] %v4703_v41  ;;  %v4672_v42 = vadd.f32 %v6916_v22, %v4640_v25  ;;  %v4602_v49 = vadd.f32 %v4520_v1, %v9676_v47  ;;  %v6324_v50 = vadd.f32 %v6323_v36, %v6322_v55  ;;  %v6673_v55 = vpop.f32.mrf.mxu0  ;;  %v6921_v22 = vld [vmem:[%s7259_s30 + $0x98] sm:$0xff] }
 0x445   : > { %v6325_v18 = vpop.f32.mrf.mxu1 }
 0x446   : > { %v4704_v3 = vmax.f32 %v4672_v42, 0.0  ;;  %v4641_v37 = vadd.f32 %v9730_v31, %v4602_v49  ;;  %v4525_v48 = vadd.f32 %v6324_v50, %v4524_v53 }
 0x447   : > { %v6326_v7 = vpop.f32.mrf.mxu1 }
 0x448   : > { %4736 = vst [vmem:[%s9739_s11 + $0x70] sm:$0xff] %v4704_v3  ;;  %v4673_v15 = vadd.f32 %v6917_v28, %v4641_v37  ;;  %v4603_v52 = vadd.f32 %v4525_v48, %v9685_v6  ;;  %v6327_v14 = vadd.f32 %v6326_v7, %v6325_v18  ;;  %v6922_v7 = vld [vmem:[%s7259_s30 + $0xa0] sm:$0xff] }
 0x449   : > { %v6328_v38 = vpop.f32.mrf.mxu1 }
 0x44a   : > { %v4705_v47 = vmax.f32 %v4673_v15, 0.0  ;;  %v4642_v30 = vadd.f32 %v9730_v31, %v4603_v52  ;;  %v4528_v5 = vadd.f32 %v6327_v14, %v4527_v35 }
 0x44b   : > { %v6329_v57 = vpop.f32.mrf.mxu1 }
 0x44c   : > { %4737 = vst [vmem:[%s9739_s11 + $0x78] sm:$0xff] %v4705_v47  ;;  %v4674_v60 = vadd.f32 %v6918_v54, %v4642_v30  ;;  %v4604_v56 = vadd.f32 %v4528_v5, %v9691_v51  ;;  %v6330_v62 = vadd.f32 %v6329_v57, %v6328_v38  ;;  %v6923_v5 = vld [vmem:[%s7259_s30 + $0xa8] sm:$0xff] }
 0x44d   : > { %v6331_v17 = vpop.f32.mrf.mxu1 }
 0x44e   : > { %v4706_v6 = vmax.f32 %v4674_v60, 0.0  ;;  %v4643_v27 = vadd.f32 %v9730_v31, %v4604_v56  ;;  %v4533_v20 = vadd.f32 %v6668_v0, %v6330_v62 }
 0x44f   : > { %v6332_v40 = vpop.f32.mrf.mxu1 }
 0x450   : > { %4738 = vst [vmem:[%s9739_s11 + $0x80] sm:$0xff] %v4706_v6  ;;  %v4675_v10 = vadd.f32 %v6919_v11, %v4643_v27  ;;  %v4605_v39 = vadd.f32 %v4533_v20, %v9682_v32  ;;  %v6333_v61 = vadd.f32 %v6332_v40, %v6331_v17  ;;  %v6924_v20 = vld [vmem:[%s7259_s30 + $0xb0] sm:$0xff] }
 0x451   : > { %v6334_v2 = vpop.f32.mrf.mxu1 }
 0x452   : > { %v4707_v51 = vmax.f32 %v4675_v10, 0.0  ;;  %v4644_v46 = vadd.f32 %v9730_v31, %v4605_v39  ;;  %v4536_v33 = vadd.f32 %v6669_v45, %v6333_v61  ;;  %v4543_v45 = vpop.f32.mrf.mxu0 }
 0x453   : > { %v6335_v21 = vpop.f32.mrf.mxu1 }
 0x454   : > { %4739 = vst [vmem:[%s9739_s11 + $0x88] sm:$0xff] %v4707_v51  ;;  %v4676_v44 = vadd.f32 %v6920_v9, %v4644_v46  ;;  %v4606_v0 = vadd.f32 %v4536_v33, %v9688_v58  ;;  %v6336_v53 = vadd.f32 %v6335_v21, %v6334_v2  ;;  %v6676_v14 = vpop.f32.mrf.mxu0  ;;  %v6925_v51 = vld [vmem:[%s7259_s30 + $0xb8] sm:$0xff] }
 0x455   : > { %v6337_v41 = vpop.f32.mrf.mxu1 }
 0x456   : > { %v4708_v32 = vmax.f32 %v4676_v44, 0.0  ;;  %v4645_v25 = vadd.f32 %v9730_v31, %v4606_v0  ;;  %v4541_v1 = vadd.f32 %v6336_v53, %v4540_v12  ;;  %v4556_v56 = vpop.f32.mrf.mxu0 }
 0x457   : > { %v6338_v36 = vpop.f32.mrf.mxu1 }
 0x458   : > { %4740 = vst [vmem:[%s9739_s11 + $0x90] sm:$0xff] %v4708_v32  ;;  %v4677_v42 = vadd.f32 %v6921_v22, %v4645_v25  ;;  %v4607_v49 = vadd.f32 %v4541_v1, %v9697_v43  ;;  %v6339_v50 = vadd.f32 %v6338_v36, %v6337_v41  ;;  %v6677_v10 = vpop.f32.mrf.mxu0  ;;  %v6926_v32 = vld [vmem:[%s7259_s30 + $0xc0] sm:$0xff] }
 0x459   : > { %v6340_v18 = vpop.f32.mrf.mxu1 }
 0x45a   : > { %v4709_v58 = vmax.f32 %v4677_v42, 0.0  ;;  %v4646_v3 = vadd.f32 %v9730_v31, %v4607_v49  ;;  %v4544_v37 = vadd.f32 %v6339_v50, %v4543_v45  ;;  %v4559_v9 = vpop.f32.mrf.mxu0 }
 0x45b   : > { %v6341_v48 = vpop.f32.mrf.mxu1 }
 0x45c   : > { %4741 = vst [vmem:[%s9739_s11 + $0x98] sm:$0xff] %v4709_v58  ;;  %v4678_v28 = vadd.f32 %v6922_v7, %v4646_v3  ;;  %v4608_v15 = vadd.f32 %v4544_v37, %v9703_v63  ;;  %v6342_v52 = vadd.f32 %v6341_v48, %v6340_v18  ;;  %v6680_v41 = vpop.f32.mrf.mxu0  ;;  %v6927_v18 = vld [vmem:[%s7259_s30 + $0xc8] sm:$0xff] }
 0x45d   : > { %v6343_v35 = vpop.f32.mrf.mxu1 }
 0x45e   : > { %v4710_v43 = vmax.f32 %v4678_v28, 0.0  ;;  %v4647_v38 = vadd.f32 %v9730_v31, %v4608_v15  ;;  %v4549_v47 = vadd.f32 %v6672_v26, %v6342_v52  ;;  %v4572_v45 = vpop.f32.mrf.mxu0 }
 0x45f   : > { %v6344_v30 = vpop.f32.mrf.mxu1 }
 0x460   : > { %4742 = vst [vmem:[%s9739_s11 + $0xa0] sm:$0xff] %v4710_v43  ;;  %v4679_v57 = vadd.f32 %v6923_v5, %v4647_v38  ;;  %v4609_v54 = vadd.f32 %v4549_v47, %v9694_v16  ;;  %v6345_v60 = vadd.f32 %v6344_v30, %v6343_v35  ;;  %v6681_v52 = vpop.f32.mrf.mxu0  ;;  %v6928_v35 = vld [vmem:[%s7259_s30 + $0xd0] sm:$0xff] }
 0x461   : > { %v6346_v62 = vpop.f32.mrf.mxu1 }
 0x462   : > { %v4711_v63 = vmax.f32 %v4679_v57, 0.0  ;;  %v4648_v17 = vadd.f32 %v9730_v31, %v4609_v54  ;;  %v4552_v6 = vadd.f32 %v6673_v55, %v6345_v60  ;;  %v4575_v54 = vpop.f32.mrf.mxu0  ;;  %v6929_v60 = vld [vmem:[%s7259_s30 + $0xd8] sm:$0xff] }
 0x463   : > { %v6347_v27 = vpop.f32.mrf.mxu1 }
 0x464   : > { %4743 = vst [vmem:[%s9739_s11 + $0xa8] sm:$0xff] %v4711_v63  ;;  %v4680_v40 = vadd.f32 %v6924_v20, %v4648_v17  ;;  %v4610_v26 = vadd.f32 %v4552_v6, %v9700_v8  ;;  %v6348_v11 = vadd.f32 %v6347_v27, %v6346_v62 }
 0x465   : > { %v6349_v39 = vpop.f32.mrf.mxu1 }
 0x466   : > { %v4712_v61 = vmax.f32 %v4680_v40, 0.0  ;;  %v4649_v16 = vadd.f32 %v9730_v31, %v4610_v26  ;;  %v4557_v12 = vadd.f32 %v6348_v11, %v4556_v56  ;;  %v6930_v40 = vld [vmem:[%s7259_s30 + $0xe0] sm:$0xff] }
 0x467   : > { %v6350_v2 = vpop.f32.mrf.mxu1 }
 0x468   : > { %4744 = vst [vmem:[%s9739_s11 + $0xb0] sm:$0xff] %v4712_v61  ;;  %v4681_v46 = vadd.f32 %v6925_v51, %v4649_v16  ;;  %v4611_v33 = vadd.f32 %v4557_v12, %v9709_v23  ;;  %v6351_v21 = vadd.f32 %v6350_v2, %v6349_v39  ;;  %v6931_v2 = vld [vmem:[%s7259_s30 + $0xe8] sm:$0xff] }
 0x469   : > { %v6352_v44 = vpop.f32.mrf.mxu1 }
 0x46a   : > { %v4713_v0 = vmax.f32 %v4681_v46, 0.0  ;;  %v4650_v8 = vadd.f32 %v9730_v31, %v4611_v33  ;;  %v4560_v53 = vadd.f32 %v6351_v21, %v4559_v9 }
 0x46b   : > { %v6353_v55 = vpop.f32.mrf.mxu1 }
 0x46c   : > { %4745 = vst [vmem:[%s9739_s11 + $0xb8] sm:$0xff] %v4713_v0  ;;  %v4682_v25 = vadd.f32 %v6926_v32, %v4650_v8  ;;  %v4612_v1 = vadd.f32 %v4560_v53, %v9715_v59  ;;  %v6354_v36 = vadd.f32 %v6353_v55, %v6352_v44  ;;  %v6932_v44 = vld [vmem:[%s7259_s30 + $0xf0] sm:$0xff] }
 0x46d   : > { %v6355_v22 = vpop.f32.mrf.mxu1 }
 0x46e   : > { %v4714_v42 = vmax.f32 %v4682_v25, 0.0  ;;  %v4651_v23 = vadd.f32 %v9730_v31, %v4612_v1  ;;  %v4565_v49 = vadd.f32 %v6676_v14, %v6354_v36 }
 0x46f   : > { %v6356_v50 = vpop.f32.mrf.mxu1 }
 0x470   : > { %4746 = vst [vmem:[%s9739_s11 + $0xc0] sm:$0xff] %v4714_v42  ;;  %v4683_v58 = vadd.f32 %v6927_v18, %v4651_v23  ;;  %v4613_v3 = vadd.f32 %v4565_v49, %v9706_v4  ;;  %v6357_v37 = vadd.f32 %v6356_v50, %v6355_v22 }
 0x471   : > { %v6358_v48 = vpop.f32.mrf.mxu1 }
 0x472   : > { %v4715_v7 = vmax.f32 %v4683_v58, 0.0  ;;  %v4652_v59 = vadd.f32 %v9730_v31, %v4613_v3  ;;  %v4568_v28 = vadd.f32 %v6677_v10, %v6357_v37 }
 0x473   : > { %v6359_v15 = vpop.f32.mrf.mxu1 }
 0x474   : > { %4747 = vst [vmem:[%s9739_s11 + $0xc8] sm:$0xff] %v4715_v7  ;;  %v4684_v14 = vadd.f32 %v6928_v35, %v4652_v59  ;;  %v4614_v43 = vadd.f32 %v4568_v28, %v9712_v13  ;;  %v6360_v38 = vadd.f32 %v6359_v15, %v6358_v48 }
 0x475   : > { %v6361_v47 = vpop.f32.mrf.mxu1 }
 0x476   : > { %v4716_v30 = vmax.f32 %v4684_v14, 0.0  ;;  %v4653_v4 = vadd.f32 %v9730_v31, %v4614_v43  ;;  %v4573_v5 = vadd.f32 %v6360_v38, %v4572_v45 }
 0x477   : > { %v6362_v57 = vpop.f32.mrf.mxu1 }
 0x478   : > { %4748 = vst [vmem:[%s9739_s11 + $0xd0] sm:$0xff] %v4716_v30  ;;  %v4685_v56 = vadd.f32 %v6929_v60, %v4653_v4  ;;  %v4615_v62 = vadd.f32 %v4573_v5, %v9720_v34  ;;  %v6363_v63 = vadd.f32 %v6362_v57, %v6361_v47 }
 0x479   : > { %v6364_v17 = vpop.f32.mrf.mxu1 }
 0x47a   : > { %v4717_v13 = vmax.f32 %v4685_v56, 0.0  ;;  %v4654_v6 = vadd.f32 %v9730_v31, %v4615_v62  ;;  %v4576_v27 = vadd.f32 %v6363_v63, %v4575_v54 }
 0x47b   : > { %v6365_v20 = vpop.f32.mrf.mxu1 }
 0x47c   : > { %4749 = vst [vmem:[%s9739_s11 + $0xd8] sm:$0xff] %v4717_v13  ;;  %v4686_v26 = vadd.f32 %v6930_v40, %v4654_v6  ;;  %v4616_v11 = vadd.f32 %v4576_v27, %v9725_v19  ;;  %v6366_v10 = vadd.f32 %v6365_v20, %v6364_v17 }
 0x47d   : > { %v6367_v39 = vpop.f32.mrf.mxu1 }
 0x47e   : > { %v4718_v61 = vmax.f32 %v4686_v26, 0.0  ;;  %v4655_v34 = vadd.f32 %v9730_v31, %v4616_v11  ;;  %v4581_v16 = vadd.f32 %v6680_v41, %v6366_v10 }
 0x47f   : > { %v6368_v12 = vpop.f32.mrf.mxu1 }
 0x480   : > { %4750 = vst [vmem:[%s9739_s11 + $0xe0] sm:$0xff] %v4718_v61  ;;  %v4687_v51 = vadd.f32 %v6931_v2, %v4655_v34  ;;  %v4617_v46 = vadd.f32 %v4581_v16, %v9717_v29  ;;  %v6369_v33 = vadd.f32 %v6368_v12, %v6367_v39  ;;  %v6933_v29 = vld [vmem:[%s7259_s30 + $0xf8] sm:$0xff] }
 0x482   : > { %v4719_v21 = vmax.f32 %v4687_v51, 0.0  ;;  %v4656_v19 = vadd.f32 %v9730_v31, %v4617_v46  ;;  %v4584_v9 = vadd.f32 %v6681_v52, %v6369_v33 }
 0x484   : > { %4751 = vst [vmem:[%s9739_s11 + $0xe8] sm:$0xff] %v4719_v21  ;;  %v4688_v0 = vadd.f32 %v6932_v44, %v4656_v19  ;;  %v4618_v8 = vadd.f32 %v4584_v9, %v9722_v24 }
 0x486   : > { %v4720_v53 = vmax.f32 %v4688_v0, 0.0  ;;  %v4657_v55 = vadd.f32 %v9730_v31, %v4618_v8 }
 0x488   : > { %4752 = vst [vmem:[%s9739_s11 + $0xf0] sm:$0xff] %v4720_v53  ;;  %v4689_v41 = vadd.f32 %v6933_v29, %v4657_v55 }
 0x48a   : > { %v4721_v32 = vmax.f32 %v4689_v41, 0.0 }
 0x48c   : > { %4753 = vst [vmem:[%s9739_s11 + $0xf8] sm:$0xff] %v4721_v32 }
 0x48d   : > { %7027 = shalt.err (!%p7024_p9)
}
 0x48e   : > { %s7028_s30 = scalar_lea.hbm %s9868_s9, 4096  ;;  %s7032_s8 = scalar_lea.hbm %s9919_s5, 8192 }
 0x48f   : > { %p7029_p13 = scmp.ne.s32.totalorder %s9868_s9, %s7028_s30  ;;  %p7033_p4 = scmp.lt.s32.totalorder %s9868_s9, %s9919_s5 }
 0x490   : > { %p7034_p8 = scmp.lt.s32.totalorder %s7032_s8, %s7028_s30 }
 0x491   : > { %p7030_p5 = pnand %p7029_p13, %p10680_p10 }
 0x492   : > { %p7035_p3 = por %p7034_p8, %p7033_p4 }
 0x493   : > { %p7031_p0 = pneg %p7030_p5 }
 0x495   : > { %p7036_p11 = pnand %p7035_p3, %p7031_p0 }
 0x497   : > { %7039 = shalt.err (!%p7036_p11)
}
 0x498   : > { %s7094_s12 = smov 128   ;;  %s7095_s6 = smov 8  }
 0x499   : > { %6692 = dma.vmem_to_hbm [thread:$0]  (%p10680_p10), %s9870_s28, 4096, %s9868_s9, %s4755_s13, %s7094_s12, %s7094_s12, %s7095_s6  }
 0x49a PF: > { %s4783_s7 = sand.u32 1, %s7070_s18   ;;  %p10681_p1 = scmp.ne.s32.totalorder %s10164_s25, 0 }
 0x49b   : > { %p10682_p2 = scmp.ge.s32.totalorder %s7082_s21, 2  ;;  %s4784_s14 = scalar_lea.sflag [#allocation4], %s4783_s7 }
 0x49d   : > { %p6706_p6 = pnand %p10682_p2, %p10681_p1 }
 0x49f   : > { %p6707_p12 = pneg %p6706_p6 }
 0x4a1   : > { %7065 = dma.done.wait (%p6707_p12), %s4784_s14, 4096  }
 0x4a2   : > { %7067 = vsyncadd (%p6707_p12), %s4784_s14, 4294963200  ;;  %p19_p7 = scmp.ge.s32.totalorder %s7198_s15, 4   ;;  %s10683_s18 = smov %s7074_s19 }
 0x4a3   : > { %s10684_s19 = smov %s7078_s20  ;;  %s10685_s20 = smov %s7214_s27 }
 0x4a4   : > { %s10686_s21 = smov %s7198_s15  ;;  %21 = sbr.rel (!%p19_p7) target bundleno = 6 (0x6), region = 97 }
 0x4a9   :  { %4789 = vsyncpa [#allocation3], 1 }
 0x4aa   :  { %4791 = vsyncpa [#allocation3 + $0x1], 1 }
 0x4ab   :  { %4792 = vsyncpa [#allocation6], 1 }
 0x4ac   :  { %4793 = vsyncpa [#allocation4], 1 }
 0x4ad   :  { %4795 = vsyncpa [#allocation4 + $0x1], 1 }

</bundles_post_ra>
